<compile_context>
chip_gen: v7x
topology: tpu7x:2x2x1
jax: 0.10.0
libtpu: 0.0.40
codegen_flags: <defaults>
</compile_context>

<pallas_src>
import jax
import jax.numpy as jnp
from jax import lax
from jax.experimental import pallas as pl

_K = 10                      # conv kernel size (both convs)
_CIN = 3                     # input channels
_C1 = 32                     # conv1 output channels
_C2 = 128                    # conv2 output channels
_NCLS = 2                    # fc1 output features
_HIN = 32                    # input spatial size (32x32 -> 23 -> 11 -> 2 -> 1)
_HP1 = 11                    # pooled1 spatial side
_WIN = 30                    # conv1 row-window width (covers 11 pooled cols)
_KROW = _K * _WIN * _CIN     # 900  raw conv1 contraction length
_KPAD = 1024                 # conv1 contraction padded to a multiple of 128
_N1 = _HP1 * _C1             # 352  conv1 matmul output width (owp*32 + c)


# ---------------------------------------------------------------------------
# The single fused Pallas kernel
# ---------------------------------------------------------------------------
def _make_kernel(bs):
    r = _HP1 * bs                 # real rows per (dy,dx) pool-offset block (22)
    rp = ((r + 7) // 8) * 8       # padded block height (24) -> 8-aligned starts

    def kernel(a1_ref, w1_ref, b1_ref, w2_ref, b2_ref, wfc_ref, bfc_ref, o_ref):
        # ---- conv1 + bias + ReLU: one lane-dense MXU matmul -----------------
        #   rows  = (dy*2+dx) block of (ohp*bs + b)
        #   lanes = owp*32 + c_out
        y1 = jnp.dot(a1_ref[...], w1_ref[...],
                     preferred_element_type=jnp.float32)       # (4*rp, 352)
        y1 = jnp.maximum(y1 + b1_ref[...], 0.0)

        # ---- 2x2 max-pool == elementwise max over the 4 (dy,dx) blocks ------
        p1 = jnp.maximum(
            jnp.maximum(y1[0 * rp:0 * rp + r], y1[1 * rp:1 * rp + r]),
            jnp.maximum(y1[2 * rp:2 * rp + r], y1[3 * rp:3 * rp + r]))
        p1 = p1.astype(jnp.bfloat16)          # pooled1, (11*bs, 352) lane-dense

        # ---- conv2: 10 kh-taps x 2 ow2-shifts of tiny MXU dots ---------------
        # Rows of p1 are ohp*bs + b, so tap kh's LHS is the contiguous window
        # rows [kh*bs, kh*bs + 2*bs) -- exactly the oh2 in {0,1} pixels, zero
        # dead rows.  The ow2 in {0,1} shift is a 32-lane offset hoisted out of
        # the loop; the same (320,128) weight slab serves both shifts.
        p1a = p1[:, 0:_K * _C1]               # ow2 = 0 lanes (owp = 0..9)
        p1b = p1[:, _C1:_N1]                  # ow2 = 1 lanes (owp = 1..10)
        acc0 = jnp.zeros((2 * bs, _C2), jnp.float32)
        acc1 = jnp.zeros((2 * bs, _C2), jnp.float32)
        for kh in range(_K):                  # two independent accumulator chains
            wk = w2_ref[kh]                   # (320, 128) bf16
            acc0 = acc0 + jnp.dot(p1a[kh * bs:kh * bs + 2 * bs], wk,
                                  preferred_element_type=jnp.float32)
            acc1 = acc1 + jnp.dot(p1b[kh * bs:kh * bs + 2 * bs], wk,
                                  preferred_element_type=jnp.float32)

        y2a = jnp.maximum(acc0 + b2_ref[...], 0.0)   # rows = oh2*bs + b, ow2 = 0
        y2b = jnp.maximum(acc1 + b2_ref[...], 0.0)   # rows = oh2*bs + b, ow2 = 1

        # ---- 2x2 max-pool over the 2x2 conv2 map; GAP(1x1) is the identity ---
        feat = jnp.maximum(jnp.maximum(y2a[0:bs], y2a[bs:2 * bs]),
                           jnp.maximum(y2b[0:bs], y2b[bs:2 * bs]))   # (bs, 128)

        # ---- fc1 --------------------------------------------------------------
        o_ref[...] = (jnp.dot(feat.astype(jnp.bfloat16), wfc_ref[...],
                              preferred_element_type=jnp.float32) + bfc_ref[...])

    return kernel, rp


# ---------------------------------------------------------------------------
# Host-side layout glue: conv1 "row-window" im2col (one row per pooled row)
# ---------------------------------------------------------------------------
def _build_a1(x_nhwc, rp):
    """(4*rp, 1024) bf16 with
       A1[(dy*2+dx)*rp + ohp*bs + b, (kh*30 + j)*3 + ci]
         = x[b, 2*ohp + dy + kh, dx + j, ci];  pad rows/cols are zero."""
    bs = x_nhwc.shape[0]
    xb = x_nhwc.astype(jnp.bfloat16)
    blocks = []
    for dy in range(2):
        for dx in range(2):
            xo = xb[:, dy:dy + _WIN, dx:dx + _WIN, :]              # (bs,30,30,3)
            win = jnp.stack([xo[:, 2 * op:2 * op + _K] for op in range(_HP1)],
                            axis=1)                                # (bs,11,10,30,3)
            blk = win.transpose(1, 0, 2, 3, 4).reshape(_HP1 * bs, _KROW)
            blocks.append(jnp.pad(blk, ((0, rp - _HP1 * bs), (0, _KPAD - _KROW))))
    return jnp.concatenate(blocks, axis=0)                         # (4*rp, 1024)


@jax.jit
def cnn_forward(x_nchw, packed):
    bs, c, h, w = x_nchw.shape
    assert (c, h, w) == (_CIN, _HIN, _HIN), "kernel is specialized to 3x32x32 inputs"
    kernel, rp = _make_kernel(bs)

    x = jnp.transpose(x_nchw, (0, 2, 3, 1))                        # NCHW -> NHWC
    a1 = _build_a1(x, rp)                                          # (4*rp, 1024) bf16

    macs = (4 * rp) * _KPAD * _N1 \
        + _K * 2 * (2 * bs) * (_K * _C1) * _C2 \
        + bs * _C2 * _NCLS
    operands = (a1, packed["w1r"], packed["b1r"], packed["w2r"],
                packed["b2r"], packed["wfc"], packed["bfc"])
    bytes_accessed = sum(int(o.size) * o.dtype.itemsize for o in operands) \
        + bs * _NCLS * 4

    return pl.pallas_call(
        kernel,
        out_shape=jax.ShapeDtypeStruct((bs, _NCLS), jnp.float32),
        grid=(1,),
        in_specs=[
            pl.BlockSpec((4 * rp, _KPAD), lambda i: (0, 0)),       # a1
            pl.BlockSpec((_KPAD, _N1), lambda i: (0, 0)),          # w1r
            pl.BlockSpec((1, _N1), lambda i: (0, 0)),              # b1r
            pl.BlockSpec((_K, _K * _C1, _C2), lambda i: (0, 0, 0)),  # w2r
            pl.BlockSpec((1, _C2), lambda i: (0, 0)),              # b2r
            pl.BlockSpec((_C2, _NCLS), lambda i: (0, 0)),          # wfc
            pl.BlockSpec((1, _NCLS), lambda i: (0, 0)),            # bfc
        ],
        out_specs=pl.BlockSpec((bs, _NCLS), lambda i: (0, 0)),
        cost_estimate=pl.CostEstimate(flops=2 * macs, transcendentals=0,
                                      bytes_accessed=int(bytes_accessed)),
    )(*operands)


# ---------------------------------------------------------------------------
# Weights: raw (math layout) + one-time packing into the kernel's layouts
# ---------------------------------------------------------------------------
def init_raw_params(key):
    """Random weights in math-friendly layouts.  Real PyTorch weights map as:
       w1  = conv1.weight.permute(2, 3, 1, 0)   # (kh, kw, cin, cout)
       w2  = conv2.weight.permute(2, 3, 1, 0)
       wfc = fc1.weight.T                        # (in, out)
    """
    k1, k2, k3, k4, k5, k6 = jax.random.split(key, 6)
    return {
        "w1": 0.05 * jax.random.normal(k1, (_K, _K, _CIN, _C1), jnp.float32),
        "b1": 0.05 * jax.random.normal(k2, (_C1,), jnp.float32),
        "w2": 0.02 * jax.random.normal(k3, (_K, _K, _C1, _C2), jnp.float32),
        "b2": 0.02 * jax.random.normal(k4, (_C2,), jnp.float32),
        "wfc": 0.1 * jax.random.normal(k5, (_C2, _NCLS), jnp.float32),
        "bfc": 0.1 * jax.random.normal(k6, (_NCLS,), jnp.float32),
    }


def pack_params(raw):
    """One-time host-side repacking of the weights into kernel operand layouts."""
    # conv1 shift-replicated "row-window" weight:
    #   w1r[(kh*30 + j)*3 + ci, owp*32 + co] = w1[kh, j - 2*owp, ci, co]
    #   when 0 <= j - 2*owp < 10, else 0; rows 900..1023 are zero padding.
    w1r = jnp.zeros((_K, _WIN, _CIN, _HP1, _C1), jnp.float32)
    for owp in range(_HP1):
        w1r = w1r.at[:, 2 * owp:2 * owp + _K, :, owp, :].set(raw["w1"])
    w1r = jnp.pad(w1r.reshape(_KROW, _N1), ((0, _KPAD - _KROW), (0, 0)))
    return {
        "w1r": w1r.astype(jnp.bfloat16),                               # (1024, 352)
        "b1r": jnp.tile(raw["b1"].reshape(1, _C1), (1, _HP1)),         # (1, 352)
        "w2r": raw["w2"].reshape(_K, _K * _C1, _C2).astype(jnp.bfloat16),  # (10,320,128)
        "b2r": raw["b2"].reshape(1, _C2),                              # (1, 128)
        "wfc": raw["wfc"].astype(jnp.bfloat16),                        # (128, 2)
        "bfc": raw["bfc"].reshape(1, _NCLS),                           # (1, 2)
    }


# ---------------------------------------------------------------------------
# Pure-JAX reference (same bf16 operand rounding as the kernel)
# ---------------------------------------------------------------------------
def reference_forward(x_nchw, raw):
    f32 = jnp.float32
    dn = ("NHWC", "HWIO", "NHWC")
    x = jnp.transpose(x_nchw, (0, 2, 3, 1)).astype(jnp.bfloat16).astype(f32)
    w1 = raw["w1"].astype(jnp.bfloat16).astype(f32)
    w2 = raw["w2"].astype(jnp.bfloat16).astype(f32)
    wfc = raw["wfc"].astype(jnp.bfloat16).astype(f32)

    y = lax.conv_general_dilated(x, w1, (1, 1), "VALID", dimension_numbers=dn,
                                 precision=lax.Precision.HIGHEST)
    y = jnp.maximum(y + raw["b1"], 0.0)
    y = lax.reduce_window(y, -jnp.inf, lax.max, (1, 2, 2, 1), (1, 2, 2, 1), "VALID")
    y = y.astype(jnp.bfloat16).astype(f32)
    y = lax.conv_general_dilated(y, w2, (1, 1), "VALID", dimension_numbers=dn,
                                 precision=lax.Precision.HIGHEST)
    y = jnp.maximum(y + raw["b2"], 0.0)
    y = lax.reduce_window(y, -jnp.inf, lax.max, (1, 2, 2, 1), (1, 2, 2, 1), "VALID")
    feat = jnp.mean(y, axis=(1, 2)).astype(jnp.bfloat16).astype(f32)   # (bs, 128)
    return jnp.dot(feat, wfc, precision=lax.Precision.HIGHEST) + raw["bfc"]


if __name__ == "__main__":
    key = jax.random.PRNGKey(0)
    kx, kp = jax.random.split(key)
    # 32x32 input: conv1(k=10) -> 23, pool -> 11, conv2(k=10) -> 2, pool -> 1.
    x = jax.random.normal(kx, (2, _CIN, _HIN, _HIN), jnp.float32)
    raw = init_raw_params(kp)
    packed = pack_params(raw)

    out = jax.block_until_ready(cnn_forward(x, packed))
    assert out.shape == (2, _NCLS) and out.dtype == jnp.float32

    ref = jax.block_until_ready(reference_forward(x, raw))
    assert jnp.allclose(out, ref, rtol=5e-2, atol=5e-2), (out, ref)
    print("KERNEL_OK")
</pallas_src>

<mosaic_0001>
module attributes {stable_mosaic.version = 11 : i64} {
  func.func @kernel(%arg0: i32, %arg1: memref<96x1024xbf16, #tpu.memory_space<vmem>>, %arg2: memref<1024x352xbf16, #tpu.memory_space<vmem>>, %arg3: memref<1x352xf32, #tpu.memory_space<vmem>>, %arg4: memref<10x320x128xbf16, #tpu.memory_space<vmem>>, %arg5: memref<1x128xf32, #tpu.memory_space<vmem>>, %arg6: memref<128x2xbf16, #tpu.memory_space<vmem>>, %arg7: memref<1x2xf32, #tpu.memory_space<vmem>>, %arg8: memref<2x2xf32, #tpu.memory_space<vmem>>) attributes {dimension_semantics = [#tpu.dimension_semantics<arbitrary>], iteration_bounds = array<i64: 1>, scalar_prefetch = 0 : i64, scratch_operands = 0 : i64, tpu.core_type = #tpu.core_type<tc>, window_params = [{pipeline_mode = #tpu.pipeline_mode<synchronous>, transform_indices = @transform_0, window_bounds = array<i64: 96, 1024>}, {pipeline_mode = #tpu.pipeline_mode<synchronous>, transform_indices = @transform_1, window_bounds = array<i64: 1024, 352>}, {pipeline_mode = #tpu.pipeline_mode<synchronous>, transform_indices = @transform_2, window_bounds = array<i64: 1, 352>}, {pipeline_mode = #tpu.pipeline_mode<synchronous>, transform_indices = @transform_3, window_bounds = array<i64: 10, 320, 128>}, {pipeline_mode = #tpu.pipeline_mode<synchronous>, transform_indices = @transform_4, window_bounds = array<i64: 1, 128>}, {pipeline_mode = #tpu.pipeline_mode<synchronous>, transform_indices = @transform_5, window_bounds = array<i64: 128, 2>}, {pipeline_mode = #tpu.pipeline_mode<synchronous>, transform_indices = @transform_6, window_bounds = array<i64: 1, 2>}, {pipeline_mode = #tpu.pipeline_mode<synchronous>, transform_indices = @transform_7, window_bounds = array<i64: 2, 2>}]} {
    %c0 = arith.constant 0 : index
    %c0_0 = arith.constant 0 : index
    %0 = vector.load %arg1[%c0, %c0_0] : memref<96x1024xbf16, #tpu.memory_space<vmem>>, vector<96x1024xbf16>
    %c0_1 = arith.constant 0 : index
    %c0_2 = arith.constant 0 : index
    %1 = vector.load %arg2[%c0_1, %c0_2] : memref<1024x352xbf16, #tpu.memory_space<vmem>>, vector<1024x352xbf16>
    %cst = arith.constant dense<0.000000e+00> : vector<96x352xf32>
    %2 = tpu.matmul %0, %1, %cst {dimension_numbers = #tpu.dot_dimension_numbers<[1], [0], [0], [1], [0, 0, 1, 1], [], []>} : vector<96x1024xbf16>, vector<1024x352xbf16>, vector<96x352xf32> -> vector<96x352xf32>
    %c0_3 = arith.constant 0 : index
    %c0_4 = arith.constant 0 : index
    %3 = vector.load %arg3[%c0_3, %c0_4] : memref<1x352xf32, #tpu.memory_space<vmem>>, vector<1x352xf32>
    %4 = vector.broadcast %3 : vector<1x352xf32> to vector<96x352xf32>
    %5 = arith.addf %2, %4 : vector<96x352xf32>
    %cst_5 = arith.constant 0.000000e+00 : f32
    %6 = vector.broadcast %cst_5 : f32 to vector<96x352xf32>
    %7 = arith.maximumf %5, %6 : vector<96x352xf32>
    %8 = vector.extract_strided_slice %7 {offsets = [0, 0], sizes = [22, 352], strides = [1, 1]} : vector<96x352xf32> to vector<22x352xf32>
    %9 = vector.extract_strided_slice %7 {offsets = [24, 0], sizes = [22, 352], strides = [1, 1]} : vector<96x352xf32> to vector<22x352xf32>
    %10 = arith.maximumf %8, %9 : vector<22x352xf32>
    %11 = vector.extract_strided_slice %7 {offsets = [48, 0], sizes = [22, 352], strides = [1, 1]} : vector<96x352xf32> to vector<22x352xf32>
    %12 = vector.extract_strided_slice %7 {offsets = [72, 0], sizes = [22, 352], strides = [1, 1]} : vector<96x352xf32> to vector<22x352xf32>
    %13 = arith.maximumf %11, %12 : vector<22x352xf32>
    %14 = arith.maximumf %10, %13 : vector<22x352xf32>
    %15 = arith.truncf %14 : vector<22x352xf32> to vector<22x352xbf16>
    %16 = vector.extract_strided_slice %15 {offsets = [0, 0], sizes = [22, 320], strides = [1, 1]} : vector<22x352xbf16> to vector<22x320xbf16>
    %17 = vector.extract_strided_slice %15 {offsets = [0, 32], sizes = [22, 320], strides = [1, 1]} : vector<22x352xbf16> to vector<22x320xbf16>
    %cst_6 = arith.constant 0.000000e+00 : f32
    %18 = vector.broadcast %cst_6 : f32 to vector<4x128xf32>
    %cst_7 = arith.constant 0.000000e+00 : f32
    %19 = vector.broadcast %cst_7 : f32 to vector<4x128xf32>
    %c0_8 = arith.constant 0 : index
    %c0_9 = arith.constant 0 : index
    %c0_10 = arith.constant 0 : index
    %20 = vector.load %arg4[%c0_8, %c0_9, %c0_10] : memref<10x320x128xbf16, #tpu.memory_space<vmem>>, vector<1x320x128xbf16>
    %21 = vector.shape_cast %20 : vector<1x320x128xbf16> to vector<320x128xbf16>
    %22 = vector.extract_strided_slice %16 {offsets = [0, 0], sizes = [4, 320], strides = [1, 1]} : vector<22x320xbf16> to vector<4x320xbf16>
    %cst_11 = arith.constant dense<0.000000e+00> : vector<4x128xf32>
    %23 = tpu.matmul %22, %21, %cst_11 {dimension_numbers = #tpu.dot_dimension_numbers<[1], [0], [0], [1], [0, 0, 1, 1], [], []>} : vector<4x320xbf16>, vector<320x128xbf16>, vector<4x128xf32> -> vector<4x128xf32>
    %24 = arith.addf %18, %23 : vector<4x128xf32>
    %25 = vector.extract_strided_slice %17 {offsets = [0, 0], sizes = [4, 320], strides = [1, 1]} : vector<22x320xbf16> to vector<4x320xbf16>
    %cst_12 = arith.constant dense<0.000000e+00> : vector<4x128xf32>
    %26 = tpu.matmul %25, %21, %cst_12 {dimension_numbers = #tpu.dot_dimension_numbers<[1], [0], [0], [1], [0, 0, 1, 1], [], []>} : vector<4x320xbf16>, vector<320x128xbf16>, vector<4x128xf32> -> vector<4x128xf32>
    %27 = arith.addf %19, %26 : vector<4x128xf32>
    %c1 = arith.constant 1 : index
    %c0_13 = arith.constant 0 : index
    %c0_14 = arith.constant 0 : index
    %28 = vector.load %arg4[%c1, %c0_13, %c0_14] : memref<10x320x128xbf16, #tpu.memory_space<vmem>>, vector<1x320x128xbf16>
    %29 = vector.shape_cast %28 : vector<1x320x128xbf16> to vector<320x128xbf16>
    %30 = vector.extract_strided_slice %16 {offsets = [2, 0], sizes = [4, 320], strides = [1, 1]} : vector<22x320xbf16> to vector<4x320xbf16>
    %cst_15 = arith.constant dense<0.000000e+00> : vector<4x128xf32>
    %31 = tpu.matmul %30, %29, %cst_15 {dimension_numbers = #tpu.dot_dimension_numbers<[1], [0], [0], [1], [0, 0, 1, 1], [], []>} : vector<4x320xbf16>, vector<320x128xbf16>, vector<4x128xf32> -> vector<4x128xf32>
    %32 = arith.addf %24, %31 : vector<4x128xf32>
    %33 = vector.extract_strided_slice %17 {offsets = [2, 0], sizes = [4, 320], strides = [1, 1]} : vector<22x320xbf16> to vector<4x320xbf16>
    %cst_16 = arith.constant dense<0.000000e+00> : vector<4x128xf32>
    %34 = tpu.matmul %33, %29, %cst_16 {dimension_numbers = #tpu.dot_dimension_numbers<[1], [0], [0], [1], [0, 0, 1, 1], [], []>} : vector<4x320xbf16>, vector<320x128xbf16>, vector<4x128xf32> -> vector<4x128xf32>
    %35 = arith.addf %27, %34 : vector<4x128xf32>
    %c2 = arith.constant 2 : index
    %c0_17 = arith.constant 0 : index
    %c0_18 = arith.constant 0 : index
    %36 = vector.load %arg4[%c2, %c0_17, %c0_18] : memref<10x320x128xbf16, #tpu.memory_space<vmem>>, vector<1x320x128xbf16>
    %37 = vector.shape_cast %36 : vector<1x320x128xbf16> to vector<320x128xbf16>
    %38 = vector.extract_strided_slice %16 {offsets = [4, 0], sizes = [4, 320], strides = [1, 1]} : vector<22x320xbf16> to vector<4x320xbf16>
    %cst_19 = arith.constant dense<0.000000e+00> : vector<4x128xf32>
    %39 = tpu.matmul %38, %37, %cst_19 {dimension_numbers = #tpu.dot_dimension_numbers<[1], [0], [0], [1], [0, 0, 1, 1], [], []>} : vector<4x320xbf16>, vector<320x128xbf16>, vector<4x128xf32> -> vector<4x128xf32>
    %40 = arith.addf %32, %39 : vector<4x128xf32>
    %41 = vector.extract_strided_slice %17 {offsets = [4, 0], sizes = [4, 320], strides = [1, 1]} : vector<22x320xbf16> to vector<4x320xbf16>
    %cst_20 = arith.constant dense<0.000000e+00> : vector<4x128xf32>
    %42 = tpu.matmul %41, %37, %cst_20 {dimension_numbers = #tpu.dot_dimension_numbers<[1], [0], [0], [1], [0, 0, 1, 1], [], []>} : vector<4x320xbf16>, vector<320x128xbf16>, vector<4x128xf32> -> vector<4x128xf32>
    %43 = arith.addf %35, %42 : vector<4x128xf32>
    %c3 = arith.constant 3 : index
    %c0_21 = arith.constant 0 : index
    %c0_22 = arith.constant 0 : index
    %44 = vector.load %arg4[%c3, %c0_21, %c0_22] : memref<10x320x128xbf16, #tpu.memory_space<vmem>>, vector<1x320x128xbf16>
    %45 = vector.shape_cast %44 : vector<1x320x128xbf16> to vector<320x128xbf16>
    %46 = vector.extract_strided_slice %16 {offsets = [6, 0], sizes = [4, 320], strides = [1, 1]} : vector<22x320xbf16> to vector<4x320xbf16>
    %cst_23 = arith.constant dense<0.000000e+00> : vector<4x128xf32>
    %47 = tpu.matmul %46, %45, %cst_23 {dimension_numbers = #tpu.dot_dimension_numbers<[1], [0], [0], [1], [0, 0, 1, 1], [], []>} : vector<4x320xbf16>, vector<320x128xbf16>, vector<4x128xf32> -> vector<4x128xf32>
    %48 = arith.addf %40, %47 : vector<4x128xf32>
    %49 = vector.extract_strided_slice %17 {offsets = [6, 0], sizes = [4, 320], strides = [1, 1]} : vector<22x320xbf16> to vector<4x320xbf16>
    %cst_24 = arith.constant dense<0.000000e+00> : vector<4x128xf32>
    %50 = tpu.matmul %49, %45, %cst_24 {dimension_numbers = #tpu.dot_dimension_numbers<[1], [0], [0], [1], [0, 0, 1, 1], [], []>} : vector<4x320xbf16>, vector<320x128xbf16>, vector<4x128xf32> -> vector<4x128xf32>
    %51 = arith.addf %43, %50 : vector<4x128xf32>
    %c4 = arith.constant 4 : index
    %c0_25 = arith.constant 0 : index
    %c0_26 = arith.constant 0 : index
    %52 = vector.load %arg4[%c4, %c0_25, %c0_26] : memref<10x320x128xbf16, #tpu.memory_space<vmem>>, vector<1x320x128xbf16>
    %53 = vector.shape_cast %52 : vector<1x320x128xbf16> to vector<320x128xbf16>
    %54 = vector.extract_strided_slice %16 {offsets = [8, 0], sizes = [4, 320], strides = [1, 1]} : vector<22x320xbf16> to vector<4x320xbf16>
    %cst_27 = arith.constant dense<0.000000e+00> : vector<4x128xf32>
    %55 = tpu.matmul %54, %53, %cst_27 {dimension_numbers = #tpu.dot_dimension_numbers<[1], [0], [0], [1], [0, 0, 1, 1], [], []>} : vector<4x320xbf16>, vector<320x128xbf16>, vector<4x128xf32> -> vector<4x128xf32>
    %56 = arith.addf %48, %55 : vector<4x128xf32>
    %57 = vector.extract_strided_slice %17 {offsets = [8, 0], sizes = [4, 320], strides = [1, 1]} : vector<22x320xbf16> to vector<4x320xbf16>
    %cst_28 = arith.constant dense<0.000000e+00> : vector<4x128xf32>
    %58 = tpu.matmul %57, %53, %cst_28 {dimension_numbers = #tpu.dot_dimension_numbers<[1], [0], [0], [1], [0, 0, 1, 1], [], []>} : vector<4x320xbf16>, vector<320x128xbf16>, vector<4x128xf32> -> vector<4x128xf32>
    %59 = arith.addf %51, %58 : vector<4x128xf32>
    %c5 = arith.constant 5 : index
    %c0_29 = arith.constant 0 : index
    %c0_30 = arith.constant 0 : index
    %60 = vector.load %arg4[%c5, %c0_29, %c0_30] : memref<10x320x128xbf16, #tpu.memory_space<vmem>>, vector<1x320x128xbf16>
    %61 = vector.shape_cast %60 : vector<1x320x128xbf16> to vector<320x128xbf16>
    %62 = vector.extract_strided_slice %16 {offsets = [10, 0], sizes = [4, 320], strides = [1, 1]} : vector<22x320xbf16> to vector<4x320xbf16>
    %cst_31 = arith.constant dense<0.000000e+00> : vector<4x128xf32>
    %63 = tpu.matmul %62, %61, %cst_31 {dimension_numbers = #tpu.dot_dimension_numbers<[1], [0], [0], [1], [0, 0, 1, 1], [], []>} : vector<4x320xbf16>, vector<320x128xbf16>, vector<4x128xf32> -> vector<4x128xf32>
    %64 = arith.addf %56, %63 : vector<4x128xf32>
    %65 = vector.extract_strided_slice %17 {offsets = [10, 0], sizes = [4, 320], strides = [1, 1]} : vector<22x320xbf16> to vector<4x320xbf16>
    %cst_32 = arith.constant dense<0.000000e+00> : vector<4x128xf32>
    %66 = tpu.matmul %65, %61, %cst_32 {dimension_numbers = #tpu.dot_dimension_numbers<[1], [0], [0], [1], [0, 0, 1, 1], [], []>} : vector<4x320xbf16>, vector<320x128xbf16>, vector<4x128xf32> -> vector<4x128xf32>
    %67 = arith.addf %59, %66 : vector<4x128xf32>
    %c6 = arith.constant 6 : index
    %c0_33 = arith.constant 0 : index
    %c0_34 = arith.constant 0 : index
    %68 = vector.load %arg4[%c6, %c0_33, %c0_34] : memref<10x320x128xbf16, #tpu.memory_space<vmem>>, vector<1x320x128xbf16>
    %69 = vector.shape_cast %68 : vector<1x320x128xbf16> to vector<320x128xbf16>
    %70 = vector.extract_strided_slice %16 {offsets = [12, 0], sizes = [4, 320], strides = [1, 1]} : vector<22x320xbf16> to vector<4x320xbf16>
    %cst_35 = arith.constant dense<0.000000e+00> : vector<4x128xf32>
    %71 = tpu.matmul %70, %69, %cst_35 {dimension_numbers = #tpu.dot_dimension_numbers<[1], [0], [0], [1], [0, 0, 1, 1], [], []>} : vector<4x320xbf16>, vector<320x128xbf16>, vector<4x128xf32> -> vector<4x128xf32>
    %72 = arith.addf %64, %71 : vector<4x128xf32>
    %73 = vector.extract_strided_slice %17 {offsets = [12, 0], sizes = [4, 320], strides = [1, 1]} : vector<22x320xbf16> to vector<4x320xbf16>
    %cst_36 = arith.constant dense<0.000000e+00> : vector<4x128xf32>
    %74 = tpu.matmul %73, %69, %cst_36 {dimension_numbers = #tpu.dot_dimension_numbers<[1], [0], [0], [1], [0, 0, 1, 1], [], []>} : vector<4x320xbf16>, vector<320x128xbf16>, vector<4x128xf32> -> vector<4x128xf32>
    %75 = arith.addf %67, %74 : vector<4x128xf32>
    %c7 = arith.constant 7 : index
    %c0_37 = arith.constant 0 : index
    %c0_38 = arith.constant 0 : index
    %76 = vector.load %arg4[%c7, %c0_37, %c0_38] : memref<10x320x128xbf16, #tpu.memory_space<vmem>>, vector<1x320x128xbf16>
    %77 = vector.shape_cast %76 : vector<1x320x128xbf16> to vector<320x128xbf16>
    %78 = vector.extract_strided_slice %16 {offsets = [14, 0], sizes = [4, 320], strides = [1, 1]} : vector<22x320xbf16> to vector<4x320xbf16>
    %cst_39 = arith.constant dense<0.000000e+00> : vector<4x128xf32>
    %79 = tpu.matmul %78, %77, %cst_39 {dimension_numbers = #tpu.dot_dimension_numbers<[1], [0], [0], [1], [0, 0, 1, 1], [], []>} : vector<4x320xbf16>, vector<320x128xbf16>, vector<4x128xf32> -> vector<4x128xf32>
    %80 = arith.addf %72, %79 : vector<4x128xf32>
    %81 = vector.extract_strided_slice %17 {offsets = [14, 0], sizes = [4, 320], strides = [1, 1]} : vector<22x320xbf16> to vector<4x320xbf16>
    %cst_40 = arith.constant dense<0.000000e+00> : vector<4x128xf32>
    %82 = tpu.matmul %81, %77, %cst_40 {dimension_numbers = #tpu.dot_dimension_numbers<[1], [0], [0], [1], [0, 0, 1, 1], [], []>} : vector<4x320xbf16>, vector<320x128xbf16>, vector<4x128xf32> -> vector<4x128xf32>
    %83 = arith.addf %75, %82 : vector<4x128xf32>
    %c8 = arith.constant 8 : index
    %c0_41 = arith.constant 0 : index
    %c0_42 = arith.constant 0 : index
    %84 = vector.load %arg4[%c8, %c0_41, %c0_42] : memref<10x320x128xbf16, #tpu.memory_space<vmem>>, vector<1x320x128xbf16>
    %85 = vector.shape_cast %84 : vector<1x320x128xbf16> to vector<320x128xbf16>
    %86 = vector.extract_strided_slice %16 {offsets = [16, 0], sizes = [4, 320], strides = [1, 1]} : vector<22x320xbf16> to vector<4x320xbf16>
    %cst_43 = arith.constant dense<0.000000e+00> : vector<4x128xf32>
    %87 = tpu.matmul %86, %85, %cst_43 {dimension_numbers = #tpu.dot_dimension_numbers<[1], [0], [0], [1], [0, 0, 1, 1], [], []>} : vector<4x320xbf16>, vector<320x128xbf16>, vector<4x128xf32> -> vector<4x128xf32>
    %88 = arith.addf %80, %87 : vector<4x128xf32>
    %89 = vector.extract_strided_slice %17 {offsets = [16, 0], sizes = [4, 320], strides = [1, 1]} : vector<22x320xbf16> to vector<4x320xbf16>
    %cst_44 = arith.constant dense<0.000000e+00> : vector<4x128xf32>
    %90 = tpu.matmul %89, %85, %cst_44 {dimension_numbers = #tpu.dot_dimension_numbers<[1], [0], [0], [1], [0, 0, 1, 1], [], []>} : vector<4x320xbf16>, vector<320x128xbf16>, vector<4x128xf32> -> vector<4x128xf32>
    %91 = arith.addf %83, %90 : vector<4x128xf32>
    %c9 = arith.constant 9 : index
    %c0_45 = arith.constant 0 : index
    %c0_46 = arith.constant 0 : index
    %92 = vector.load %arg4[%c9, %c0_45, %c0_46] : memref<10x320x128xbf16, #tpu.memory_space<vmem>>, vector<1x320x128xbf16>
    %93 = vector.shape_cast %92 : vector<1x320x128xbf16> to vector<320x128xbf16>
    %94 = vector.extract_strided_slice %16 {offsets = [18, 0], sizes = [4, 320], strides = [1, 1]} : vector<22x320xbf16> to vector<4x320xbf16>
    %cst_47 = arith.constant dense<0.000000e+00> : vector<4x128xf32>
    %95 = tpu.matmul %94, %93, %cst_47 {dimension_numbers = #tpu.dot_dimension_numbers<[1], [0], [0], [1], [0, 0, 1, 1], [], []>} : vector<4x320xbf16>, vector<320x128xbf16>, vector<4x128xf32> -> vector<4x128xf32>
    %96 = arith.addf %88, %95 : vector<4x128xf32>
    %97 = vector.extract_strided_slice %17 {offsets = [18, 0], sizes = [4, 320], strides = [1, 1]} : vector<22x320xbf16> to vector<4x320xbf16>
    %cst_48 = arith.constant dense<0.000000e+00> : vector<4x128xf32>
    %98 = tpu.matmul %97, %93, %cst_48 {dimension_numbers = #tpu.dot_dimension_numbers<[1], [0], [0], [1], [0, 0, 1, 1], [], []>} : vector<4x320xbf16>, vector<320x128xbf16>, vector<4x128xf32> -> vector<4x128xf32>
    %99 = arith.addf %91, %98 : vector<4x128xf32>
    %c0_49 = arith.constant 0 : index
    %c0_50 = arith.constant 0 : index
    %100 = vector.load %arg5[%c0_49, %c0_50] : memref<1x128xf32, #tpu.memory_space<vmem>>, vector<1x128xf32>
    %101 = vector.broadcast %100 : vector<1x128xf32> to vector<4x128xf32>
    %102 = arith.addf %96, %101 : vector<4x128xf32>
    %cst_51 = arith.constant 0.000000e+00 : f32
    %103 = vector.broadcast %cst_51 : f32 to vector<4x128xf32>
    %104 = arith.maximumf %102, %103 : vector<4x128xf32>
    %c0_52 = arith.constant 0 : index
    %c0_53 = arith.constant 0 : index
    %105 = vector.load %arg5[%c0_52, %c0_53] : memref<1x128xf32, #tpu.memory_space<vmem>>, vector<1x128xf32>
    %106 = vector.broadcast %105 : vector<1x128xf32> to vector<4x128xf32>
    %107 = arith.addf %99, %106 : vector<4x128xf32>
    %cst_54 = arith.constant 0.000000e+00 : f32
    %108 = vector.broadcast %cst_54 : f32 to vector<4x128xf32>
    %109 = arith.maximumf %107, %108 : vector<4x128xf32>
    %110 = vector.extract_strided_slice %104 {offsets = [0, 0], sizes = [2, 128], strides = [1, 1]} : vector<4x128xf32> to vector<2x128xf32>
    %111 = vector.extract_strided_slice %104 {offsets = [2, 0], sizes = [2, 128], strides = [1, 1]} : vector<4x128xf32> to vector<2x128xf32>
    %112 = arith.maximumf %110, %111 : vector<2x128xf32>
    %113 = vector.extract_strided_slice %109 {offsets = [0, 0], sizes = [2, 128], strides = [1, 1]} : vector<4x128xf32> to vector<2x128xf32>
    %114 = vector.extract_strided_slice %109 {offsets = [2, 0], sizes = [2, 128], strides = [1, 1]} : vector<4x128xf32> to vector<2x128xf32>
    %115 = arith.maximumf %113, %114 : vector<2x128xf32>
    %116 = arith.maximumf %112, %115 : vector<2x128xf32>
    %117 = arith.truncf %116 : vector<2x128xf32> to vector<2x128xbf16>
    %c0_55 = arith.constant 0 : index
    %c0_56 = arith.constant 0 : index
    %118 = vector.load %arg6[%c0_55, %c0_56] : memref<128x2xbf16, #tpu.memory_space<vmem>>, vector<128x2xbf16>
    %cst_57 = arith.constant dense<0.000000e+00> : vector<2x2xf32>
    %119 = tpu.matmul %117, %118, %cst_57 {dimension_numbers = #tpu.dot_dimension_numbers<[1], [0], [0], [1], [0, 0, 1, 1], [], []>} : vector<2x128xbf16>, vector<128x2xbf16>, vector<2x2xf32> -> vector<2x2xf32>
    %c0_58 = arith.constant 0 : index
    %c0_59 = arith.constant 0 : index
    %120 = vector.load %arg7[%c0_58, %c0_59] : memref<1x2xf32, #tpu.memory_space<vmem>>, vector<1x2xf32>
    %121 = vector.broadcast %120 : vector<1x2xf32> to vector<2x2xf32>
    %122 = arith.addf %119, %121 : vector<2x2xf32>
    %c0_60 = arith.constant 0 : index
    %c0_61 = arith.constant 0 : index
    %123 = vector.load %arg8[%c0_60, %c0_61] : memref<2x2xf32, #tpu.memory_space<vmem>>, vector<2x2xf32>
    tpu.vector_store %arg8[%c0_60, %c0_61], %122 {strides = array<i32>} : memref<2x2xf32, #tpu.memory_space<vmem>>, vector<2x2xf32>,
    return
  }
  func.func @transform_0(%arg0: i32) -> (i32, i32) {
    %c0_i32 = arith.constant 0 : i32
    %c0_i32_0 = arith.constant 0 : i32
    %c0_i32_1 = arith.constant 0 : i32
    return %c0_i32, %c0_i32_0 : i32, i32
  }
  func.func @transform_1(%arg0: i32) -> (i32, i32) {
    %c0_i32 = arith.constant 0 : i32
    %c0_i32_0 = arith.constant 0 : i32
    %c0_i32_1 = arith.constant 0 : i32
    return %c0_i32, %c0_i32_0 : i32, i32
  }
  func.func @transform_2(%arg0: i32) -> (i32, i32) {
    %c0_i32 = arith.constant 0 : i32
    %c0_i32_0 = arith.constant 0 : i32
    %c0_i32_1 = arith.constant 0 : i32
    return %c0_i32, %c0_i32_0 : i32, i32
  }
  func.func @transform_3(%arg0: i32) -> (i32, i32, i32) {
    %c0_i32 = arith.constant 0 : i32
    %c0_i32_0 = arith.constant 0 : i32
    %c0_i32_1 = arith.constant 0 : i32
    %c0_i32_2 = arith.constant 0 : i32
    return %c0_i32, %c0_i32_0, %c0_i32_1 : i32, i32, i32
  }
  func.func @transform_4(%arg0: i32) -> (i32, i32) {
    %c0_i32 = arith.constant 0 : i32
    %c0_i32_0 = arith.constant 0 : i32
    %c0_i32_1 = arith.constant 0 : i32
    return %c0_i32, %c0_i32_0 : i32, i32
  }
  func.func @transform_5(%arg0: i32) -> (i32, i32) {
    %c0_i32 = arith.constant 0 : i32
    %c0_i32_0 = arith.constant 0 : i32
    %c0_i32_1 = arith.constant 0 : i32
    return %c0_i32, %c0_i32_0 : i32, i32
  }
  func.func @transform_6(%arg0: i32) -> (i32, i32) {
    %c0_i32 = arith.constant 0 : i32
    %c0_i32_0 = arith.constant 0 : i32
    %c0_i32_1 = arith.constant 0 : i32
    return %c0_i32, %c0_i32_0 : i32, i32
  }
  func.func @transform_7(%arg0: i32) -> (i32, i32) {
    %c0_i32 = arith.constant 0 : i32
    %c0_i32_0 = arith.constant 0 : i32
    %c0_i32_1 = arith.constant 0 : i32
    return %c0_i32, %c0_i32_0 : i32, i32
  }
}

</mosaic_0001>

<bundles_post_ra>
// kernel: cnn_forward.1
= control target key start
LH: loop header
LB: loop body
LE: loop exit
PB: predicated region body
PF: predicated region fallthrough
CT: control target
= control target key end

     0   :  { %s11049_s0 = inlined_call_operand.vmem [shape: bf16[96,1024], index: 0, kind: input, shape index: {}]   ;;  %s11050_s1 = inlined_call_operand.vmem [shape: bf16[1024,352], index: 1, kind: input, shape index: {}]   ;;  %s11051_s2 = inlined_call_operand.vmem [shape: f32[1,352], index: 2, kind: input, shape index: {}]   ;;  %s11052_s3 = inlined_call_operand.vmem [shape: bf16[10,320,128], index: 3, kind: input, shape index: {}]   ;;  %s11053_s4 = inlined_call_operand.vmem [shape: f32[1,128], index: 4, kind: input, shape index: {}]   ;;  %s11054_s5 = inlined_call_operand.vmem [shape: bf16[128,2], index: 5, kind: input, shape index: {}]   ;;  %s11055_s6 = inlined_call_operand.vmem [shape: f32[1,2], index: 6, kind: input, shape index: {}]   ;;  %s11056_s7 = inlined_call_operand.hbm [shape: f32[2,2], index: 7, kind: output, shape index: {}]  }
   0x1   :  { %v7913_v0 = vld [vmem:[%s11050_s1 + $0x4] ss:$12 sps:$4 sm:$0xff]   ;;  %v7915_v1 = vld [vmem:[%s11050_s1 + $0xc8] ss:$12 sps:$4 sm:$0xff]   ;;  %v7916_v2 = vld [vmem:[%s11050_s1] ss:$12 sps:$4 sm:$0xff]  }
   0x2   :  { %1613 = vmatprep.subr.bf16.mxu0 %v7913_v0  ;;  %6796 = vmatprep.subr.bf16.mxu1 %v7915_v1  ;;  %v7917_v3 = vld [vmem:[%s11050_s1 + $0x8] ss:$12 sps:$4 sm:$0xff]   ;;  %v7920_v5 = vld [vmem:[%s11050_s1 + $0xe0] ss:$12 sps:$4 sm:$0xff]   ;;  %v7921_v6 = vld [vmem:[%s11050_s1 + $0x18] ss:$12 sps:$4 sm:$0xff]  }
   0x3   :  { %1614 = vmatpush1.bf16.msra.mxu0 %v7916_v2  ;;  %v7918_v4 = vld [vmem:[%s11050_s1 + $0x1c] ss:$12 sps:$4 sm:$0xff]   ;;  %6797 = vmatpush3.bf16.msra.mxu1 %v7917_v3  ;;  %v7922_v7 = vld [vmem:[%s11050_s1 + $0x20] ss:$12 sps:$4 sm:$0xff]   ;;  %v7925_v9 = vld [vmem:[%s11050_s1 + $0xf8] ss:$12 sps:$4 sm:$0xff]  }
   0x4   :  { %1615 = vmatprep.subr.bf16.mxu0 %v7918_v4  ;;  %6798 = vmatprep.subr.bf16.mxu1 %v7920_v5  ;;  %v7923_v8 = vld [vmem:[%s11050_s1 + $0x34] ss:$12 sps:$4 sm:$0xff]   ;;  %v7926_v10 = vld [vmem:[%s11050_s1 + $0x30] ss:$12 sps:$4 sm:$0xff]   ;;  %v7927_v11 = vld [vmem:[%s11050_s1 + $0x38] ss:$12 sps:$4 sm:$0xff]  }
   0x5   :  { %v7928_v12 = vld [vmem:[%s11050_s1 + $0x4c] ss:$12 sps:$4 sm:$0xff]   ;;  %v7930_v13 = vld [vmem:[%s11050_s1 + $0x110] ss:$12 sps:$4 sm:$0xff]   ;;  %v7931_v14 = vld [vmem:[%s11050_s1 + $0x48] ss:$12 sps:$4 sm:$0xff]  }
   0x6   :  { %v7932_v15 = vld [vmem:[%s11050_s1 + $0x50] ss:$12 sps:$4 sm:$0xff]   ;;  %v7935_v17 = vld [vmem:[%s11050_s1 + $0x128] ss:$12 sps:$4 sm:$0xff]   ;;  %v7936_v18 = vld [vmem:[%s11050_s1 + $0x60] ss:$12 sps:$4 sm:$0xff]  }
   0x7   :  { %1616 = vmatpush1.bf16.msra.mxu0 %v7921_v6  ;;  %6799 = vmatpush3.bf16.msra.mxu1 %v7922_v7  ;;  %v7933_v16 = vld [vmem:[%s11050_s1 + $0x64] ss:$12 sps:$4 sm:$0xff]   ;;  %v7937_v19 = vld [vmem:[%s11050_s1 + $0x68] ss:$12 sps:$4 sm:$0xff]   ;;  %v7940_v21 = vld [vmem:[%s11050_s1 + $0x140] ss:$12 sps:$4 sm:$0xff]  }
   0x8   :  { %1617 = vmatprep.subr.bf16.mxu0 %v7923_v8  ;;  %6800 = vmatprep.subr.bf16.mxu1 %v7925_v9  ;;  %v7938_v20 = vld [vmem:[%s11050_s1 + $0x7c] ss:$12 sps:$4 sm:$0xff]   ;;  %v7941_v22 = vld [vmem:[%s11050_s1 + $0x78] ss:$12 sps:$4 sm:$0xff]   ;;  %v7942_v23 = vld [vmem:[%s11050_s1 + $0x80] ss:$12 sps:$4 sm:$0xff]  }
   0x9   :  { %v7943_v24 = vld [vmem:[%s11050_s1 + $0x94] ss:$12 sps:$4 sm:$0xff]   ;;  %v7945_v25 = vld [vmem:[%s11050_s1 + $0x158] ss:$12 sps:$4 sm:$0xff]   ;;  %v7946_v26 = vld [vmem:[%s11050_s1 + $0x90] ss:$12 sps:$4 sm:$0xff]  }
   0xa   :  { %v7947_v27 = vld [vmem:[%s11050_s1 + $0x98] ss:$12 sps:$4 sm:$0xff]   ;;  %v7950_v29 = vld [vmem:[%s11050_s1 + $0x170] ss:$12 sps:$4 sm:$0xff]   ;;  %v7951_v32 = vld [vmem:[%s11050_s1 + $0xa8] ss:$12 sps:$4 sm:$0xff]  }
   0xb   :  { %1618 = vmatpush1.bf16.msra.mxu0 %v7926_v10  ;;  %6801 = vmatpush3.bf16.msra.mxu1 %v7927_v11  ;;  %v7948_v28 = vld [vmem:[%s11050_s1 + $0xac] ss:$12 sps:$4 sm:$0xff]   ;;  %v28_v30 = vld [vmem:[%s11049_s0] sm:$0xff]  ;;  %v7952_v34 = vld [vmem:[%s11050_s1 + $0xb0] ss:$12 sps:$4 sm:$0xff]  }
   0xc   :  { %1619 = vmatprep.subr.bf16.mxu0 %v7928_v12  ;;  %6802 = vmatprep.subr.bf16.mxu1 %v7930_v13  ;;  %v32_v31 = vld [vmem:[%s11049_s0 + $0x20] sm:$0xff]  ;;  %v7956_v40 = vld [vmem:[%s11050_s1 + $0xdc] ss:$12 sps:$4 sm:$0xff]   ;;  %v7962_v52 = vld [vmem:[%s11050_s1 + $0x10c] ss:$12 sps:$4 sm:$0xff]  }
   0xd   :  { %v5967_v33 = vcombine.high %v28_v30, %v32_v31  ;;  %v7953_v35 = vld [vmem:[%s11050_s1 + $0xc4] ss:$12 sps:$4 sm:$0xff]   ;;  %v8556_v38 = vcombine.low %v28_v30, %v32_v31  ;;  %v7955_v39 = vld [vmem:[%s11050_s1 + $0xc0] ss:$12 sps:$4 sm:$0xff]   ;;  %v7967_v44 = vld [vmem:[%s11050_s1 + $0x248] ss:$12 sps:$4 sm:$0xff]  }
   0xe   :  { %v36_v36 = vld [vmem:[%s11049_s0 + $0x40] sm:$0xff]  ;;  %v7969_v46 = vld [vmem:[%s11050_s1 + $0x188] ss:$12 sps:$4 sm:$0xff]   ;;  %v7961_v50 = vld [vmem:[%s11050_s1 + $0xf0] ss:$12 sps:$4 sm:$0xff]  }
   0xf   :  { %1620 = vmatpush1.bf16.msra.mxu0 %v7931_v14  ;;  %6803 = vmatpush3.bf16.msra.mxu1 %v7932_v15  ;;  %v40_v37 = vld [vmem:[%s11049_s0 + $0x60] sm:$0xff]  ;;  %v7964_v54 = vld [vmem:[%s11050_s1 + $0x108] ss:$12 sps:$4 sm:$0xff]   ;;  %v7982_v60 = vld [vmem:[%s11050_s1 + $0x290] ss:$12 sps:$4 sm:$0xff]  }
  0x10   :  { %1621 = vmatprep.subr.bf16.mxu0 %v7933_v16  ;;  %6804 = vmatprep.subr.bf16.mxu1 %v7935_v17  ;;  %v8564_v41 = vcombine.high %v36_v36, %v40_v37  ;;  %v7958_v42 = vld [vmem:[%s11050_s1 + $0xd8] ss:$12 sps:$4 sm:$0xff]   ;;  %v7959_v43 = vld [vmem:[%s11050_s1 + $0xf4] ss:$12 sps:$4 sm:$0xff]   ;;  %v8589_v49 = vcombine.low %v36_v36, %v40_v37  ;;  %v7984_v61 = vld [vmem:[%s11050_s1 + $0x1d0] ss:$12 sps:$4 sm:$0xff]  }
  0x11   :  { %2017 = vmatprep.mubr.bf16.mxu1 %v5967_v33  ;;  %1645 = vmatprep.mubr.bf16.mxu0 %v5967_v33  ;;  %v44_v45 = vld [vmem:[%s11049_s0 + $0x80] sm:$0xff]  ;;  %v7970_v0 = vld [vmem:[%s11050_s1 + $0x13c] ss:$12 sps:$4 sm:$0xff]   ;;  %v7980_v12 = vld [vmem:[%s11050_s1 + $0x16c] ss:$12 sps:$4 sm:$0xff]  }
  0x12   :  { %v48_v47 = vld [vmem:[%s11049_s0 + $0xa0] sm:$0xff]  ;;  %v7988_v3 = vld [vmem:[%s11050_s1 + $0x2a8] ss:$12 sps:$4 sm:$0xff]   ;;  %v7978_v11 = vld [vmem:[%s11050_s1 + $0x150] ss:$12 sps:$4 sm:$0xff]  }
  0x13   :  { %1622 = vmatpush1.bf16.msra.mxu0 %v7936_v18  ;;  %6805 = vmatpush3.bf16.msra.mxu1 %v7937_v19  ;;  %v7972_v48 = vld [vmem:[%s11050_s1 + $0x260] ss:$12 sps:$4 sm:$0xff]   ;;  %v8600_v53 = vcombine.high %v44_v45, %v48_v47  ;;  %v7965_v55 = vld [vmem:[%s11050_s1 + $0x124] ss:$12 sps:$4 sm:$0xff]   ;;  %v8628_v62 = vcombine.low %v44_v45, %v48_v47  ;;  %v7989_v5 = vld [vmem:[%s11050_s1 + $0x1e8] ss:$12 sps:$4 sm:$0xff]  }
  0x14   :  { %1623 = vmatprep.subr.bf16.mxu0 %v7938_v20  ;;  %6806 = vmatprep.subr.bf16.mxu1 %v7940_v21  ;;  %v7974_v51 = vld [vmem:[%s11050_s1 + $0x1a0] ss:$12 sps:$4 sm:$0xff]   ;;  %v7977_v56 = vld [vmem:[%s11050_s1 + $0x278] ss:$12 sps:$4 sm:$0xff]   ;;  %v7983_v16 = vld [vmem:[%s11050_s1 + $0x168] ss:$12 sps:$4 sm:$0xff]  }
  0x15   :  { %v7979_v57 = vld [vmem:[%s11050_s1 + $0x1b8] ss:$12 sps:$4 sm:$0xff]   ;;  %v7968_v63 = vld [vmem:[%s11050_s1 + $0x120] ss:$12 sps:$4 sm:$0xff]   ;;  %v8003_v18 = vld [vmem:[%s11050_s1 + $0x2f0] ss:$12 sps:$4 sm:$0xff]  }
  0x16   :  { %v52_v58 = vld [vmem:[%s11049_s0 + $0xc0] sm:$0xff]  ;;  %v8004_v21 = vld [vmem:[%s11050_s1 + $0x230] ss:$12 sps:$4 sm:$0xff]   ;;  %v8002_v33 = vld [vmem:[%s11050_s1 + $0x1cc] ss:$12 sps:$4 sm:$0xff]  }
  0x17   :  { %1624 = vmatpush1.bf16.msra.mxu0 %v7941_v22  ;;  %6807 = vmatpush3.bf16.msra.mxu1 %v7942_v23  ;;  %v56_v59 = vld [vmem:[%s11049_s0 + $0xe0] sm:$0xff]  ;;  %v7995_v30 = vld [vmem:[%s11050_s1 + $0x1b0] ss:$12 sps:$4 sm:$0xff]   ;;  %v37_v37 = vld [vmem:[%s11049_s0 + $0x48] sm:$0xff] }
  0x18   :  { %1625 = vmatprep.subr.bf16.mxu0 %v7943_v24  ;;  %6808 = vmatprep.subr.bf16.mxu1 %v7945_v25  ;;  %v8636_v1 = vcombine.high %v52_v58, %v56_v59  ;;  %v7973_v2 = vld [vmem:[%s11050_s1 + $0x138] ss:$12 sps:$4 sm:$0xff]   ;;  %v7975_v4 = vld [vmem:[%s11050_s1 + $0x154] ss:$12 sps:$4 sm:$0xff]   ;;  %v8664_v10 = vcombine.low %v52_v58, %v56_v59  ;;  %v7992_v24 = vld [vmem:[%s11050_s1 + $0x19c] ss:$12 sps:$4 sm:$0xff]  }
  0x19   :  { %v60_v6 = vld [vmem:[%s11049_s0 + $0x100] sm:$0xff]  ;;  %v45_v47 = vld [vmem:[%s11049_s0 + $0x88] sm:$0xff]  ;;  %v8035_v58 = vld [vmem:[%s11050_s1 + $0x410] ss:$12 sps:$4 sm:$0xff]  }
  0x1a   :  { %v64_v7 = vld [vmem:[%s11049_s0 + $0x120] sm:$0xff]  ;;  %v53_v59 = vld [vmem:[%s11049_s0 + $0xc8] sm:$0xff] }
  0x1b   :  { %1626 = vmatpush1.bf16.msra.mxu0 %v7946_v26  ;;  %6809 = vmatpush3.bf16.msra.mxu1 %v7947_v27  ;;  %v7993_v8 = vld [vmem:[%s11050_s1 + $0x2c0] ss:$12 sps:$4 sm:$0xff]   ;;  %v8672_v13 = vcombine.high %v60_v6, %v64_v7  ;;  %v7998_v14 = vld [vmem:[%s11050_s1 + $0x2d8] ss:$12 sps:$4 sm:$0xff]   ;;  %v8703_v23 = vcombine.low %v60_v6, %v64_v7 }
  0x1c   :  { %1627 = vmatprep.subr.bf16.mxu0 %v7948_v28  ;;  %6810 = vmatprep.subr.bf16.mxu1 %v7950_v29  ;;  %v7994_v9 = vld [vmem:[%s11050_s1 + $0x200] ss:$12 sps:$4 sm:$0xff]   ;;  %v7999_v15 = vld [vmem:[%s11050_s1 + $0x218] ss:$12 sps:$4 sm:$0xff]  }
  0x1d   :  { %v7987_v17 = vld [vmem:[%s11050_s1 + $0x184] ss:$12 sps:$4 sm:$0xff]   ;;  %v7985_v22 = vld [vmem:[%s11050_s1 + $0x180] ss:$12 sps:$4 sm:$0xff]  }
  0x1e   :  { %v68_v19 = vld [vmem:[%s11049_s0 + $0x140] sm:$0xff]  ;;  %v29_v28 = vld [vmem:[%s11049_s0 + $0x8] sm:$0xff] }
  0x1f   :  { %1628 = vmatpush1.bf16.msra.mxu0 %v7951_v32  ;;  %6811 = vmatpush3.bf16.msra.mxu1 %v7952_v34  ;;  %v72_v20 = vld [vmem:[%s11049_s0 + $0x160] sm:$0xff]  ;;  %v33_v29 = vld [vmem:[%s11049_s0 + $0x28] sm:$0xff] }
  0x20   :  { %1629 = vmatprep.subr.bf16.mxu0 %v7953_v35  ;;  %6848 = vmatprep.subr.bf16.mxu1 %v7967_v44  ;;  %v8708_v25 = vcombine.high %v68_v19, %v72_v20  ;;  %v7990_v26 = vld [vmem:[%s11050_s1 + $0x198] ss:$12 sps:$4 sm:$0xff]   ;;  %v7997_v27 = vld [vmem:[%s11050_s1 + $0x1b4] ss:$12 sps:$4 sm:$0xff]   ;;  %v8729_v31 = vcombine.low %v68_v19, %v72_v20  ;;  %v8737_v34 = vcombine.high %v29_v28, %v33_v29  ;;  %v61_v7 = vld [vmem:[%s11049_s0 + $0x108] sm:$0xff] }
  0x21   :  { %v8020_v32 = vld [vmem:[%s11050_s1 + $0x3c8] ss:$12 sps:$4 sm:$0xff]   ;;  %v8007_v36 = vld [vmem:[%s11050_s1 + $0x1e4] ss:$12 sps:$4 sm:$0xff]   ;;  %v8025_v44 = vld [vmem:[%s11050_s1 + $0x3e0] ss:$12 sps:$4 sm:$0xff]  }
  0x22   :  { %2018 = vmatmul.mubr.bf16.vlgmr.msra.gmra.mrb[0].mxu1 %v8556_v38  ;;  %v8000_v35 = vld [vmem:[%s11050_s1 + $0x1c8] ss:$12 sps:$4 sm:$0xff]   ;;  %v8008_v45 = vld [vmem:[%s11050_s1 + $0x1f8] ss:$12 sps:$4 sm:$0xff]  }
  0x23   :  { %1630 = vmatpush1.bf16.msra.mxu0 %v7955_v39  ;;  %2025 = vmatprep.mubr.bf16.mxu1 %v8564_v41  ;;  %v8755_v39 = vcombine.low %v29_v28, %v33_v29  ;;  %v8029_v6 = vld [vmem:[%s11050_s1 + $0x274] ss:$12 sps:$4 sm:$0xff]   ;;  %v69_v19 = vld [vmem:[%s11049_s0 + $0x148] sm:$0xff] }
  0x24   :  { %1631 = vmatprep.subr.bf16.mxu0 %v7956_v40  ;;  %6849 = vmatpush3.bf16.msra.mxu1 %v7969_v46  ;;  %v8005_v40 = vld [vmem:[%s11050_s1 + $0x1e0] ss:$12 sps:$4 sm:$0xff]   ;;  %v30_v29 = vld [vmem:[%s11049_s0 + $0x10] sm:$0xff] }
  0x25   :  { %6850 = vmatprep.subr.bf16.mxu1 %v7972_v48  ;;  %v8013_v46 = vld [vmem:[%s11050_s1 + $0x214] ss:$12 sps:$4 sm:$0xff]   ;;  %v49_v48 = vld [vmem:[%s11049_s0 + $0xa8] sm:$0xff] }
  0x26   :  { %v73_v20 = vld [vmem:[%s11049_s0 + $0x168] sm:$0xff]  ;;  %v8049_v28 = vld [vmem:[%s11050_s1 + $0x2d4] ss:$12 sps:$4 sm:$0xff]  }
  0x27   :  { %1632 = vmatpush1.bf16.msra.mxu0 %v7958_v42 }
  0x28   :  { %1633 = vmatprep.subr.bf16.mxu0 %v7959_v43  ;;  %6851 = vmatpush3.bf16.msra.mxu1 %v7974_v51  ;;  %v8021_v43 = vld [vmem:[%s11050_s1 + $0x308] ss:$12 sps:$4 sm:$0xff]   ;;  %v8011_v51 = vld [vmem:[%s11050_s1 + $0x210] ss:$12 sps:$4 sm:$0xff]  }
  0x29   :  { %6852 = vmatprep.subr.bf16.mxu1 %v7977_v56  ;;  %v8014_v56 = vld [vmem:[%s11050_s1 + $0x228] ss:$12 sps:$4 sm:$0xff]  }
  0x2a   :  { %2026 = vmatmul.mubr.bf16.gmra.mrb[4].mxu1 %v8589_v49 }
  0x2b   :  { %1634 = vmatpush1.bf16.msra.mxu0 %v7961_v50  ;;  %2033 = vmatprep.mubr.bf16.mxu1 %v8600_v53  ;;  %v8030_v50 = vld [vmem:[%s11050_s1 + $0x3f8] ss:$12 sps:$4 sm:$0xff]  }
  0x2c   :  { %1635 = vmatprep.subr.bf16.mxu0 %v7962_v52  ;;  %6853 = vmatpush3.bf16.msra.mxu1 %v7979_v57  ;;  %v8019_v57 = vld [vmem:[%s11050_s1 + $0x244] ss:$12 sps:$4 sm:$0xff]  }
  0x2d   :  { %6854 = vmatprep.subr.bf16.mxu1 %v7982_v60  ;;  %v57_v60 = vld [vmem:[%s11049_s0 + $0xe8] sm:$0xff] }
  0x2f   :  { %1636 = vmatpush1.bf16.msra.mxu0 %v7964_v54  ;;  %v8801_v54 = vcombine.high %v45_v47, %v49_v48 }
  0x30   :  { %1637 = vmatprep.subr.bf16.mxu0 %v7965_v55  ;;  %6855 = vmatpush3.bf16.msra.mxu1 %v7984_v61  ;;  %v8031_v55 = vld [vmem:[%s11050_s1 + $0x338] ss:$12 sps:$4 sm:$0xff]   ;;  %v8036_v61 = vld [vmem:[%s11050_s1 + $0x350] ss:$12 sps:$4 sm:$0xff]  }
  0x31   :  { %6856 = vmatprep.subr.bf16.mxu1 %v7988_v3  ;;  %v8041_v3 = vld [vmem:[%s11050_s1 + $0x368] ss:$12 sps:$4 sm:$0xff]  }
  0x32   :  { %2034 = vmatmul.mubr.bf16.gmra.mrb[8].mxu1 %v8628_v62 }
  0x33   :  { %1638 = vmatpush1.bf16.msra.mxu0 %v7968_v63  ;;  %2041 = vmatprep.mubr.bf16.mxu1 %v8636_v1  ;;  %v8017_v63 = vld [vmem:[%s11050_s1 + $0x240] ss:$12 sps:$4 sm:$0xff]  }
  0x34   :  { %1639 = vmatprep.subr.bf16.mxu0 %v7970_v0  ;;  %6857 = vmatpush3.bf16.msra.mxu1 %v7989_v5  ;;  %v8834_v0 = vcombine.low %v45_v47, %v49_v48  ;;  %v8022_v5 = vld [vmem:[%s11050_s1 + $0x258] ss:$12 sps:$4 sm:$0xff]   ;;  %v8065_v48 = vld [vmem:[%s11050_s1 + $0x334] ss:$12 sps:$4 sm:$0xff]  }
  0x35   :  { %6858 = vmatprep.subr.bf16.mxu1 %v7993_v8  ;;  %v65_v8 = vld [vmem:[%s11049_s0 + $0x128] sm:$0xff]  ;;  %v8060_v47 = vld [vmem:[%s11050_s1 + $0x318] ss:$12 sps:$4 sm:$0xff]  }
  0x37   :  { %1640 = vmatpush1.bf16.msra.mxu0 %v7973_v2  ;;  %v8839_v2 = vcombine.high %v53_v59, %v57_v60 }
  0x38   :  { %1641 = vmatprep.subr.bf16.mxu0 %v7975_v4  ;;  %6859 = vmatpush3.bf16.msra.mxu1 %v7994_v9  ;;  %v8045_v4 = vld [vmem:[%s11050_s1 + $0x440] ss:$12 sps:$4 sm:$0xff]  }
  0x39   :  { %6860 = vmatprep.subr.bf16.mxu1 %v7998_v14  ;;  %v8046_v9 = vld [vmem:[%s11050_s1 + $0x380] ss:$12 sps:$4 sm:$0xff]   ;;  %v8877_v14 = vcombine.high %v61_v7, %v65_v8 }
  0x3a   :  { %2042 = vmatmul.mubr.bf16.gmra.mrb[12].mxu1 %v8664_v10 }
  0x3b   :  { %1642 = vmatpush1.bf16.msra.mxu0 %v7978_v11  ;;  %2049 = vmatprep.mubr.bf16.mxu1 %v8672_v13  ;;  %v8027_v11 = vld [vmem:[%s11050_s1 + $0x270] ss:$12 sps:$4 sm:$0xff]  }
  0x3c   :  { %1643 = vmatprep.subr.bf16.mxu0 %v7980_v12  ;;  %6861 = vmatpush3.bf16.msra.mxu1 %v7999_v15  ;;  %v8872_v12 = vcombine.low %v53_v59, %v57_v60  ;;  %v8032_v15 = vld [vmem:[%s11050_s1 + $0x288] ss:$12 sps:$4 sm:$0xff]   ;;  %v8071_v60 = vld [vmem:[%s11050_s1 + $0x364] ss:$12 sps:$4 sm:$0xff]  }
  0x3d   :  { %6862 = vmatprep.subr.bf16.mxu1 %v8003_v18  ;;  %v8039_v18 = vld [vmem:[%s11050_s1 + $0x2a4] ss:$12 sps:$4 sm:$0xff]   ;;  %v8066_v59 = vld [vmem:[%s11050_s1 + $0x348] ss:$12 sps:$4 sm:$0xff]  }
  0x3f   :  { %1644 = vmatpush1.bf16.msra.mxu0 %v7983_v16  ;;  %v8051_v16 = vld [vmem:[%s11050_s1 + $0x398] ss:$12 sps:$4 sm:$0xff]  }
  0x40   :  { %1706 = vmatprep.subr.bf16.mxu0 %v7987_v17  ;;  %6863 = vmatpush3.bf16.msra.mxu1 %v8004_v21  ;;  %v8055_v17 = vld [vmem:[%s11050_s1 + $0x470] ss:$12 sps:$4 sm:$0xff]  }
  0x41   :  { %6900 = vmatprep.subr.bf16.mxu1 %v8020_v32  ;;  %v8056_v21 = vld [vmem:[%s11050_s1 + $0x3b0] ss:$12 sps:$4 sm:$0xff]   ;;  %v8934_v32 = vcombine.low %v69_v19, %v73_v20 }
  0x42   :  { %1646 = vmatmul.mubr.bf16.vlgmr.msra.gmra.mrb[0].mxu0 %v8556_v38  ;;  %2050 = vmatmul.mubr.bf16.gmra.mrb[16].mxu1 %v8703_v23  ;;  %v41_v38 = vld [vmem:[%s11049_s0 + $0x68] sm:$0xff] }
  0x43   :  { %1707 = vmatpush1.bf16.msra.mxu0 %v7985_v22  ;;  %2057 = vmatprep.mubr.bf16.mxu1 %v8708_v25  ;;  %v8763_v42 = vcombine.high %v37_v37, %v41_v38  ;;  %v8796_v52 = vcombine.low %v37_v37, %v41_v38  ;;  %v8072_v22 = vld [vmem:[%s11050_s1 + $0x548] ss:$12 sps:$4 sm:$0xff]  }
  0x44   :  { %1708 = vmatprep.subr.bf16.mxu0 %v7992_v24  ;;  %1655 = vmatprep.mubr.bf16.mxu0 %v8564_v41  ;;  %v8010_v41 = vld [vmem:[%s11050_s1 + $0x1fc] ss:$12 sps:$4 sm:$0xff]   ;;  %v8910_v24 = vcombine.low %v61_v7, %v65_v8  ;;  %v38_v37 = vld [vmem:[%s11049_s0 + $0x50] sm:$0xff]  ;;  %v8074_v7 = vld [vmem:[%s11050_s1 + $0x378] ss:$12 sps:$4 sm:$0xff]  }
  0x45   :  { %v42_v38 = vld [vmem:[%s11049_s0 + $0x70] sm:$0xff] }
  0x46   :  { %v8081_v8 = vld [vmem:[%s11050_s1 + $0x394] ss:$12 sps:$4 sm:$0xff]  }
  0x47   :  { %1709 = vmatpush1.bf16.msra.mxu0 %v7990_v26  ;;  %v8915_v26 = vcombine.high %v69_v19, %v73_v20  ;;  %v8107_v19 = vld [vmem:[%s11050_s1 + $0x5f0] ss:$12 sps:$4 sm:$0xff]  }
  0x48   :  { %1710 = vmatprep.subr.bf16.mxu0 %v7997_v27  ;;  %v8042_v27 = vld [vmem:[%s11050_s1 + $0x2b8] ss:$12 sps:$4 sm:$0xff]  }
  0x49   :  { %v8091_v20 = vld [vmem:[%s11050_s1 + $0x3c4] ss:$12 sps:$4 sm:$0xff]  }
  0x4a   :  { %1656 = vmatmul.mubr.bf16.gmra.mrb[4].mxu0 %v8589_v49  ;;  %2058 = vmatmul.mubr.bf16.gmra.mrb[20].mxu1 %v8729_v31  ;;  %v8026_v49 = vld [vmem:[%s11050_s1 + $0x320] ss:$12 sps:$4 sm:$0xff]  }
  0x4b   :  { %1711 = vmatpush1.bf16.msra.mxu0 %v7995_v30  ;;  %2098 = vmatprep.mubr.bf16.mxu1 %v8737_v34  ;;  %v34_v30 = vld [vmem:[%s11049_s0 + $0x30] sm:$0xff] }
  0x4c   :  { %1712 = vmatprep.subr.bf16.mxu0 %v8002_v33  ;;  %1665 = vmatprep.mubr.bf16.mxu0 %v8600_v53  ;;  %v8016_v53 = vld [vmem:[%s11050_s1 + $0x22c] ss:$12 sps:$4 sm:$0xff]  }
  0x4d   :  { %v8054_v33 = vld [vmem:[%s11050_s1 + $0x2ec] ss:$12 sps:$4 sm:$0xff]  }
  0x4f   :  { %1713 = vmatpush1.bf16.msra.mxu0 %v8000_v35  ;;  %v8052_v35 = vld [vmem:[%s11050_s1 + $0x2e8] ss:$12 sps:$4 sm:$0xff]  }
  0x50   :  { %1714 = vmatprep.subr.bf16.mxu0 %v8007_v36  ;;  %v8059_v36 = vld [vmem:[%s11050_s1 + $0x304] ss:$12 sps:$4 sm:$0xff]  }
  0x52   :  { %1666 = vmatmul.mubr.bf16.gmra.mrb[8].mxu0 %v8628_v62  ;;  %2099 = vmatmul.mubr.bf16.vlgmr.msra.gmra.mrb[24].mxu1 %v8755_v39  ;;  %v8040_v62 = vld [vmem:[%s11050_s1 + $0x428] ss:$12 sps:$4 sm:$0xff]  }
  0x53   :  { %1715 = vmatpush1.bf16.msra.mxu0 %v8005_v40  ;;  %2106 = vmatprep.mubr.bf16.mxu1 %v8763_v42  ;;  %v8955_v40 = vcombine.low %v30_v29, %v34_v30 }
  0x54   :  { %1716 = vmatprep.subr.bf16.mxu0 %v8010_v41  ;;  %6901 = vmatpush3.bf16.msra.mxu1 %v8021_v43  ;;  %v8057_v41 = vld [vmem:[%s11050_s1 + $0x300] ss:$12 sps:$4 sm:$0xff]   ;;  %v8062_v43 = vld [vmem:[%s11050_s1 + $0x31c] ss:$12 sps:$4 sm:$0xff]  }
  0x55   :  { %1675 = vmatprep.mubr.bf16.mxu0 %v8636_v1  ;;  %6902 = vmatprep.subr.bf16.mxu1 %v8025_v44  ;;  %v8024_v1 = vld [vmem:[%s11050_s1 + $0x25c] ss:$12 sps:$4 sm:$0xff]   ;;  %v8963_v44 = vcombine.high %v38_v37, %v42_v38 }
  0x57   :  { %1717 = vmatpush1.bf16.msra.mxu0 %v8008_v45  ;;  %v8073_v45 = vld [vmem:[%s11050_s1 + $0x488] ss:$12 sps:$4 sm:$0xff]  }
  0x58   :  { %1718 = vmatprep.subr.bf16.mxu0 %v8013_v46  ;;  %6903 = vmatpush3.bf16.msra.mxu1 %v8026_v49  ;;  %v8077_v46 = vld [vmem:[%s11050_s1 + $0x560] ss:$12 sps:$4 sm:$0xff]   ;;  %v50_v49 = vld [vmem:[%s11049_s0 + $0xb0] sm:$0xff] }
  0x59   :  { %6904 = vmatprep.subr.bf16.mxu1 %v8030_v50  ;;  %v8078_v50 = vld [vmem:[%s11050_s1 + $0x4a0] ss:$12 sps:$4 sm:$0xff]  }
  0x5a   :  { %1676 = vmatmul.mubr.bf16.gmra.mrb[12].mxu0 %v8664_v10  ;;  %2107 = vmatmul.mubr.bf16.gmra.mrb[28].mxu1 %v8796_v52  ;;  %v8050_v10 = vld [vmem:[%s11050_s1 + $0x458] ss:$12 sps:$4 sm:$0xff]  }
  0x5b   :  { %1719 = vmatpush1.bf16.msra.mxu0 %v8011_v51  ;;  %2114 = vmatprep.mubr.bf16.mxu1 %v8801_v54  ;;  %v8082_v51 = vld [vmem:[%s11050_s1 + $0x578] ss:$12 sps:$4 sm:$0xff]  }
  0x5c   :  { %1720 = vmatprep.subr.bf16.mxu0 %v8016_v53  ;;  %6905 = vmatpush3.bf16.msra.mxu1 %v8031_v55  ;;  %v8063_v53 = vld [vmem:[%s11050_s1 + $0x330] ss:$12 sps:$4 sm:$0xff]   ;;  %v8996_v55 = vcombine.low %v38_v37, %v42_v38  ;;  %v8104_v37 = vld [vmem:[%s11050_s1 + $0x408] ss:$12 sps:$4 sm:$0xff]  }
  0x5d   :  { %1685 = vmatprep.mubr.bf16.mxu0 %v8672_v13  ;;  %6906 = vmatprep.subr.bf16.mxu1 %v8035_v58  ;;  %v8034_v13 = vld [vmem:[%s11050_s1 + $0x28c] ss:$12 sps:$4 sm:$0xff]   ;;  %v8087_v58 = vld [vmem:[%s11050_s1 + $0x590] ss:$12 sps:$4 sm:$0xff]  }
  0x5e   :  { %v8111_v38 = vld [vmem:[%s11050_s1 + $0x424] ss:$12 sps:$4 sm:$0xff]  }
  0x5f   :  { %1721 = vmatpush1.bf16.msra.mxu0 %v8014_v56  ;;  %v8068_v56 = vld [vmem:[%s11050_s1 + $0x34c] ss:$12 sps:$4 sm:$0xff]  }
  0x60   :  { %1722 = vmatprep.subr.bf16.mxu0 %v8019_v57  ;;  %6907 = vmatpush3.bf16.msra.mxu1 %v8036_v61  ;;  %v58_v61 = vld [vmem:[%s11049_s0 + $0xf0] sm:$0xff] }
  0x61   :  { %6908 = vmatprep.subr.bf16.mxu1 %v8040_v62  ;;  %v8088_v62 = vld [vmem:[%s11050_s1 + $0x4d0] ss:$12 sps:$4 sm:$0xff]  }
  0x62   :  { %1686 = vmatmul.mubr.bf16.gmra.mrb[16].mxu0 %v8703_v23  ;;  %2115 = vmatmul.mubr.bf16.gmra.mrb[32].mxu1 %v8834_v0  ;;  %v8037_v23 = vld [vmem:[%s11050_s1 + $0x2a0] ss:$12 sps:$4 sm:$0xff]  }
  0x63   :  { %1723 = vmatpush1.bf16.msra.mxu0 %v8017_v63  ;;  %2122 = vmatprep.mubr.bf16.mxu1 %v8839_v2  ;;  %v8092_v63 = vld [vmem:[%s11050_s1 + $0x5a8] ss:$12 sps:$4 sm:$0xff]  }
  0x64   :  { %1724 = vmatprep.subr.bf16.mxu0 %v8024_v1  ;;  %6909 = vmatpush3.bf16.msra.mxu1 %v8041_v3  ;;  %v8069_v1 = vld [vmem:[%s11050_s1 + $0x360] ss:$12 sps:$4 sm:$0xff]  }
  0x65   :  { %1695 = vmatprep.mubr.bf16.mxu0 %v8708_v25  ;;  %6910 = vmatprep.subr.bf16.mxu1 %v8045_v4  ;;  %v8044_v25 = vld [vmem:[%s11050_s1 + $0x2bc] ss:$12 sps:$4 sm:$0xff]  }
  0x66   :  { %v8076_v4 = vld [vmem:[%s11050_s1 + $0x37c] ss:$12 sps:$4 sm:$0xff]  }
  0x67   :  { %1725 = vmatpush1.bf16.msra.mxu0 %v8022_v5 }
  0x68   :  { %1726 = vmatprep.subr.bf16.mxu0 %v8029_v6  ;;  %6911 = vmatpush3.bf16.msra.mxu1 %v8046_v9  ;;  %v8097_v6 = vld [vmem:[%s11050_s1 + $0x5c0] ss:$12 sps:$4 sm:$0xff]   ;;  %v66_v9 = vld [vmem:[%s11049_s0 + $0x130] sm:$0xff] }
  0x69   :  { %6912 = vmatprep.subr.bf16.mxu1 %v8050_v10  ;;  %v8098_v10 = vld [vmem:[%s11050_s1 + $0x500] ss:$12 sps:$4 sm:$0xff]  }
  0x6a   :  { %1696 = vmatmul.mubr.bf16.gmra.mrb[20].mxu0 %v8729_v31  ;;  %2123 = vmatmul.mubr.bf16.gmra.mrb[36].mxu1 %v8872_v12  ;;  %v8047_v31 = vld [vmem:[%s11050_s1 + $0x2d0] ss:$12 sps:$4 sm:$0xff]  }
  0x6b   :  { %1727 = vmatpush1.bf16.msra.mxu0 %v8027_v11  ;;  %2130 = vmatprep.mubr.bf16.mxu1 %v8877_v14  ;;  %v8102_v11 = vld [vmem:[%s11050_s1 + $0x5d8] ss:$12 sps:$4 sm:$0xff]  }
  0x6c   :  { %1728 = vmatprep.subr.bf16.mxu0 %v8034_v13  ;;  %6913 = vmatpush3.bf16.msra.mxu1 %v8051_v16  ;;  %v8079_v13 = vld [vmem:[%s11050_s1 + $0x390] ss:$12 sps:$4 sm:$0xff]   ;;  %v8086_v16 = vld [vmem:[%s11050_s1 + $0x3ac] ss:$12 sps:$4 sm:$0xff]  }
  0x6d   :  { %1738 = vmatprep.mubr.bf16.mxu0 %v8737_v34  ;;  %6914 = vmatprep.subr.bf16.mxu1 %v8055_v17  ;;  %v8939_v34 = vcombine.high %v30_v29, %v34_v30  ;;  %v8101_v29 = vld [vmem:[%s11050_s1 + $0x3f4] ss:$12 sps:$4 sm:$0xff]   ;;  %v31_v30 = vld [vmem:[%s11049_s0 + $0x18] sm:$0xff] }
  0x6f   :  { %1729 = vmatpush1.bf16.msra.mxu0 %v8032_v15 }
  0x70   :  { %1730 = vmatprep.subr.bf16.mxu0 %v8039_v18  ;;  %6915 = vmatpush3.bf16.msra.mxu1 %v8056_v21  ;;  %v8084_v18 = vld [vmem:[%s11050_s1 + $0x3a8] ss:$12 sps:$4 sm:$0xff]  }
  0x71   :  { %6952 = vmatprep.subr.bf16.mxu1 %v8072_v22  ;;  %v70_v21 = vld [vmem:[%s11049_s0 + $0x150] sm:$0xff] }
  0x72   :  { %2131 = vmatmul.mubr.bf16.gmra.mrb[40].mxu1 %v8910_v24  ;;  %v8108_v22 = vld [vmem:[%s11050_s1 + $0x530] ss:$12 sps:$4 sm:$0xff]  }
  0x73   :  { %1731 = vmatpush1.bf16.msra.mxu0 %v8037_v23  ;;  %2138 = vmatprep.mubr.bf16.mxu1 %v8915_v26  ;;  %v8089_v23 = vld [vmem:[%s11050_s1 + $0x3c0] ss:$12 sps:$4 sm:$0xff]  }
  0x74   :  { %1732 = vmatprep.subr.bf16.mxu0 %v8044_v25 }
  0x77   :  { %1733 = vmatpush1.bf16.msra.mxu0 %v8042_v27  ;;  %v8096_v27 = vld [vmem:[%s11050_s1 + $0x3dc] ss:$12 sps:$4 sm:$0xff]  }
  0x78   :  { %1734 = vmatprep.subr.bf16.mxu0 %v8049_v28 }
  0x7a   :  { %2139 = vmatmul.mubr.bf16.gmra.mrb[44].mxu1 %v8934_v32 }
  0x7b   :  { %1735 = vmatpush1.bf16.msra.mxu0 %v8047_v31  ;;  %2179 = vmatprep.mubr.bf16.mxu1 %v8939_v34  ;;  %v8099_v31 = vld [vmem:[%s11050_s1 + $0x3f0] ss:$12 sps:$4 sm:$0xff]  }
  0x7c   :  { %1736 = vmatprep.subr.bf16.mxu0 %v8054_v33  ;;  %v8106_v33 = vld [vmem:[%s11050_s1 + $0x40c] ss:$12 sps:$4 sm:$0xff]  }
  0x7f   :  { %1737 = vmatpush1.bf16.msra.mxu0 %v8052_v35 }
  0x80   :  { %1799 = vmatprep.subr.bf16.mxu0 %v8059_v36 }
  0x82   :  { %1739 = vmatmul.mubr.bf16.vlgmr.msra.gmra.mrb[0].mxu0 %v8755_v39  ;;  %2180 = vmatmul.mubr.bf16.vlgmr.msra.gmra.mrb[48].mxu1 %v8955_v40  ;;  %v46_v39 = vld [vmem:[%s11049_s0 + $0x90] sm:$0xff] }
  0x83   :  { %1800 = vmatpush1.bf16.msra.mxu0 %v8057_v41  ;;  %2187 = vmatprep.mubr.bf16.mxu1 %v8963_v44  ;;  %v9001_v57 = vcombine.high %v46_v39, %v50_v49  ;;  %v9034_v3 = vcombine.low %v46_v39, %v50_v49  ;;  %v43_v41 = vld [vmem:[%s11049_s0 + $0x78] sm:$0xff] }
  0x84   :  { %1801 = vmatprep.subr.bf16.mxu0 %v8062_v43  ;;  %6953 = vmatpush3.bf16.msra.mxu1 %v8073_v45  ;;  %v8109_v43 = vld [vmem:[%s11050_s1 + $0x420] ss:$12 sps:$4 sm:$0xff]   ;;  %v51_v39 = vld [vmem:[%s11049_s0 + $0xb8] sm:$0xff] }
  0x85   :  { %1748 = vmatprep.mubr.bf16.mxu0 %v8763_v42  ;;  %6954 = vmatprep.subr.bf16.mxu1 %v8077_v46  ;;  %v8083_v42 = vld [vmem:[%s11050_s1 + $0x4b8] ss:$12 sps:$4 sm:$0xff]   ;;  %v8115_v49 = vld [vmem:[%s11050_s1 + $0x450] ss:$12 sps:$4 sm:$0xff]  }
  0x87   :  { %1802 = vmatpush1.bf16.msra.mxu0 %v8060_v47  ;;  %v8112_v47 = vld [vmem:[%s11050_s1 + $0x438] ss:$12 sps:$4 sm:$0xff]  }
  0x88   :  { %1803 = vmatprep.subr.bf16.mxu0 %v8065_v48  ;;  %6955 = vmatpush3.bf16.msra.mxu1 %v8078_v50  ;;  %v8117_v48 = vld [vmem:[%s11050_s1 + $0x454] ss:$12 sps:$4 sm:$0xff]   ;;  %v8120_v50 = vld [vmem:[%s11050_s1 + $0x46c] ss:$12 sps:$4 sm:$0xff]  }
  0x89   :  { %6956 = vmatprep.subr.bf16.mxu1 %v8082_v51 }
  0x8a   :  { %1749 = vmatmul.mubr.bf16.gmra.mrb[4].mxu0 %v8796_v52  ;;  %2188 = vmatmul.mubr.bf16.gmra.mrb[52].mxu1 %v8996_v55  ;;  %v54_v52 = vld [vmem:[%s11049_s0 + $0xd0] sm:$0xff] }
  0x8b   :  { %1804 = vmatpush1.bf16.msra.mxu0 %v8063_v53  ;;  %2195 = vmatprep.mubr.bf16.mxu1 %v9001_v57  ;;  %v9039_v5 = vcombine.high %v54_v52, %v58_v61  ;;  %v9072_v15 = vcombine.low %v54_v52, %v58_v61  ;;  %v8126_v52 = vld [vmem:[%s11050_s1 + $0x49c] ss:$12 sps:$4 sm:$0xff]  }
  0x8c   :  { %1805 = vmatprep.subr.bf16.mxu0 %v8068_v56  ;;  %6957 = vmatpush3.bf16.msra.mxu1 %v8083_v42  ;;  %v8118_v56 = vld [vmem:[%s11050_s1 + $0x468] ss:$12 sps:$4 sm:$0xff]   ;;  %v8123_v42 = vld [vmem:[%s11050_s1 + $0x484] ss:$12 sps:$4 sm:$0xff]  }
  0x8d   :  { %1758 = vmatprep.mubr.bf16.mxu0 %v8801_v54  ;;  %6958 = vmatprep.subr.bf16.mxu1 %v8087_v58  ;;  %v8093_v54 = vld [vmem:[%s11050_s1 + $0x4e8] ss:$12 sps:$4 sm:$0xff]   ;;  %v55_v58 = vld [vmem:[%s11049_s0 + $0xd8] sm:$0xff] }
  0x8f   :  { %1806 = vmatpush1.bf16.msra.mxu0 %v8066_v59  ;;  %v59_v59 = vld [vmem:[%s11049_s0 + $0xf8] sm:$0xff] }
  0x90   :  { %1807 = vmatprep.subr.bf16.mxu0 %v8071_v60  ;;  %6959 = vmatpush3.bf16.msra.mxu1 %v8088_v62  ;;  %v8121_v60 = vld [vmem:[%s11050_s1 + $0x480] ss:$12 sps:$4 sm:$0xff]   ;;  %v9212_v62 = vcombine.high %v55_v58, %v59_v59 }
  0x91   :  { %6960 = vmatprep.subr.bf16.mxu1 %v8092_v63  ;;  %v8124_v63 = vld [vmem:[%s11050_s1 + $0x498] ss:$12 sps:$4 sm:$0xff]  }
  0x92   :  { %1759 = vmatmul.mubr.bf16.gmra.mrb[8].mxu0 %v8834_v0  ;;  %2196 = vmatmul.mubr.bf16.gmra.mrb[56].mxu1 %v9034_v3  ;;  %v62_v0 = vld [vmem:[%s11049_s0 + $0x110] sm:$0xff] }
  0x93   :  { %1808 = vmatpush1.bf16.msra.mxu0 %v8069_v1  ;;  %2203 = vmatprep.mubr.bf16.mxu1 %v9039_v5  ;;  %v9077_v17 = vcombine.high %v62_v0, %v66_v9  ;;  %v9107_v25 = vcombine.low %v62_v0, %v66_v9  ;;  %v8129_v1 = vld [vmem:[%s11050_s1 + $0x4b4] ss:$12 sps:$4 sm:$0xff]   ;;  %v8135_v9 = vld [vmem:[%s11050_s1 + $0x4e4] ss:$12 sps:$4 sm:$0xff]  }
  0x94   :  { %1809 = vmatprep.subr.bf16.mxu0 %v8076_v4  ;;  %6961 = vmatpush3.bf16.msra.mxu1 %v8093_v54  ;;  %v63_v4 = vld [vmem:[%s11049_s0 + $0x118] sm:$0xff]  ;;  %v8130_v0 = vld [vmem:[%s11050_s1 + $0x4c8] ss:$12 sps:$4 sm:$0xff]  }
  0x95   :  { %1768 = vmatprep.mubr.bf16.mxu0 %v8839_v2  ;;  %6962 = vmatprep.subr.bf16.mxu1 %v8097_v6  ;;  %v8103_v2 = vld [vmem:[%s11050_s1 + $0x518] ss:$12 sps:$4 sm:$0xff]  }
  0x96   :  { %v67_v54 = vld [vmem:[%s11049_s0 + $0x138] sm:$0xff] }
  0x97   :  { %1810 = vmatpush1.bf16.msra.mxu0 %v8074_v7  ;;  %v8132_v6 = vld [vmem:[%s11050_s1 + $0x4cc] ss:$12 sps:$4 sm:$0xff]   ;;  %v9236_v7 = vcombine.low %v55_v58, %v59_v59 }
  0x98   :  { %1811 = vmatprep.subr.bf16.mxu0 %v8081_v8  ;;  %6963 = vmatpush3.bf16.msra.mxu1 %v8098_v10  ;;  %v9238_v8 = vcombine.high %v63_v4, %v67_v54  ;;  %v75_v10 = vld [vmem:[%s11049_s0 + $0x178] sm:$0xff] }
  0x99   :  { %6964 = vmatprep.subr.bf16.mxu1 %v8102_v11  ;;  %v8133_v11 = vld [vmem:[%s11050_s1 + $0x4e0] ss:$12 sps:$4 sm:$0xff]  }
  0x9a   :  { %1769 = vmatmul.mubr.bf16.gmra.mrb[12].mxu0 %v8872_v12  ;;  %2204 = vmatmul.mubr.bf16.gmra.mrb[60].mxu1 %v9072_v15  ;;  %v74_v12 = vld [vmem:[%s11049_s0 + $0x170] sm:$0xff] }
  0x9b   :  { %1812 = vmatpush1.bf16.msra.mxu0 %v8079_v13  ;;  %2211 = vmatprep.mubr.bf16.mxu1 %v9077_v17  ;;  %v9112_v28 = vcombine.high %v70_v21, %v74_v12  ;;  %v9136_v35 = vcombine.low %v70_v21, %v74_v12  ;;  %v9262_v13 = vcombine.low %v63_v4, %v67_v54  ;;  %v8147_v21 = vld [vmem:[%s11050_s1 + $0x544] ss:$12 sps:$4 sm:$0xff]   ;;  %v8150_v12 = vld [vmem:[%s11050_s1 + $0x55c] ss:$12 sps:$4 sm:$0xff]  }
  0x9c   :  { %1813 = vmatprep.subr.bf16.mxu0 %v8086_v16  ;;  %6965 = vmatpush3.bf16.msra.mxu1 %v8103_v2  ;;  %v8136_v2 = vld [vmem:[%s11050_s1 + $0x4f8] ss:$12 sps:$4 sm:$0xff]  }
  0x9d   :  { %1778 = vmatprep.mubr.bf16.mxu0 %v8877_v14  ;;  %6966 = vmatprep.subr.bf16.mxu1 %v8107_v19  ;;  %v8094_v14 = vld [vmem:[%s11050_s1 + $0x3d8] ss:$12 sps:$4 sm:$0xff]  }
  0x9e   :  { %v8144_v19 = vld [vmem:[%s11050_s1 + $0x52c] ss:$12 sps:$4 sm:$0xff]  }
  0x9f   :  { %1814 = vmatpush1.bf16.msra.mxu0 %v8084_v18  ;;  %v8141_v18 = vld [vmem:[%s11050_s1 + $0x514] ss:$12 sps:$4 sm:$0xff]  }
  0xa0   :  { %1815 = vmatprep.subr.bf16.mxu0 %v8091_v20  ;;  %6967 = vmatpush3.bf16.msra.mxu1 %v8108_v22  ;;  %v8153_v22 = vld [vmem:[%s11050_s1 + $0x574] ss:$12 sps:$4 sm:$0xff]  }
  0xa2   :  { %1779 = vmatmul.mubr.bf16.gmra.mrb[16].mxu0 %v8910_v24  ;;  %2212 = vmatmul.mubr.bf16.gmra.mrb[64].mxu1 %v9107_v25  ;;  %v35_v24 = vld [vmem:[%s11049_s0 + $0x38] sm:$0xff] }
  0xa3   :  { %1816 = vmatpush1.bf16.msra.mxu0 %v8089_v23  ;;  %2219 = vmatprep.mubr.bf16.mxu1 %v9112_v28  ;;  %v9138_v36 = vcombine.high %v31_v30, %v35_v24  ;;  %v9162_v45 = vcombine.low %v31_v30, %v35_v24  ;;  %v8156_v23 = vld [vmem:[%s11050_s1 + $0x58c] ss:$12 sps:$4 sm:$0xff]   ;;  %v8165_v30 = vld [vmem:[%s11050_s1 + $0x5d4] ss:$12 sps:$4 sm:$0xff]   ;;  %v8163_v24 = vld [vmem:[%s11050_s1 + $0x5d0] ss:$12 sps:$4 sm:$0xff]  }
  0xa4   :  { %1817 = vmatprep.subr.bf16.mxu0 %v8096_v27  ;;  %1788 = vmatprep.mubr.bf16.mxu0 %v8915_v26  ;;  %v39_v26 = vld [vmem:[%s11049_s0 + $0x58] sm:$0xff]  ;;  %v8154_v27 = vld [vmem:[%s11050_s1 + $0x588] ss:$12 sps:$4 sm:$0xff]  }
  0xa5   :  { %v9164_v46 = vcombine.high %v39_v26, %v43_v41  ;;  %v9186_v51 = vcombine.low %v39_v26, %v43_v41 }
  0xa7   :  { %1818 = vmatpush1.bf16.msra.mxu0 %v8094_v14  ;;  %v8162_v14 = vld [vmem:[%s11050_s1 + $0x5bc] ss:$12 sps:$4 sm:$0xff]  }
  0xa8   :  { %1819 = vmatprep.subr.bf16.mxu0 %v8101_v29  ;;  %v8160_v29 = vld [vmem:[%s11050_s1 + $0x5b8] ss:$12 sps:$4 sm:$0xff]  }
  0xaa   :  { %1789 = vmatmul.mubr.bf16.gmra.mrb[20].mxu0 %v8934_v32  ;;  %2220 = vmatmul.mubr.bf16.gmra.mrb[68].mxu1 %v9136_v35  ;;  %v8114_v32 = vld [vmem:[%s11050_s1 + $0x43c] ss:$12 sps:$4 sm:$0xff]  }
  0xab   :  { %1820 = vmatpush1.bf16.msra.mxu0 %v8099_v31  ;;  %2260 = vmatprep.mubr.bf16.mxu1 %v9138_v36  ;;  %v8168_v31 = vld [vmem:[%s11050_s1 + $0x5ec] ss:$12 sps:$4 sm:$0xff]  }
  0xac   :  { %1821 = vmatprep.subr.bf16.mxu0 %v8106_v33  ;;  %1831 = vmatprep.mubr.bf16.mxu0 %v8939_v34  ;;  %v47_v34 = vld [vmem:[%s11049_s0 + $0x98] sm:$0xff] }
  0xad   :  { %v9188_v53 = vcombine.high %v47_v34, %v51_v39  ;;  %v9210_v61 = vcombine.low %v47_v34, %v51_v39 }
  0xaf   :  { %1822 = vmatpush1.bf16.msra.mxu0 %v8104_v37 }
  0xb0   :  { %1823 = vmatprep.subr.bf16.mxu0 %v8111_v38  ;;  %v8166_v38 = vld [vmem:[%s11050_s1 + $0x5e8] ss:$12 sps:$4 sm:$0xff]  }
  0xb2   :  { %2261 = vmatmul.mubr.bf16.vlgmr.msra.gmra.mrb[72].mxu1 %v9162_v45 }
  0xb3   :  { %1824 = vmatpush1.bf16.msra.mxu0 %v8109_v43  ;;  %2268 = vmatprep.mubr.bf16.mxu1 %v9164_v46 }
  0xb4   :  { %1825 = vmatprep.subr.bf16.mxu0 %v8114_v32 }
  0xb7   :  { %1826 = vmatpush1.bf16.msra.mxu0 %v8112_v47 }
  0xb8   :  { %1827 = vmatprep.subr.bf16.mxu0 %v8117_v48 }
  0xba   :  { %2269 = vmatmul.mubr.bf16.gmra.mrb[76].mxu1 %v9186_v51 }
  0xbb   :  { %1828 = vmatpush1.bf16.msra.mxu0 %v8115_v49  ;;  %2276 = vmatprep.mubr.bf16.mxu1 %v9188_v53 }
  0xbc   :  { %1829 = vmatprep.subr.bf16.mxu0 %v8120_v50 }
  0xbf   :  { %1830 = vmatpush1.bf16.msra.mxu0 %v8118_v56 }
  0xc0   :  { %1892 = vmatprep.subr.bf16.mxu0 %v8123_v42 }
  0xc2   :  { %1832 = vmatmul.mubr.bf16.vlgmr.msra.gmra.mrb[0].mxu0 %v8955_v40  ;;  %2277 = vmatmul.mubr.bf16.gmra.mrb[80].mxu1 %v9210_v61  ;;  %v8127_v40 = vld [vmem:[%s11050_s1 + $0x4b0] ss:$12 sps:$4 sm:$0xff]  }
  0xc3   :  { %1893 = vmatpush1.bf16.msra.mxu0 %v8121_v60  ;;  %2284 = vmatprep.mubr.bf16.mxu1 %v9212_v62 }
  0xc4   :  { %1894 = vmatprep.subr.bf16.mxu0 %v8126_v52  ;;  %1841 = vmatprep.mubr.bf16.mxu0 %v8963_v44  ;;  %v71_v44 = vld [vmem:[%s11049_s0 + $0x158] sm:$0xff] }
  0xc5   :  { %v9264_v16 = vcombine.high %v71_v44, %v75_v10  ;;  %v9282_v20 = vcombine.low %v71_v44, %v75_v10 }
  0xc7   :  { %1895 = vmatpush1.bf16.msra.mxu0 %v8124_v63 }
  0xc8   :  { %1896 = vmatprep.subr.bf16.mxu0 %v8129_v1 }
  0xca   :  { %1842 = vmatmul.mubr.bf16.gmra.mrb[4].mxu0 %v8996_v55  ;;  %2285 = vmatmul.mubr.bf16.gmra.mrb[84].mxu1 %v9236_v7  ;;  %v8138_v55 = vld [vmem:[%s11050_s1 + $0x4fc] ss:$12 sps:$4 sm:$0xff]  }
  0xcb   :  { %1897 = vmatpush1.bf16.msra.mxu0 %v8127_v40  ;;  %2292 = vmatprep.mubr.bf16.mxu1 %v9238_v8 }
  0xcc   :  { %1898 = vmatprep.subr.bf16.mxu0 %v8132_v6  ;;  %1851 = vmatprep.mubr.bf16.mxu0 %v9001_v57  ;;  %v8139_v57 = vld [vmem:[%s11050_s1 + $0x510] ss:$12 sps:$4 sm:$0xff]  }
  0xcf   :  { %1899 = vmatpush1.bf16.msra.mxu0 %v8130_v0 }
  0xd0   :  { %1900 = vmatprep.subr.bf16.mxu0 %v8135_v9 }
  0xd2   :  { %1852 = vmatmul.mubr.bf16.gmra.mrb[8].mxu0 %v9034_v3  ;;  %2293 = vmatmul.mubr.bf16.gmra.mrb[88].mxu1 %v9262_v13  ;;  %v8142_v3 = vld [vmem:[%s11050_s1 + $0x528] ss:$12 sps:$4 sm:$0xff]  }
  0xd3   :  { %1901 = vmatpush1.bf16.msra.mxu0 %v8133_v11  ;;  %2300 = vmatprep.mubr.bf16.mxu1 %v9264_v16 }
  0xd4   :  { %1902 = vmatprep.subr.bf16.mxu0 %v8138_v55  ;;  %1861 = vmatprep.mubr.bf16.mxu0 %v9039_v5  ;;  %v8145_v5 = vld [vmem:[%s11050_s1 + $0x540] ss:$12 sps:$4 sm:$0xff]  }
  0xd7   :  { %1903 = vmatpush1.bf16.msra.mxu0 %v8136_v2 }
  0xd8   :  { %1904 = vmatprep.subr.bf16.mxu0 %v8141_v18 }
  0xda   :  { %1862 = vmatmul.mubr.bf16.gmra.mrb[12].mxu0 %v9072_v15  ;;  %2301 = vmatmul.mubr.bf16.gmra.mrb[92].mxu1 %v9282_v20  ;;  %v8148_v15 = vld [vmem:[%s11050_s1 + $0x558] ss:$12 sps:$4 sm:$0xff]  }
  0xdb   :  { %1905 = vmatpush1.bf16.msra.mxu0 %v8139_v57  ;;  %1871 = vmatprep.mubr.bf16.mxu0 %v9077_v17  ;;  %v8151_v17 = vld [vmem:[%s11050_s1 + $0x570] ss:$12 sps:$4 sm:$0xff]  }
  0xdc   :  { %1906 = vmatprep.subr.bf16.mxu0 %v8144_v19 }
  0xdf   :  { %1907 = vmatpush1.bf16.msra.mxu0 %v8142_v3 }
  0xe0   :  { %1908 = vmatprep.subr.bf16.mxu0 %v8147_v21 }
  0xe2   :  { %1872 = vmatmul.mubr.bf16.gmra.mrb[16].mxu0 %v9107_v25  ;;  %v8159_v25 = vld [vmem:[%s11050_s1 + $0x5a4] ss:$12 sps:$4 sm:$0xff]  }
  0xe3   :  { %1909 = vmatpush1.bf16.msra.mxu0 %v8145_v5  ;;  %1881 = vmatprep.mubr.bf16.mxu0 %v9112_v28  ;;  %v8157_v28 = vld [vmem:[%s11050_s1 + $0x5a0] ss:$12 sps:$4 sm:$0xff]  }
  0xe4   :  { %1910 = vmatprep.subr.bf16.mxu0 %v8150_v12 }
  0xe7   :  { %1911 = vmatpush1.bf16.msra.mxu0 %v8148_v15 }
  0xe8   :  { %1912 = vmatprep.subr.bf16.mxu0 %v8153_v22 }
  0xea   :  { %1882 = vmatmul.mubr.bf16.gmra.mrb[20].mxu0 %v9136_v35 }
  0xeb   :  { %1913 = vmatpush1.bf16.msra.mxu0 %v8151_v17  ;;  %1924 = vmatprep.mubr.bf16.mxu0 %v9138_v36 }
  0xec   :  { %1914 = vmatprep.subr.bf16.mxu0 %v8156_v23 }
  0xef   :  { %1915 = vmatpush1.bf16.msra.mxu0 %v8154_v27 }
  0xf0   :  { %1916 = vmatprep.subr.bf16.mxu0 %v8159_v25 }
  0xf3   :  { %1917 = vmatpush1.bf16.msra.mxu0 %v8157_v28 }
  0xf4   :  { %1918 = vmatprep.subr.bf16.mxu0 %v8162_v14 }
  0xf5   :  { %v6812_v33 = vpop.f32.mrb[0].mxu1 }
  0xf6   :  { %v6813_v35 = vpop.f32.mrb[1].mxu1 }
  0xf7   :  { %1919 = vmatpush1.bf16.msra.mxu0 %v8160_v29  ;;  %v6814_v36 = vadd.f32 %v6813_v35, %v6812_v33  ;;  %v6815_v37 = vpop.f32.mrb[2].mxu1 }
  0xf8   :  { %1920 = vmatprep.subr.bf16.mxu0 %v8165_v30  ;;  %v6816_v26 = vpop.f32.mrb[3].mxu1 }
  0xf9   :  { %v6817_v41 = vadd.f32 %v6816_v26, %v6815_v37 }
  0xfb   :  { %1921 = vmatpush1.bf16.msra.mxu0 %v8163_v24 }
  0xfc   :  { %1922 = vmatprep.subr.bf16.mxu0 %v8168_v31 }
  0xfd   :  { %v6818_v43 = vpop.f32.mrb[4].mxu1 }
  0xfe   :  { %v6819_v32 = vpop.f32.mrb[5].mxu1 }
  0xff   :  { %1923 = vmatpush1.bf16.msra.mxu0 %v8166_v38  ;;  %v6820_v47 = vadd.f32 %v6819_v32, %v6818_v43  ;;  %v6821_v48 = vpop.f32.mrb[6].mxu1 }
 0x100   :  { %v6822_v34 = vpop.f32.mrb[7].mxu1 }
 0x101   :  { %v6823_v39 = vadd.f32 %v6822_v34, %v6821_v48 }
 0x102   :  { %1925 = vmatmul.mubr.bf16.vlgmr.msra.gmra.mrb[0].mxu0 %v9162_v45 }
 0x103   :  { %1934 = vmatprep.mubr.bf16.mxu0 %v9164_v46  ;;  %v334_v46 = vlaneseq }
 0x105   :  { %v6824_v49 = vpop.f32.mrb[8].mxu1  ;;  %v9348_v9 = vshrl.u32 %v334_v46, 7 }
 0x106   :  { %v6825_v50 = vpop.f32.mrb[9].mxu1 }
 0x107   :  { %v6826_v56 = vadd.f32 %v6825_v50, %v6824_v49  ;;  %v6827_v42 = vpop.f32.mrb[10].mxu1 }
 0x108   :  { %v6828_v58 = vpop.f32.mrb[11].mxu1 }
 0x109   :  { %v6829_v59 = vadd.f32 %v6828_v58, %v6827_v42 }
 0x10a   :  { %1935 = vmatmul.mubr.bf16.gmra.mrb[4].mxu0 %v9186_v51 }
 0x10b   :  { %1944 = vmatprep.mubr.bf16.mxu0 %v9188_v53 }
 0x10d   :  { %v6830_v60 = vpop.f32.mrb[12].mxu1 }
 0x10e   :  { %v6831_v52 = vpop.f32.mrb[13].mxu1 }
 0x10f   :  { %v6832_v63 = vadd.f32 %v6831_v52, %v6830_v60  ;;  %v6833_v1 = vpop.f32.mrb[14].mxu1 }
 0x110   :  { %v6834_v4 = vpop.f32.mrb[15].mxu1 }
 0x111   :  { %v6835_v45 = vadd.f32 %v6834_v4, %v6833_v1 }
 0x112   :  { %1945 = vmatmul.mubr.bf16.gmra.mrb[8].mxu0 %v9210_v61  ;;  %v9355_v61 = vld [vmem:[%s11051_s2] sm:$0x7] }
 0x113   :  { %1954 = vmatprep.mubr.bf16.mxu0 %v9212_v62  ;;  %v344_v62 = vsub.s32 2, %v9348_v9 }
 0x115   :  { %v6836_v54 = vpop.f32.mrb[16].mxu1  ;;  %v345_v18 = vrot.slane %v9355_v61, %v344_v62 }
 0x116   :  { %v6837_v40 = vpop.f32.mrb[17].mxu1 }
 0x117   :  { %v6838_v6 = vadd.f32 %v6837_v40, %v6836_v54  ;;  %v6839_v0 = vpop.f32.mrb[18].mxu1  ;;  %v2023_v3 = vadd.f32 %v6817_v41, %v345_v18  ;;  %v2028_v23 = vadd.f32 %v6820_v47, %v345_v18  ;;  %v2031_v25 = vadd.f32 %v6823_v39, %v345_v18 }
 0x118   :  { %v6840_v51 = vpop.f32.mrb[19].mxu1  ;;  %v2036_v31 = vadd.f32 %v6826_v56, %v345_v18 }
 0x119   :  { %v6841_v53 = vadd.f32 %v6840_v51, %v6839_v0 }
 0x11a   :  { %1955 = vmatmul.mubr.bf16.gmra.mrb[12].mxu0 %v9236_v7 }
 0x11b   :  { %1964 = vmatprep.mubr.bf16.mxu0 %v9238_v8  ;;  %v2020_v8 = vadd.f32 %v6814_v36, %v345_v18  ;;  %v2039_v36 = vadd.f32 %v6829_v59, %v345_v18 }
 0x11d   :  { %v6842_v44 = vpop.f32.mrb[20].mxu1 }
 0x11e   :  { %v6843_v10 = vpop.f32.mrb[21].mxu1 }
 0x11f   :  { %v6844_v11 = vadd.f32 %v6843_v10, %v6842_v44  ;;  %v6845_v55 = vpop.f32.mrb[22].mxu1 }
 0x120   :  { %v6846_v2 = vpop.f32.mrb[23].mxu1 }
 0x121   :  { %v6847_v7 = vadd.f32 %v6846_v2, %v6845_v55 }
 0x122   :  { %1965 = vmatmul.mubr.bf16.gmra.mrb[16].mxu0 %v9262_v13 }
 0x123   :  { %1974 = vmatprep.mubr.bf16.mxu0 %v9264_v16 }
 0x125   :  { %v6864_v57 = vpop.f32.mrb[24].mxu1 }
 0x126   :  { %v6865_v19 = vpop.f32.mrb[25].mxu1 }
 0x127   :  { %v6866_v21 = vadd.f32 %v6865_v19, %v6864_v57  ;;  %v6867_v5 = vpop.f32.mrb[26].mxu1 }
 0x128   :  { %v6868_v12 = vpop.f32.mrb[27].mxu1 }
 0x129   :  { %v2101_v15 = vadd.f32 %v6866_v21, %v2020_v8  ;;  %v6869_v22 = vadd.f32 %v6868_v12, %v6867_v5 }
 0x12a   :  { %1975 = vmatmul.mubr.bf16.gmra.mrb[20].mxu0 %v9282_v20 }
 0x12b   :  { %v2104_v17 = vadd.f32 %v6869_v22, %v2023_v3 }
 0x12d   :  { %v6870_v27 = vpop.f32.mrb[28].mxu1 }
 0x12e   :  { %v6871_v13 = vpop.f32.mrb[29].mxu1 }
 0x12f   :  { %v6872_v28 = vadd.f32 %v6871_v13, %v6870_v27  ;;  %v6873_v14 = vpop.f32.mrb[30].mxu1 }
 0x130   :  { %v6874_v29 = vpop.f32.mrb[31].mxu1 }
 0x131   :  { %v2109_v16 = vadd.f32 %v6872_v28, %v2028_v23  ;;  %v6875_v30 = vadd.f32 %v6874_v29, %v6873_v14 }
 0x133   :  { %v2112_v24 = vadd.f32 %v6875_v30, %v2031_v25 }
 0x135   :  { %v6876_v33 = vpop.f32.mrb[32].mxu1 }
 0x136   :  { %v6877_v35 = vpop.f32.mrb[33].mxu1 }
 0x137   :  { %v6878_v37 = vadd.f32 %v6877_v35, %v6876_v33  ;;  %v6879_v38 = vpop.f32.mrb[34].mxu1 }
 0x138   :  { %v6880_v20 = vpop.f32.mrb[35].mxu1 }
 0x139   :  { %v2117_v26 = vadd.f32 %v6878_v37, %v2036_v31  ;;  %v6881_v41 = vadd.f32 %v6880_v20, %v6879_v38 }
 0x13b   :  { %v2120_v43 = vadd.f32 %v6881_v41, %v2039_v36 }
 0x13c   :  { %12 = vsyncpa [#allocation3], 0  ;;  %v2044_v32 = vadd.f32 %v6832_v63, %v345_v18  ;;  %v2047_v34 = vadd.f32 %v6835_v45, %v345_v18  ;;  %v2052_v59 = vadd.f32 %v6838_v6, %v345_v18  ;;  %v2055_v1 = vadd.f32 %v6841_v53, %v345_v18  ;;  %v8171_v38 = vld [vmem:[%s11052_s3 + $0xe8] sm:$0xff]   ;;  %s8402_s28 = smov 96   ;;  %s8404_s22 = smov [#allocation2]  }
 0x13d   :  { %v6882_v47 = vpop.f32.mrb[36].mxu1  ;;  %v2060_v45 = vadd.f32 %v6844_v11, %v345_v18  ;;  %v2063_v44 = vadd.f32 %v6847_v7, %v345_v18  ;;  %vm8403_vm0 = vmmov 0   ;;  %vm2587_vm1 = vcmask 523264  }
 0x13e   :  { %v6883_v48 = vpop.f32.mrb[37].mxu1  ;;  %vm4825_vm2 = vcmask 1040384   ;;  %vm2880_vm3 = vcmask 785408   ;;  %vm5950_vm4 = vcmask 9216  }
 0x13f   :  { %v6884_v39 = vadd.f32 %v6883_v48, %v6882_v47  ;;  %v6885_v49 = vpop.f32.mrb[38].mxu1 }
 0x140   :  { %v6886_v50 = vpop.f32.mrb[39].mxu1 }
 0x141   :  { %v9362_v42 = vadd.f32 %v6884_v39, %v2044_v32  ;;  %v6887_v56 = vadd.f32 %v6886_v50, %v6885_v49  ;;  %v8174_v39 = vld [vmem:[%s11052_s3 + $0xb0] sm:$0xff]  }
 0x143   :  { %v9364_v58 = vadd.f32 %v6887_v56, %v2047_v34  ;;  %v8173_v34 = vld [vmem:[%s11052_s3 + $0xf0] sm:$0xff]  }
 0x145   :  { %v6888_v60 = vpop.f32.mrb[40].mxu1 }
 0x146   :  { %v6889_v52 = vpop.f32.mrb[41].mxu1 }
 0x147   :  { %v6890_v4 = vadd.f32 %v6889_v52, %v6888_v60  ;;  %v6891_v46 = vpop.f32.mrb[42].mxu1 }
 0x148   :  { %v6892_v54 = vpop.f32.mrb[43].mxu1 }
 0x149   :  { %v9366_v40 = vadd.f32 %v6890_v4, %v2052_v59  ;;  %v6893_v63 = vadd.f32 %v6892_v54, %v6891_v46  ;;  %v8176_v59 = vld [vmem:[%s11052_s3 + $0xb8] sm:$0xff]   ;;  %v8177_v46 = vld [vmem:[%s11052_s3 + $0x100] sm:$0xff]  }
 0x14a   :  { %v8178_v54 = vld [vmem:[%s11052_s3 + $0xc0] sm:$0xff]  }
 0x14b   :  { %v9368_v0 = vadd.f32 %v6893_v63, %v2055_v1 }
 0x14d   :  { %v6894_v51 = vpop.f32.mrb[44].mxu1 }
 0x14e   :  { %v6895_v62 = vpop.f32.mrb[45].mxu1 }
 0x14f   :  { %v6896_v10 = vadd.f32 %v6895_v62, %v6894_v51  ;;  %v6897_v55 = vpop.f32.mrb[46].mxu1  ;;  %v8180_v62 = vld [vmem:[%s11052_s3 + $0xc8] sm:$0xff]  }
 0x150   :  { %v6898_v2 = vpop.f32.mrb[47].mxu1 }
 0x151   :  { %v9370_v8 = vadd.f32 %v6896_v10, %v2060_v45  ;;  %v6899_v6 = vadd.f32 %v6898_v2, %v6897_v55 }
 0x153   :  { %v9372_v57 = vadd.f32 %v6899_v6, %v2063_v44  ;;  %v8181_v6 = vld [vmem:[%s11052_s3 + $0x110] sm:$0xff]  }
 0x155   :  { %v6916_v53 = vpop.f32.mrb[48].mxu1 }
 0x156   :  { %v6917_v19 = vpop.f32.mrb[49].mxu1 }
 0x157   :  { %v6918_v3 = vadd.f32 %v6917_v19, %v6916_v53  ;;  %v6919_v21 = vpop.f32.mrb[50].mxu1  ;;  %v8182_v53 = vld [vmem:[%s11052_s3 + $0xd0] sm:$0xff]  }
 0x158   :  { %v6920_v5 = vpop.f32.mrb[51].mxu1 }
 0x159   :  { %v9374_v12 = vadd.f32 %v6918_v3, %v2101_v15  ;;  %v6921_v22 = vadd.f32 %v6920_v5, %v6919_v21  ;;  %v8184_v5 = vld [vmem:[%s11052_s3 + $0xd8] sm:$0xff]  }
 0x15b   :  { %v9376_v11 = vadd.f32 %v6921_v22, %v2104_v17  ;;  %v8169_v17 = vld [vmem:[%s11052_s3 + $0xe0] sm:$0xff]  }
 0x15c   :  { %7004 = vmatprep.subr.bf16.mxu1 %v8169_v17  ;;  %7058 = vmatprep.subr.bf16.mxu0 %v8169_v17 }
 0x15d   :  { %v6922_v23 = vpop.f32.mrb[52].mxu1 }
 0x15e   :  { %v6923_v18 = vpop.f32.mrb[53].mxu1 }
 0x15f   :  { %v6924_v7 = vadd.f32 %v6923_v18, %v6922_v23  ;;  %v6925_v27 = vpop.f32.mrb[54].mxu1 }
 0x160   :  { %v6926_v13 = vpop.f32.mrb[55].mxu1 }
 0x161   :  { %v9378_v25 = vadd.f32 %v6924_v7, %v2109_v16  ;;  %v6927_v28 = vadd.f32 %v6926_v13, %v6925_v27  ;;  %v8170_v16 = vld [vmem:[%s11052_s3 + $0xa0] sm:$0xff]   ;;  %v8401_v27 = vmov 0.0  }
 0x162   :  { %7005 = vmatpush3.bf16.msra.mxu1 %v8170_v16  ;;  %7059 = vmatpush3.bf16.msra.mxu0 %v8170_v16 }
 0x163   :  { %v9380_v14 = vadd.f32 %v6927_v28, %v2112_v24  ;;  %7006 = vmatprep.subr.bf16.mxu1 %v8171_v38  ;;  %7060 = vmatprep.subr.bf16.mxu0 %v8171_v38 }
 0x165   :  { %v6928_v29 = vpop.f32.mrb[56].mxu1 }
 0x166   :  { %v6929_v30 = vpop.f32.mrb[57].mxu1 }
 0x167   :  { %v6930_v31 = vadd.f32 %v6929_v30, %v6928_v29  ;;  %v6931_v33 = vpop.f32.mrb[58].mxu1 }
 0x168   :  { %v6932_v35 = vpop.f32.mrb[59].mxu1 }
 0x169   :  { %v9382_v15 = vadd.f32 %v6930_v31, %v2117_v26  ;;  %v6933_v36 = vadd.f32 %v6932_v35, %v6931_v33  ;;  %v8172_v26 = vld [vmem:[%s11052_s3 + $0xa8] sm:$0xff]  }
 0x16a   :  { %7007 = vmatpush3.bf16.msra.mxu1 %v8172_v26  ;;  %7061 = vmatpush3.bf16.msra.mxu0 %v8172_v26 }
 0x16b   :  { %v9390_v37 = vadd.f32 %v6933_v36, %v2120_v43  ;;  %7008 = vmatprep.subr.bf16.mxu1 %v8173_v34  ;;  %7062 = vmatprep.subr.bf16.mxu0 %v8173_v34 }
 0x16d   :  { %v6934_v24 = vpop.f32.mrb[60].mxu1 }
 0x16e   :  { %v6935_v20 = vpop.f32.mrb[61].mxu1  ;;  %7009 = vmatpush3.bf16.msra.mxu1 %v8174_v39  ;;  %7063 = vmatpush3.bf16.msra.mxu0 %v8174_v39 }
 0x16f   :  { %v6936_v41 = vadd.f32 %v6935_v20, %v6934_v24  ;;  %v6937_v32 = vpop.f32.mrb[62].mxu1 }
 0x170   :  { %v6938_v43 = vpop.f32.mrb[63].mxu1 }
 0x171   :  { %v9399_v47 = vadd.f32 %v6936_v41, %v9362_v42  ;;  %v6939_v48 = vadd.f32 %v6938_v43, %v6937_v32  ;;  %v8175_v42 = vld [vmem:[%s11052_s3 + $0xf8] sm:$0xff]  }
 0x172   :  { %7010 = vmatprep.subr.bf16.mxu1 %v8175_v42  ;;  %7064 = vmatprep.subr.bf16.mxu0 %v8175_v42 }
 0x173   :  { %v9408_v49 = vadd.f32 %v6939_v48, %v9364_v58  ;;  %7011 = vmatpush3.bf16.msra.mxu1 %v8176_v59  ;;  %7065 = vmatpush3.bf16.msra.mxu0 %v8176_v59  ;;  %v9461_v48 = vld [vmem:[%s11052_s3 + $0x40] sm:$0xff]  }
 0x174   :  { %7012 = vmatprep.subr.bf16.mxu1 %v8177_v46  ;;  %7066 = vmatprep.subr.bf16.mxu0 %v8177_v46 }
 0x175   :  { %v6940_v50 = vpop.f32.mrb[64].mxu1 }
 0x176   :  { %v6941_v56 = vpop.f32.mrb[65].mxu1 }
 0x177   :  { %v6942_v60 = vadd.f32 %v6941_v56, %v6940_v50  ;;  %v6943_v52 = vpop.f32.mrb[66].mxu1  ;;  %7013 = vmatpush3.bf16.msra.mxu1 %v8178_v54  ;;  %7067 = vmatpush3.bf16.msra.mxu0 %v8178_v54 }
 0x178   :  { %v6944_v58 = vpop.f32.mrb[67].mxu1 }
 0x179   :  { %v9417_v1 = vadd.f32 %v6942_v60, %v9366_v40  ;;  %v6945_v4 = vadd.f32 %v6944_v58, %v6943_v52  ;;  %v8179_v40 = vld [vmem:[%s11052_s3 + $0x108] sm:$0xff]  }
 0x17a   :  { %7014 = vmatprep.subr.bf16.mxu1 %v8179_v40  ;;  %7068 = vmatprep.subr.bf16.mxu0 %v8179_v40 }
 0x17b   :  { %v9426_v63 = vadd.f32 %v6945_v4, %v9368_v0  ;;  %7015 = vmatpush3.bf16.msra.mxu1 %v8180_v62  ;;  %7069 = vmatpush3.bf16.msra.mxu0 %v8180_v62 }
 0x17c   :  { %7016 = vmatprep.subr.bf16.mxu1 %v8181_v6  ;;  %7070 = vmatprep.subr.bf16.mxu0 %v8181_v6 }
 0x17d   :  { %v6946_v45 = vpop.f32.mrb[68].mxu1 }
 0x17e   :  { %v6947_v51 = vpop.f32.mrb[69].mxu1 }
 0x17f   :  { %v6948_v44 = vadd.f32 %v6947_v51, %v6946_v45  ;;  %v6949_v10 = vpop.f32.mrb[70].mxu1  ;;  %7017 = vmatpush3.bf16.msra.mxu1 %v8182_v53  ;;  %7071 = vmatpush3.bf16.msra.mxu0 %v8182_v53 }
 0x180   :  { %v6950_v0 = vpop.f32.mrb[71].mxu1 }
 0x181   :  { %v9435_v55 = vadd.f32 %v6948_v44, %v9370_v8  ;;  %v6951_v2 = vadd.f32 %v6950_v0, %v6949_v10  ;;  %v8183_v8 = vld [vmem:[%s11052_s3 + $0x118] sm:$0xff]  }
 0x182   :  { %7018 = vmatprep.subr.bf16.mxu1 %v8183_v8  ;;  %7072 = vmatprep.subr.bf16.mxu0 %v8183_v8 }
 0x183   :  { %v9444_v19 = vadd.f32 %v6951_v2, %v9372_v57  ;;  %7019 = vmatpush3.bf16.msra.mxu1 %v8184_v5  ;;  %7073 = vmatpush3.bf16.msra.mxu0 %v8184_v5 }
 0x184   :  { %7553 = vmatprep.subr.bf16.mxu1 %v8401_v27  ;;  %7085 = vmatprep.subr.bf16.mxu0 %v9461_v48 }
 0x185   :  { %v6968_v3 = vpop.f32.mrb[72].mxu1 }
 0x186   :  { %v6969_v21 = vpop.f32.mrb[73].mxu1 }
 0x187   :  { %v6970_v22 = vadd.f32 %v6969_v21, %v6968_v3  ;;  %v6971_v23 = vpop.f32.mrb[74].mxu1 }
 0x188   :  { %v6972_v57 = vpop.f32.mrb[75].mxu1 }
 0x189   :  { %v2263_v18 = vadd.f32 %v6970_v22, %v9374_v12  ;;  %v6973_v7 = vadd.f32 %v6972_v57, %v6971_v23 }
 0x18b   :  { %v2266_v13 = vadd.f32 %v6973_v7, %v9376_v11  ;;  %v2311_v16 = vmax.f32 %v2263_v18, 0.0 }
 0x18d   :  { %v6974_v28 = vpop.f32.mrb[76].mxu1 }
 0x18e   :  { %v6975_v29 = vpop.f32.mrb[77].mxu1 }
 0x18f   :  { %v6976_v30 = vadd.f32 %v6975_v29, %v6974_v28  ;;  %v6977_v31 = vpop.f32.mrb[78].mxu1 }
 0x190   :  { %v6978_v33 = vpop.f32.mrb[79].mxu1 }
 0x191   :  { %v2271_v35 = vadd.f32 %v6976_v30, %v9378_v25  ;;  %v6979_v36 = vadd.f32 %v6978_v33, %v6977_v31  ;;  %v2314_v25 = vmax.f32 %v2266_v13, 0.0 }
 0x193   :  { %v2274_v17 = vadd.f32 %v6979_v36, %v9380_v14  ;;  %v2317_v39 = vmax.f32 %v2271_v35, 0.0  ;;  %v336_v35 = vsub.s32 0, %v9348_v9 }
 0x195   :  { %v2320_v24 = vmax.f32 %v2274_v17, 0.0  ;;  %v6980_v38 = vpop.f32.mrb[80].mxu1 }
 0x196   :  { %v6981_v12 = vpop.f32.mrb[81].mxu1 }
 0x197   :  { %v2347_v20 = vmax.f32 %v2311_v16, %v2320_v24  ;;  %v6982_v26 = vadd.f32 %v6981_v12, %v6980_v38  ;;  %v6983_v41 = vpop.f32.mrb[82].mxu1  ;;  %v9478_v24 = vrot.slane %v9355_v61, %v336_v35 }
 0x198   :  { %v6984_v32 = vpop.f32.mrb[83].mxu1 }
 0x199   :  { %v2279_v11 = vadd.f32 %v6982_v26, %v9382_v15  ;;  %v6985_v43 = vadd.f32 %v6984_v32, %v6983_v41 }
 0x19b   :  { %v2323_v34 = vmax.f32 %v2279_v11, 0.0  ;;  %v2282_v14 = vadd.f32 %v6985_v43, %v9390_v37 }
 0x19d   :  { %v2350_v50 = vmax.f32 %v2314_v25, %v2323_v34  ;;  %v2326_v42 = vmax.f32 %v2282_v14, 0.0  ;;  %v6986_v56 = vpop.f32.mrb[84].mxu1 }
 0x19e   :  { %v6987_v59 = vpop.f32.mrb[85].mxu1 }
 0x19f   :  { %v2353_v60 = vmax.f32 %v2317_v39, %v2326_v42  ;;  %v6988_v52 = vadd.f32 %v6987_v59, %v6986_v56  ;;  %v6989_v15 = vpop.f32.mrb[86].mxu1 }
 0x1a0   :  { %v6990_v58 = vpop.f32.mrb[87].mxu1 }
 0x1a1   :  { %v2287_v4 = vadd.f32 %v6988_v52, %v9399_v47  ;;  %v6991_v46 = vadd.f32 %v6990_v58, %v6989_v15 }
 0x1a3   :  { %v2290_v54 = vadd.f32 %v6991_v46, %v9408_v49  ;;  %v2329_v2 = vmax.f32 %v2287_v4, 0.0 }
 0x1a5   :  { %v6992_v45 = vpop.f32.mrb[88].mxu1  ;;  %v2332_v57 = vmax.f32 %v2290_v54, 0.0 }
 0x1a6   :  { %v6993_v40 = vpop.f32.mrb[89].mxu1 }
 0x1a7   :  { %v6994_v51 = vadd.f32 %v6993_v40, %v6992_v45  ;;  %v6995_v37 = vpop.f32.mrb[90].mxu1 }
 0x1a8   :  { %v6996_v62 = vpop.f32.mrb[91].mxu1 }
 0x1a9   :  { %v2295_v44 = vadd.f32 %v6994_v51, %v9417_v1  ;;  %v6997_v10 = vadd.f32 %v6996_v62, %v6995_v37 }
 0x1ab   :  { %v2298_v0 = vadd.f32 %v6997_v10, %v9426_v63  ;;  %v2335_v1 = vmax.f32 %v2295_v44, 0.0 }
 0x1ad   :  { %v2338_v6 = vmax.f32 %v2298_v0, 0.0  ;;  %v6998_v53 = vpop.f32.mrb[92].mxu1 }
 0x1ae   :  { %v6999_v3 = vpop.f32.mrb[93].mxu1 }
 0x1af   :  { %v2356_v8 = vmax.f32 %v2329_v2, %v2338_v6  ;;  %v7000_v21 = vadd.f32 %v6999_v3, %v6998_v53  ;;  %v7001_v47 = vpop.f32.mrb[94].mxu1 }
 0x1b0   :  { %v7002_v5 = vpop.f32.mrb[95].mxu1 }
 0x1b1   :  { %v2365_v22 = vmax.f32 %v2347_v20, %v2356_v8  ;;  %v2303_v49 = vadd.f32 %v7000_v21, %v9435_v55  ;;  %v7003_v23 = vadd.f32 %v7002_v5, %v7001_v47  ;;  %v340_v55 = vsub.s32 1, %v9348_v9 }
 0x1b3   :  { %v2341_v18 = vmax.f32 %v2303_v49, 0.0  ;;  %v2306_v7 = vadd.f32 %v7003_v23, %v9444_v19  ;;  %v9481_v19 = vrot.slane %v9355_v61, %v340_v55 }
 0x1b5   :  { %v2359_v13 = vmax.f32 %v2332_v57, %v2341_v18  ;;  %v2344_v28 = vmax.f32 %v2306_v7, 0.0 }
 0x1b7   :  { %v2368_v63 = vmax.f32 %v2350_v50, %v2359_v13  ;;  %v2362_v29 = vmax.f32 %v2335_v1, %v2344_v28 }
 0x1b9   :  { %v9471_v30 = vpack.c.bf16 %v2368_v63, %v2365_v22  ;;  %v9473_v31 = vmax.f32 %v2353_v60, %v2362_v29 }
 0x1d5   :  { %v1926_v33 = vpop.f32.mrb[0].mxu0 }
 0x1d6   :  { %v1928_v36 = vpop.f32.mrb[1].mxu0  ;;  %v7813_v12 = vadd.f32 %v1926_v33, %v9478_v24 }
 0x1d7   :  { %v1930_v17 = vpop.f32.mrb[2].mxu0  ;;  %v7814_v26 = vadd.f32 %v1928_v36, %v9481_v19 }
 0x1d8   :  { %v1932_v16 = vpop.f32.mrb[3].mxu0  ;;  %v2309_v43 = vmax.f32 %v7813_v12, 0.0  ;;  %v7815_v39 = vadd.f32 %v1930_v17, %v9478_v24 }
 0x1d9   :  { %v2310_v34 = vmax.f32 %v7814_v26, 0.0  ;;  %v7816_v50 = vadd.f32 %v1932_v16, %v9481_v19 }
 0x1da   :  { %v2312_v46 = vmax.f32 %v7815_v39, 0.0 }
 0x1db   :  { %v2313_v51 = vmax.f32 %v7816_v50, 0.0 }
 0x1dd   :  { %v1936_v38 = vpop.f32.mrb[4].mxu0 }
 0x1de   :  { %v1938_v20 = vpop.f32.mrb[5].mxu0  ;;  %v7817_v59 = vadd.f32 %v1936_v38, %v9478_v24 }
 0x1df   :  { %v1940_v41 = vpop.f32.mrb[6].mxu0  ;;  %v7818_v15 = vadd.f32 %v1938_v20, %v9481_v19 }
 0x1e0   :  { %v7819_v32 = vadd.f32 %v1940_v41, %v9478_v24  ;;  %v1942_v11 = vpop.f32.mrb[7].mxu0  ;;  %v2315_v44 = vmax.f32 %v7817_v59, 0.0 }
 0x1e1   :  { %v7820_v9 = vadd.f32 %v1942_v11, %v9481_v19  ;;  %v2316_v2 = vmax.f32 %v7818_v15, 0.0 }
 0x1e2   :  { %v2318_v25 = vmax.f32 %v7819_v32, 0.0 }
 0x1e3   :  { %v2319_v14 = vmax.f32 %v7820_v9, 0.0 }
 0x1e4   :  { %v9488_v61 = vmax.f32 %v2309_v43, %v2318_v25 }
 0x1e5   :  { %v9491_v42 = vmax.f32 %v2310_v34, %v2319_v14  ;;  %v1946_v56 = vpop.f32.mrb[8].mxu0 }
 0x1e6   :  { %v7821_v60 = vadd.f32 %v1946_v56, %v9478_v24  ;;  %v1948_v52 = vpop.f32.mrb[9].mxu0 }
 0x1e7   :  { %v7822_v58 = vadd.f32 %v1948_v52, %v9481_v19  ;;  %v1950_v4 = vpop.f32.mrb[10].mxu0 }
 0x1e8   :  { %v2321_v54 = vmax.f32 %v7821_v60, 0.0  ;;  %v7823_v45 = vadd.f32 %v1950_v4, %v9478_v24  ;;  %v1952_v40 = vpop.f32.mrb[11].mxu0 }
 0x1e9   :  { %v2322_v37 = vmax.f32 %v7822_v58, 0.0  ;;  %v7824_v62 = vadd.f32 %v1952_v40, %v9481_v19 }
 0x1ea   :  { %v2348_v10 = vmax.f32 %v2312_v46, %v2321_v54  ;;  %v2324_v0 = vmax.f32 %v7823_v45, 0.0 }
 0x1eb   :  { %v2349_v6 = vmax.f32 %v2313_v51, %v2322_v37  ;;  %v2325_v53 = vmax.f32 %v7824_v62, 0.0 }
 0x1ec   :  { %v2351_v3 = vmax.f32 %v2315_v44, %v2324_v0  ;;  %v9526_v44 = vld [vmem:[%s11052_s3 + $0x120] sm:$0xff]   ;;  %v9535_v0 = vld [vmem:[%s11052_s3 + $0x128] sm:$0xff]  }
 0x1ed   :  { %v2352_v8 = vmax.f32 %v2316_v2, %v2325_v53  ;;  %v1956_v21 = vpop.f32.mrb[12].mxu0  ;;  %v9547_v2 = vld [vmem:[%s11052_s3 + $0x130] sm:$0xff]  }
 0x1ee   :  { %v1958_v47 = vpop.f32.mrb[13].mxu0  ;;  %v7825_v23 = vadd.f32 %v1956_v21, %v9478_v24 }
 0x1ef   :  { %v1960_v5 = vpop.f32.mrb[14].mxu0  ;;  %v7826_v18 = vadd.f32 %v1958_v47, %v9481_v19  ;;  %v9575_v47 = vld [vmem:[%s11052_s3] sm:$0xff]  }
 0x1f0   :  { %v1962_v22 = vpop.f32.mrb[15].mxu0  ;;  %v2327_v63 = vmax.f32 %v7825_v23, 0.0  ;;  %v7827_v36 = vadd.f32 %v1960_v5, %v9478_v24  ;;  %v9584_v5 = vld [vmem:[%s11052_s3 + $0x48] sm:$0xff]   ;;  %v9606_v23 = vld [vmem:[%s11052_s3 + $0x50] sm:$0xff]  }
 0x1f1   :  { %v2328_v33 = vmax.f32 %v7826_v18, 0.0  ;;  %v7828_v17 = vadd.f32 %v1962_v22, %v9481_v19 }
 0x1f2   :  { %v2330_v25 = vmax.f32 %v7827_v36, 0.0  ;;  %v4136_v36 = vrot.slane %v9471_v30, 5 }
 0x1f3   :  { %v2331_v50 = vmax.f32 %v7828_v17, 0.0  ;;  %v9670_v17 = vld [vmem:[%s11052_s3 + $0x68] sm:$0xff]  }
 0x1f5   :  { %v1966_v49 = vpop.f32.mrb[16].mxu0 }
 0x1f6   :  { %v1968_v57 = vpop.f32.mrb[17].mxu0  ;;  %v7829_v12 = vadd.f32 %v1966_v49, %v9478_v24  ;;  %v3448_v49 = vrot.slane %v9471_v30, 3 }
 0x1f7   :  { %v1970_v7 = vpop.f32.mrb[18].mxu0  ;;  %v7830_v32 = vadd.f32 %v1968_v57, %v9481_v19  ;;  %v3792_v57 = vrot.slane %v9471_v30, 4 }
 0x1f8   :  { %v7831_v1 = vadd.f32 %v1970_v7, %v9478_v24  ;;  %v1972_v13 = vpop.f32.mrb[19].mxu0  ;;  %v9617_v7 = vld [vmem:[%s11052_s3 + $0x10] sm:$0xff]  }
 0x1f9   :  { %v7832_v28 = vadd.f32 %v1972_v13, %v9481_v19  ;;  %v2334_v15 = vmax.f32 %v7830_v32, 0.0  ;;  %v9699_v32 = vld [vmem:[%s11052_s3 + $0x70] sm:$0xff]  }
 0x1fa   :  { %v2336_v29 = vmax.f32 %v7831_v1, 0.0  ;;  %v9626_v1 = vld [vmem:[%s11052_s3 + $0x58] sm:$0xff]  }
 0x1fb   :  { %v2337_v35 = vmax.f32 %v7832_v28, 0.0 }
 0x1fc   :  { %v2354_v55 = vmax.f32 %v2327_v63, %v2336_v29  ;;  %v9637_v63 = vld [vmem:[%s11052_s3 + $0x18] sm:$0xff]   ;;  %v9646_v29 = vld [vmem:[%s11052_s3 + $0x60] sm:$0xff]  }
 0x1fd   :  { %v2355_v16 = vmax.f32 %v2328_v33, %v2337_v35  ;;  %v1976_v38 = vpop.f32.mrb[20].mxu0 }
 0x1fe   :  { %v2363_v20 = vmax.f32 %v9488_v61, %v2354_v55  ;;  %v7833_v26 = vadd.f32 %v1976_v38, %v9478_v24  ;;  %v1978_v41 = vpop.f32.mrb[21].mxu0  ;;  %v2333_v61 = vmax.f32 %v7829_v12, 0.0  ;;  %v9661_v55 = vld [vmem:[%s11052_s3 + $0x20] sm:$0xff]  }
 0x1ff   :  { %v2364_v11 = vmax.f32 %v9491_v42, %v2355_v16  ;;  %v7834_v9 = vadd.f32 %v1978_v41, %v9481_v19  ;;  %v1980_v43 = vpop.f32.mrb[22].mxu0  ;;  %v4480_v16 = vrot.slane %v9471_v30, 6  ;;  %v9690_v41 = vpack.c.bf16 %v9473_v31, %v9473_v31 }
 0x200   :  { %v2339_v34 = vmax.f32 %v7833_v26, 0.0  ;;  %v7835_v14 = vadd.f32 %v1980_v43, %v9478_v24  ;;  %v1982_v39 = vpop.f32.mrb[23].mxu0  ;;  %v9713_v43 = vld [vmem:[%s11052_s3 + $0x30] sm:$0xff]  }
 0x201   :  { %v2340_v56 = vmax.f32 %v7834_v9, 0.0  ;;  %v7836_v59 = vadd.f32 %v1982_v39, %v9481_v19 }
 0x202   :  { %v2357_v60 = vmax.f32 %v2330_v25, %v2339_v34  ;;  %v2342_v52 = vmax.f32 %v7835_v14, 0.0  ;;  %v4833_v34 = vrot.slane %v9690_v41, 7  ;;  %v9723_v14 = vld [vmem:[%s11052_s3 + $0x78] sm:$0xff]  }
 0x203   :  { %v2358_v58 = vmax.f32 %v2331_v50, %v2340_v56  ;;  %v2343_v4 = vmax.f32 %v7836_v59, 0.0  ;;  %v4832_v50 = vrot.slane %v9471_v30, 7  ;;  %v9737_v59 = vld [vmem:[%s11052_s3 + $0x38] sm:$0xff]  }
 0x204   :  { %v2366_v46 = vmax.f32 %v2348_v10, %v2357_v60  ;;  %v2360_v42 = vmax.f32 %v2333_v61, %v2342_v52  ;;  %v2464_v10 = vrot.slane %v9471_v30, 1  ;;  %v8205_v60 = vld [vmem:[%s11052_s3 + $0x80] sm:$0xff]  }
 0x205   :  { %v2367_v54 = vmax.f32 %v2349_v6, %v2358_v58  ;;  %v2361_v45 = vmax.f32 %v2334_v15, %v2343_v4  ;;  %v3104_v6 = vrot.slane %v9471_v30, 2  ;;  %v9742_v61 = vsel %vm4825_vm2, %v4832_v50, %v4833_v34  ;;  %v8206_v15 = vld [vmem:[%s11052_s3 + $0x88] sm:$0xff]   ;;  %v8227_v34 = vld [vmem:[%s11052_s3 + $0x178] sm:$0xff]  }
 0x206   :  { %v9513_v40 = vpack.c.bf16 %v2366_v46, %v2363_v20  ;;  %v9515_v51 = vmax.f32 %v2351_v3, %v2360_v42  ;;  %v9560_v3 = vld [vmem:[%s11052_s3 + $0x138] sm:$0xff]   ;;  %v9685_v20 = vld [vmem:[%s11052_s3 + $0x28] sm:$0xff]   ;;  %v5517_v4 = vrot.slane %v9690_v41, 1  ;;  %v8207_v46 = vld [vmem:[%s11052_s3 + $0x90] sm:$0xff]  }
 0x207   :  { %v9517_v24 = vpack.c.bf16 %v2367_v54, %v2364_v11  ;;  %v9519_v37 = vmax.f32 %v2352_v8, %v2361_v45  ;;  %v8208_v42 = vld [vmem:[%s11052_s3 + $0x98] sm:$0xff]  }
 0x208   :  { %v2462_v19 = vrot.slane %v9513_v40, 1  ;;  %v3102_v21 = vrot.slane %v9513_v40, 2  ;;  %v3446_v22 = vrot.slane %v9513_v40, 3  ;;  %v3790_v28 = vrot.slane %v9513_v40, 4 }
 0x209   :  { %v2463_v62 = vrot.slane %v9517_v24, 1  ;;  %v3103_v53 = vrot.slane %v9517_v24, 2  ;;  %v3447_v8 = vrot.slane %v9517_v24, 3  ;;  %v3791_v18 = vrot.slane %v9517_v24, 4 }
 0x20a   :  { %2874 = vrot.lane.b32.xlu1 %v2462_v19, %s8402_s28  ;;  %v4135_v13 = vrot.slane %v9517_v24, 5  ;;  %v4134_v33 = vrot.slane %v9513_v40, 5  ;;  %v9654_v35 = vpack.c.bf16 %v9519_v37, %v9519_v37  ;;  %v9678_v38 = vpack.c.bf16 %v9515_v51, %v9515_v51 }
 0x20b   :  { %2876 = vrot.lane.b32.xlu0 %v2463_v62, %s8402_s28  ;;  %2623 = vmatprep.mubr.bf16.mxu1 %v2463_v62  ;;  %v4479_v12 = vrot.slane %v9517_v24, 6  ;;  %v4829_v11 = vrot.slane %v9517_v24, 7  ;;  %v4478_v9 = vrot.slane %v9513_v40, 6  ;;  %v4826_v39 = vrot.slane %v9513_v40, 7 }
 0x20c   :  { %2624 = vmatmul.mubr.bf16.vlgmr.msra.gmra.mrb[96].mxu1 %v2462_v19  ;;  %v4830_v26 = vrot.slane %v9654_v35, 7  ;;  %v4827_v25 = vrot.slane %v9678_v38, 7  ;;  %v5516_v52 = vrot.slane %v9654_v35, 1  ;;  %v5515_v58 = vrot.slane %v9678_v38, 1 }
 0x20d   :  { %7554 = vmatpush3.bf16.msra.mxu1 %v9526_v44  ;;  %7561 = vmatprep.mubr.msk.bf16.mxu1 %vm8403_vm0, %v8401_v27 }
 0x20e   :  { %2970 = vrot.lane.b32.xlu1 %v9517_v24, %s8402_s28  ;;  %7555 = vmatprep.subr.bf16.mxu1 %v8401_v27  ;;  %v9707_v31 = vsel %vm4825_vm2, %v4829_v11, %v4830_v26  ;;  %v9732_v56 = vsel %vm4825_vm2, %v4826_v39, %v4827_v25  ;;  %v8223_v26 = vld [vmem:[%s11052_s3 + $0x1b0] sm:$0xff]  }
 0x20f   :  { %2878 = vrot.lane.b32.xlu0 %v2464_v10, %s8402_s28  ;;  %v8224_v11 = vld [vmem:[%s11052_s3 + $0x170] sm:$0xff]  }
 0x210   :  { %v8225_v25 = vld [vmem:[%s11052_s3 + $0x1d0] sm:$0xff]  }
 0x211   :  { %7556 = vmatpush3.bf16.msra.mxu1 %v9535_v0 }
 0x212   :  { %2968 = vrot.lane.b32.xlu1 %v9513_v40, %s8402_s28  ;;  %7557 = vmatprep.subr.bf16.mxu1 %v8401_v27 }
 0x213   :  { %2972 = vrot.lane.b32.xlu0 %v9471_v30, %s8402_s28 }
 0x215   :  { %7558 = vmatpush3.bf16.msra.mxu1 %v9547_v2 }
 0x216   :  { %3315 = vrot.lane.b32.xlu1 %v3104_v6, %s8402_s28  ;;  %7559 = vmatprep.subr.bf16.mxu1 %v8401_v27 }
 0x217   :  { %3313 = vrot.lane.b32.xlu0 %v3103_v53, %s8402_s28 }
 0x219   :  { %7560 = vmatpush3.bf16.msra.mxu1 %v9560_v3 }
 0x21a   :  { %3657 = vrot.lane.b32.xlu1 %v3447_v8, %s8402_s28  ;;  %7031 = vmatprep.subr.bf16.mxu1 %v9461_v48  ;;  %v9597_v48 = vld [vmem:[%s11052_s3 + $0x8] sm:$0xff]  }
 0x21b   :  { %3311 = vrot.lane.b32.xlu0 %v3102_v21, %s8402_s28 }
 0x21c   :  { %7562 = vmatmul.mubr.msk.bf16.vlgmr.msra.gmra.mrb[100].mxu1 %vm2587_vm1, %v2464_v10 }
 0x21d   :  { %7032 = vmatpush3.bf16.msra.mxu1 %v9575_v47  ;;  %2826 = vmatprep.mubr.bf16.mxu1 %v9517_v24 }
 0x21e   :  { %3655 = vrot.lane.b32.xlu1 %v3446_v22, %s8402_s28  ;;  %7033 = vmatprep.subr.bf16.mxu1 %v9584_v5 }
 0x21f   :  { %3659 = vrot.lane.b32.xlu0 %v3448_v49, %s8402_s28 }
 0x221   :  { %7034 = vmatpush3.bf16.msra.mxu1 %v9597_v48 }
 0x222   :  { %4003 = vrot.lane.b32.xlu1 %v3792_v57, %s8402_s28  ;;  %7035 = vmatprep.subr.bf16.mxu1 %v9606_v23 }
 0x223   :  { %4001 = vrot.lane.b32.xlu0 %v3791_v18, %s8402_s28 }
 0x225   :  { %7036 = vmatpush3.bf16.msra.mxu1 %v9617_v7 }
 0x226   :  { %4345 = vrot.lane.b32.xlu1 %v4135_v13, %s8402_s28  ;;  %7037 = vmatprep.subr.bf16.mxu1 %v9626_v1 }
 0x227   :  { %3999 = vrot.lane.b32.xlu0 %v3790_v28, %s8402_s28 }
 0x229   :  { %7038 = vmatpush3.bf16.msra.mxu1 %v9637_v63 }
 0x22a   :  { %4343 = vrot.lane.b32.xlu1 %v4134_v33, %s8402_s28  ;;  %7039 = vmatprep.subr.bf16.mxu1 %v9646_v29 }
 0x22b   :  { %4347 = vrot.lane.b32.xlu0 %v4136_v36, %s8402_s28 }
 0x22d   :  { %7040 = vmatpush3.bf16.msra.mxu1 %v9661_v55 }
 0x22e   :  { %4691 = vrot.lane.b32.xlu1 %v4480_v16, %s8402_s28  ;;  %7041 = vmatprep.subr.bf16.mxu1 %v9670_v17 }
 0x22f   :  { %4689 = vrot.lane.b32.xlu0 %v4479_v12, %s8402_s28 }
 0x231   :  { %7042 = vmatpush3.bf16.msra.mxu1 %v9685_v20 }
 0x232   :  { %5043 = vrot.lane.b32.xlu1 %v9707_v31, %s8402_s28  ;;  %7043 = vmatprep.subr.bf16.mxu1 %v9699_v32 }
 0x233   :  { %4687 = vrot.lane.b32.xlu0 %v4478_v9, %s8402_s28 }
 0x235   :  { %7044 = vmatpush3.bf16.msra.mxu1 %v9713_v43 }
 0x236   :  { %5041 = vrot.lane.b32.xlu1 %v9732_v56, %s8402_s28  ;;  %7045 = vmatprep.subr.bf16.mxu1 %v9723_v14 }
 0x237   :  { %5045 = vrot.lane.b32.xlu0 %v9742_v61, %s8402_s28 }
 0x239   :  { %7046 = vmatpush3.bf16.msra.mxu1 %v9737_v59 }
 0x23a   :  { %5384 = vrot.lane.b32.xlu1 %v9690_v41, %s8402_s28  ;;  %7565 = vmatprep.subr.bf16.mxu1 %v8401_v27 }
 0x23b   :  { %5382 = vrot.lane.b32.xlu0 %v9654_v35, %s8402_s28 }
 0x23c   :  { %2827 = vmatmul.mubr.bf16.vlgmr.msra.gmra.mrb[104].mxu1 %v9513_v40 }
 0x23d   :  { %7566 = vmatpush3.bf16.msra.mxu1 %v8205_v60  ;;  %7573 = vmatprep.mubr.msk.bf16.mxu1 %vm8403_vm0, %v8401_v27 }
 0x23e   :  { %5726 = vrot.lane.b32.xlu1 %v5516_v52, %s8402_s28  ;;  %7567 = vmatprep.subr.bf16.mxu1 %v8401_v27 }
 0x23f   :  { %5380 = vrot.lane.b32.xlu0 %v9678_v38, %s8402_s28 }
 0x241   :  { %7568 = vmatpush3.bf16.msra.mxu1 %v8206_v15 }
 0x242   :  { %5724 = vrot.lane.b32.xlu1 %v5515_v58, %s8402_s28  ;;  %7569 = vmatprep.subr.bf16.mxu1 %v8401_v27 }
 0x243   :  { %5728 = vrot.lane.b32.xlu0 %v5517_v4, %s8402_s28  ;;  %s5958_s28 = sshll.u32 %s8404_s22, 4  ;;  %s5959_s28 = int_to_ptr.vmem [resolvable:$true] %s5958_s28 }
 0x244   :  { %s8377_s23 = scalar_lea.vmem %s5959_s28, 32  ;;  %p8382_p1 = scmp.lt.s32.totalorder %s5959_s28, %s5959_s28 }
 0x245   :  { %7570 = vmatpush3.bf16.msra.mxu1 %v8207_v46  ;;  %p8378_p0 = scmp.ne.s32.totalorder %s5959_s28, %s8377_s23  ;;  %p8383_p2 = scmp.lt.s32.totalorder %s8377_s23, %s8377_s23 }
 0x246   :  { %7571 = vmatprep.subr.bf16.mxu1 %v8401_v27 }
 0x247   :  { %p8384_p3 = por %p8383_p2, %p8382_p1 }
 0x249   :  { %7572 = vmatpush3.bf16.msra.mxu1 %v8208_v42  ;;  %p8385_p4 = pnand %p8384_p3, %p8378_p0 }
 0x24a   :  { %7577 = vmatprep.subr.bf16.mxu1 %v8401_v27 }
 0x24c   :  { %7574 = vmatmul.mubr.msk.bf16.vlgmr.msra.gmra.mrb[108].mxu1 %vm2587_vm1, %v9471_v30 }
 0x24d   :  { %7578 = vmatpush3.bf16.msra.mxu1 %v9526_v44  ;;  %7585 = vmatprep.mubr.msk.bf16.mxu1 %vm8403_vm0, %v8401_v27 }
 0x24e   :  { %7579 = vmatprep.subr.bf16.mxu1 %v8401_v27 }
 0x251   :  { %7580 = vmatpush3.bf16.msra.mxu1 %v9535_v0  ;;  %v9814_v0 = vld [vmem:[%s11052_s3 + $0x180] sm:$0xff]  }
 0x252   :  { %7581 = vmatprep.subr.bf16.mxu1 %v8401_v27 }
 0x255   :  { %7582 = vmatpush3.bf16.msra.mxu1 %v9547_v2  ;;  %v9821_v2 = vld [vmem:[%s11052_s3 + $0x140] sm:$0xff]  }
 0x256   :  { %7583 = vmatprep.subr.bf16.mxu1 %v8401_v27 }
 0x259   :  { %7584 = vmatpush3.bf16.msra.mxu1 %v9560_v3  ;;  %v9827_v3 = vld [vmem:[%s11052_s3 + $0x188] sm:$0xff]  }
 0x25a   :  { %7589 = vmatprep.subr.bf16.mxu1 %v8401_v27 }
 0x27c   :  { %v2875_v45 = vpop.permute.xlu1 %2874 }
 0x27d   :  { %v2877_v54 = vpop.permute.xlu0 %2876 }
 0x27e   :  { %v2881_v19 = vsel %vm2880_vm3, %v2875_v45, %v2877_v54  ;;  %v9997_v45 = vld [vmem:[%s11052_s3 + $0x240] sm:$0xff]  }
 0x280   :  { %v2971_v62 = vpop.permute.xlu1 %2970 }
 0x281   :  { %v2879_v51 = vpop.permute.xlu0 %2878 }
 0x282   :  { %7586 = vmatmul.mubr.msk.bf16.vlgmr.msra.gmra.mrb[112].mxu1 %vm2587_vm1, %v2879_v51  ;;  %v2882_v37 = vsel %vm2880_vm3, %v2877_v54, %v2879_v51  ;;  %v9991_v54 = vld [vmem:[%s11052_s3 + $0x1f8] sm:$0xff]   ;;  %v10003_v51 = vld [vmem:[%s11052_s3 + $0x200] sm:$0xff]  }
 0x283   :  { %7590 = vmatpush3.bf16.msra.mxu1 %v8205_v60  ;;  %2920 = vmatprep.mubr.bf16.mxu0 %v2882_v37  ;;  %v9954_v60 = vld [vmem:[%s11052_s3 + $0x228] sm:$0xff]  }
 0x284   :  { %2921 = vmatmul.mubr.bf16.vlgmr.msra.gmra.mrb[24].mxu0 %v2881_v19  ;;  %7591 = vmatprep.subr.bf16.mxu1 %v8401_v27  ;;  %v10009_v19 = vld [vmem:[%s11052_s3 + $0x248] sm:$0xff]  }
 0x285   :  { %7086 = vmatpush3.bf16.msra.mxu0 %v9575_v47  ;;  %v2973_v44 = vpop.permute.xlu0 %2972  ;;  %7597 = vmatprep.mubr.msk.bf16.mxu1 %vm8403_vm0, %v8401_v27  ;;  %v9838_v47 = vld [vmem:[%s11052_s3 + $0x148] sm:$0xff]  }
 0x286   :  { %7087 = vmatprep.subr.bf16.mxu0 %v9584_v5  ;;  %v2975_v10 = vsel %vm2880_vm3, %v2971_v62, %v2973_v44  ;;  %v9844_v5 = vld [vmem:[%s11052_s3 + $0x190] sm:$0xff]  }
 0x287   :  { %7592 = vmatpush3.bf16.msra.mxu1 %v8206_v15  ;;  %3013 = vmatprep.mubr.bf16.mxu0 %v2975_v10  ;;  %v9965_v15 = vld [vmem:[%s11052_s3 + $0x1e8] sm:$0xff]  }
 0x288   :  { %7593 = vmatprep.subr.bf16.mxu1 %v8401_v27  ;;  %v10020_v10 = vld [vmem:[%s11052_s3 + $0x208] sm:$0xff]  }
 0x289   :  { %7088 = vmatpush3.bf16.msra.mxu0 %v9597_v48  ;;  %v8215_v48 = vld [vmem:[%s11052_s3 + $0x198] sm:$0xff]   ;;  %v3314_v50 = vpop.permute.xlu0 %3313 }
 0x28a   :  { %7089 = vmatprep.subr.bf16.mxu0 %v9606_v23  ;;  %v9864_v23 = vld [vmem:[%s11052_s3 + $0x158] sm:$0xff]  }
 0x28b   :  { %7594 = vmatpush3.bf16.msra.mxu1 %v8207_v46  ;;  %v9971_v46 = vld [vmem:[%s11052_s3 + $0x230] sm:$0xff]  }
 0x28c   :  { %7595 = vmatprep.subr.bf16.mxu1 %v8401_v27 }
 0x28d   :  { %7090 = vmatpush3.bf16.msra.mxu0 %v9617_v7  ;;  %v9869_v7 = vld [vmem:[%s11052_s3 + $0x1a0] sm:$0xff]   ;;  %v3312_v37 = vpop.permute.xlu0 %3311 }
 0x28e   :  { %7091 = vmatprep.subr.bf16.mxu0 %v9626_v1  ;;  %v9877_v1 = vld [vmem:[%s11052_s3 + $0x160] sm:$0xff]  }
 0x28f   :  { %7596 = vmatpush3.bf16.msra.mxu1 %v8208_v42  ;;  %v9985_v42 = vld [vmem:[%s11052_s3 + $0x238] sm:$0xff]  }
 0x290   :  { %7112 = vmatprep.subr.bf16.mxu1 %v9814_v0 }
 0x291   :  { %7092 = vmatpush3.bf16.msra.mxu0 %v9637_v63  ;;  %v2969_v63 = vpop.permute.xlu1 %2968 }
 0x292   :  { %7598 = vmatmul.mubr.msk.bf16.vlgmr.msra.gmra.mrb[116].mxu1 %vm2587_vm1, %v2973_v44  ;;  %7093 = vmatprep.subr.bf16.mxu0 %v9646_v29  ;;  %v9883_v29 = vld [vmem:[%s11052_s3 + $0x1a8] sm:$0xff]   ;;  %v3317_v44 = vsel %vm2880_vm3, %v3312_v37, %v3314_v50  ;;  %v10192_v37 = vld [vmem:[%s11052_s3 + $0x2f8] sm:$0xff]  }
 0x293   :  { %7113 = vmatpush3.bf16.msra.mxu1 %v9821_v2  ;;  %3262 = vmatprep.mubr.bf16.mxu1 %v3103_v53  ;;  %v9852_v53 = vld [vmem:[%s11052_s3 + $0x150] sm:$0xff]  }
 0x294   :  { %7114 = vmatprep.subr.bf16.mxu1 %v9827_v3 }
 0x295   :  { %7094 = vmatpush3.bf16.msra.mxu0 %v9661_v55  ;;  %v8219_v55 = vld [vmem:[%s11052_s3 + $0x1c0] sm:$0xff]   ;;  %v3316_v39 = vpop.permute.xlu1 %3315 }
 0x296   :  { %7095 = vmatprep.subr.bf16.mxu0 %v9670_v17  ;;  %v2974_v17 = vsel %vm2880_vm3, %v2969_v63, %v2971_v62  ;;  %v8239_v62 = vld [vmem:[%s11052_s3 + $0x260] sm:$0xff]  }
 0x297   :  { %7115 = vmatpush3.bf16.msra.mxu1 %v9838_v47 }
 0x298   :  { %7116 = vmatprep.subr.bf16.mxu1 %v9844_v5 }
 0x299   :  { %7096 = vmatpush3.bf16.msra.mxu0 %v9685_v20  ;;  %v8221_v20 = vld [vmem:[%s11052_s3 + $0x168] sm:$0xff]  }
 0x29a   :  { %7097 = vmatprep.subr.bf16.mxu0 %v9699_v32  ;;  %v8222_v32 = vld [vmem:[%s11052_s3 + $0x1c8] sm:$0xff]  }
 0x29b   :  { %7117 = vmatpush3.bf16.msra.mxu1 %v9852_v53 }
 0x29c   :  { %7118 = vmatprep.subr.bf16.mxu1 %v8215_v48 }
 0x29d   :  { %7098 = vmatpush3.bf16.msra.mxu0 %v9713_v43  ;;  %v8226_v43 = vld [vmem:[%s11052_s3 + $0x1b8] sm:$0xff]  }
 0x29e   :  { %7099 = vmatprep.subr.bf16.mxu0 %v9723_v14  ;;  %v8228_v14 = vld [vmem:[%s11052_s3 + $0x1d8] sm:$0xff]  }
 0x29f   :  { %7119 = vmatpush3.bf16.msra.mxu1 %v9864_v23 }
 0x2a0   :  { %7120 = vmatprep.subr.bf16.mxu1 %v9869_v7 }
 0x2a1   :  { %7100 = vmatpush3.bf16.msra.mxu0 %v9737_v59  ;;  %v3318_v59 = vsel %vm2880_vm3, %v3314_v50, %v3316_v39  ;;  %v10128_v50 = vld [vmem:[%s11052_s3 + $0x2d8] sm:$0xff]  }
 0x2a2   :  { %7601 = vmatprep.subr.bf16.mxu0 %v8401_v27 }
 0x2a3   :  { %7121 = vmatpush3.bf16.msra.mxu1 %v9877_v1 }
 0x2a4   :  { %3014 = vmatmul.mubr.bf16.vlgmr.msra.gmra.mrb[28].mxu0 %v2974_v17  ;;  %7122 = vmatprep.subr.bf16.mxu1 %v9883_v29  ;;  %v3658_v17 = vpop.permute.xlu1 %3657 }
 0x2a5   :  { %7602 = vmatpush3.bf16.msra.mxu0 %v8219_v55  ;;  %7609 = vmatprep.mubr.msk.bf16.mxu0 %vm8403_vm0, %v8401_v27 }
 0x2a6   :  { %7603 = vmatprep.subr.bf16.mxu0 %v8401_v27 }
 0x2a7   :  { %7123 = vmatpush3.bf16.msra.mxu1 %v8221_v20 }
 0x2a8   :  { %7124 = vmatprep.subr.bf16.mxu1 %v8223_v26 }
 0x2a9   :  { %7604 = vmatpush3.bf16.msra.mxu0 %v8222_v32 }
 0x2aa   :  { %7605 = vmatprep.subr.bf16.mxu0 %v8401_v27 }
 0x2ab   :  { %7125 = vmatpush3.bf16.msra.mxu1 %v8224_v11 }
 0x2ac   :  { %7126 = vmatprep.subr.bf16.mxu1 %v8226_v43 }
 0x2ad   :  { %7606 = vmatpush3.bf16.msra.mxu0 %v8225_v25 }
 0x2ae   :  { %7607 = vmatprep.subr.bf16.mxu0 %v8401_v27 }
 0x2af   :  { %7127 = vmatpush3.bf16.msra.mxu1 %v8227_v34 }
 0x2b0   :  { %7613 = vmatprep.subr.bf16.mxu1 %v8401_v27 }
 0x2b1   :  { %7608 = vmatpush3.bf16.msra.mxu0 %v8228_v14 }
 0x2b2   :  { %3263 = vmatmul.mubr.bf16.vlgmr.msra.gmra.mrb[120].mxu1 %v3102_v21  ;;  %7139 = vmatprep.subr.bf16.mxu0 %v9814_v0  ;;  %v9948_v21 = vld [vmem:[%s11052_s3 + $0x1e0] sm:$0xff]   ;;  %v10026_v0 = vld [vmem:[%s11052_s3 + $0x250] sm:$0xff]  }
 0x2b3   :  { %7614 = vmatpush3.bf16.msra.mxu1 %v8219_v55  ;;  %7621 = vmatprep.mubr.msk.bf16.mxu1 %vm8403_vm0, %v8401_v27 }
 0x2b4   :  { %7610 = vmatmul.mubr.msk.bf16.vlgmr.msra.gmra.mrb[32].mxu0 %vm2587_vm1, %v3104_v6  ;;  %7615 = vmatprep.subr.bf16.mxu1 %v8401_v27  ;;  %v9942_v6 = vld [vmem:[%s11052_s3 + $0x220] sm:$0xff]  }
 0x2b5   :  { %7140 = vmatpush3.bf16.msra.mxu0 %v9821_v2  ;;  %3356 = vmatprep.mubr.bf16.mxu0 %v3318_v59  ;;  %v8242_v2 = vld [vmem:[%s11052_s3 + $0x268] sm:$0xff]   ;;  %v10136_v59 = vld [vmem:[%s11052_s3 + $0x298] sm:$0xff]  }
 0x2b6   :  { %7141 = vmatprep.subr.bf16.mxu0 %v9827_v3  ;;  %v10038_v3 = vld [vmem:[%s11052_s3 + $0x210] sm:$0xff]  }
 0x2b7   :  { %7616 = vmatpush3.bf16.msra.mxu1 %v8222_v32 }
 0x2b8   :  { %7617 = vmatprep.subr.bf16.mxu1 %v8401_v27 }
 0x2b9   :  { %7142 = vmatpush3.bf16.msra.mxu0 %v9838_v47  ;;  %v10044_v47 = vld [vmem:[%s11052_s3 + $0x258] sm:$0xff]  }
 0x2ba   :  { %7143 = vmatprep.subr.bf16.mxu0 %v9844_v5  ;;  %v8245_v5 = vld [vmem:[%s11052_s3 + $0x270] sm:$0xff]  }
 0x2bb   :  { %7618 = vmatpush3.bf16.msra.mxu1 %v8225_v25 }
 0x2bc   :  { %7619 = vmatprep.subr.bf16.mxu1 %v8401_v27 }
 0x2bd   :  { %7144 = vmatpush3.bf16.msra.mxu0 %v9852_v53  ;;  %v10054_v53 = vld [vmem:[%s11052_s3 + $0x218] sm:$0xff]  }
 0x2be   :  { %7145 = vmatprep.subr.bf16.mxu0 %v8215_v48  ;;  %v8248_v48 = vld [vmem:[%s11052_s3 + $0x278] sm:$0xff]  }
 0x2bf   :  { %7620 = vmatpush3.bf16.msra.mxu1 %v8228_v14  ;;  %v10108_v14 = vld [vmem:[%s11052_s3 + $0x288] sm:$0xff]  }
 0x2c0   :  { %7166 = vmatprep.subr.bf16.mxu1 %v9942_v6 }
 0x2c1   :  { %7146 = vmatpush3.bf16.msra.mxu0 %v9864_v23 }
 0x2c2   :  { %7622 = vmatmul.mubr.msk.bf16.vlgmr.msra.gmra.mrb[124].mxu1 %vm2587_vm1, %v3316_v39  ;;  %7147 = vmatprep.subr.bf16.mxu0 %v9869_v7  ;;  %v10114_v39 = vld [vmem:[%s11052_s3 + $0x2d0] sm:$0xff]  }
 0x2c3   :  { %7167 = vmatpush3.bf16.msra.mxu1 %v9948_v21  ;;  %3606 = vmatprep.mubr.bf16.mxu1 %v3447_v8  ;;  %v9979_v8 = vld [vmem:[%s11052_s3 + $0x1f0] sm:$0xff]  }
 0x2c4   :  { %7168 = vmatprep.subr.bf16.mxu1 %v9954_v60 }
 0x2c5   :  { %7148 = vmatpush3.bf16.msra.mxu0 %v9877_v1  ;;  %v3660_v1 = vpop.permute.xlu0 %3659 }
 0x2c6   :  { %7149 = vmatprep.subr.bf16.mxu0 %v9883_v29 }
 0x2c7   :  { %7169 = vmatpush3.bf16.msra.mxu1 %v9965_v15 }
 0x2c8   :  { %7170 = vmatprep.subr.bf16.mxu1 %v9971_v46 }
 0x2c9   :  { %7150 = vmatpush3.bf16.msra.mxu0 %v8221_v20  ;;  %v3662_v20 = vsel %vm2880_vm3, %v3658_v17, %v3660_v1 }
 0x2ca   :  { %7151 = vmatprep.subr.bf16.mxu0 %v8223_v26  ;;  %v10089_v26 = vld [vmem:[%s11052_s3 + $0x280] sm:$0xff]  }
 0x2cb   :  { %7171 = vmatpush3.bf16.msra.mxu1 %v9979_v8 }
 0x2cc   :  { %7172 = vmatprep.subr.bf16.mxu1 %v9985_v42 }
 0x2cd   :  { %7152 = vmatpush3.bf16.msra.mxu0 %v8224_v11 }
 0x2ce   :  { %7153 = vmatprep.subr.bf16.mxu0 %v8226_v43  ;;  %v10097_v43 = vld [vmem:[%s11052_s3 + $0x2c8] sm:$0xff]  }
 0x2cf   :  { %7173 = vmatpush3.bf16.msra.mxu1 %v9991_v54 }
 0x2d0   :  { %7174 = vmatprep.subr.bf16.mxu1 %v9997_v45 }
 0x2d1   :  { %7154 = vmatpush3.bf16.msra.mxu0 %v8227_v34 }
 0x2d2   :  { %7625 = vmatprep.subr.bf16.mxu0 %v8401_v27 }
 0x2d3   :  { %7175 = vmatpush3.bf16.msra.mxu1 %v10003_v51 }
 0x2d4   :  { %3357 = vmatmul.mubr.bf16.vlgmr.msra.gmra.mrb[36].mxu0 %v3317_v44  ;;  %7176 = vmatprep.subr.bf16.mxu1 %v10009_v19  ;;  %v8268_v44 = vld [vmem:[%s11052_s3 + $0x318] sm:$0xff]  }
 0x2d5   :  { %7626 = vmatpush3.bf16.msra.mxu0 %v8239_v62  ;;  %7633 = vmatprep.mubr.msk.bf16.mxu0 %vm8403_vm0, %v8401_v27 }
 0x2d6   :  { %7627 = vmatprep.subr.bf16.mxu0 %v8401_v27 }
 0x2d7   :  { %7177 = vmatpush3.bf16.msra.mxu1 %v10020_v10 }
 0x2d8   :  { %7178 = vmatprep.subr.bf16.mxu1 %v10026_v0 }
 0x2d9   :  { %7628 = vmatpush3.bf16.msra.mxu0 %v8242_v2 }
 0x2da   :  { %7629 = vmatprep.subr.bf16.mxu0 %v8401_v27 }
 0x2db   :  { %7179 = vmatpush3.bf16.msra.mxu1 %v10038_v3 }
 0x2dc   :  { %7180 = vmatprep.subr.bf16.mxu1 %v10044_v47 }
 0x2dd   :  { %7630 = vmatpush3.bf16.msra.mxu0 %v8245_v5 }
 0x2de   :  { %7631 = vmatprep.subr.bf16.mxu0 %v8401_v27 }
 0x2df   :  { %7181 = vmatpush3.bf16.msra.mxu1 %v10054_v53  ;;  %v7020_v23 = vpop.f32.mrb[96].mxu1 }
 0x2e0   :  { %v7021_v7 = vpop.f32.mrb[97].mxu1  ;;  %7637 = vmatprep.subr.bf16.mxu1 %v8401_v27 }
 0x2e1   :  { %v7022_v63 = vadd.f32 %v7021_v7, %v7020_v23  ;;  %7632 = vmatpush3.bf16.msra.mxu0 %v8248_v48  ;;  %v7023_v29 = vpop.f32.mrb[98].mxu1  ;;  %v10241_v7 = vld [vmem:[%s11052_s3 + $0x320] sm:$0xff]  }
 0x2e2   :  { %3607 = vmatmul.mubr.bf16.vlgmr.msra.gmra.mrb[128].mxu1 %v3446_v22  ;;  %v7024_v55 = vpop.f32.mrb[99].mxu1  ;;  %7193 = vmatprep.subr.bf16.mxu0 %v9942_v6  ;;  %v10082_v22 = vld [vmem:[%s11052_s3 + $0x2c0] sm:$0xff]   ;;  %v10249_v29 = vld [vmem:[%s11052_s3 + $0x368] sm:$0xff]  }
 0x2e3   :  { %7638 = vmatpush3.bf16.msra.mxu1 %v8239_v62  ;;  %7645 = vmatprep.mubr.msk.bf16.mxu1 %vm8403_vm0, %v8401_v27  ;;  %v10142_v6 = vld [vmem:[%s11052_s3 + $0x2e0] sm:$0xff]   ;;  %v10202_v62 = vld [vmem:[%s11052_s3 + $0x2b8] sm:$0xff]  }
 0x2e4   :  { %7634 = vmatmul.mubr.msk.bf16.vlgmr.msra.gmra.mrb[40].mxu0 %vm2587_vm1, %v3448_v49  ;;  %7639 = vmatprep.subr.bf16.mxu1 %v8401_v27 }
 0x2e5   :  { %7194 = vmatpush3.bf16.msra.mxu0 %v9948_v21  ;;  %3700 = vmatprep.mubr.bf16.mxu0 %v3662_v20  ;;  %v10150_v21 = vld [vmem:[%s11052_s3 + $0x2a0] sm:$0xff]   ;;  %v10260_v20 = vld [vmem:[%s11052_s3 + $0x328] sm:$0xff]  }
 0x2e6   :  { %7195 = vmatprep.subr.bf16.mxu0 %v9954_v60  ;;  %v3656_v60 = vpop.permute.xlu1 %3655 }
 0x2e7   :  { %7640 = vmatpush3.bf16.msra.mxu1 %v8242_v2 }
 0x2e8   :  { %7641 = vmatprep.subr.bf16.mxu1 %v8401_v27 }
 0x2e9   :  { %7196 = vmatpush3.bf16.msra.mxu0 %v9965_v15  ;;  %v10156_v15 = vld [vmem:[%s11052_s3 + $0x2e8] sm:$0xff]  }
 0x2ea   :  { %7197 = vmatprep.subr.bf16.mxu0 %v9971_v46  ;;  %v8259_v46 = vld [vmem:[%s11052_s3 + $0x300] sm:$0xff]  }
 0x2eb   :  { %7642 = vmatpush3.bf16.msra.mxu1 %v8245_v5 }
 0x2ec   :  { %7643 = vmatprep.subr.bf16.mxu1 %v8401_v27 }
 0x2ed   :  { %7198 = vmatpush3.bf16.msra.mxu0 %v9979_v8  ;;  %v3661_v8 = vsel %vm2880_vm3, %v3656_v60, %v3658_v17  ;;  %v10352_v60 = vld [vmem:[%s11052_s3 + $0x358] sm:$0xff]  }
 0x2ee   :  { %7199 = vmatprep.subr.bf16.mxu0 %v9985_v42  ;;  %v10168_v42 = vld [vmem:[%s11052_s3 + $0x2a8] sm:$0xff]  }
 0x2ef   :  { %v2665_v49 = vpop.f32.mrb[100].mxu1  ;;  %7644 = vmatpush3.bf16.msra.mxu1 %v8248_v48 }
 0x2f0   :  { %v10091_v32 = vadd.f32 %v7022_v63, %v2665_v49  ;;  %v7563_v11 = vpop.f32.mrb[101].mxu1  ;;  %7220 = vmatprep.subr.bf16.mxu1 %v10082_v22  ;;  %v8275_v49 = vld [vmem:[%s11052_s3 + $0x378] sm:$0xff]  }
 0x2f1   :  { %v2668_v25 = vpop.f32.mrb[102].mxu1  ;;  %7200 = vmatpush3.bf16.msra.mxu0 %v9991_v54  ;;  %v10174_v54 = vld [vmem:[%s11052_s3 + $0x2f0] sm:$0xff]   ;;  %v10299_v11 = vld [vmem:[%s11052_s3 + $0x340] sm:$0xff]  }
 0x2f2   :  { %v7564_v34 = vpop.f32.mrb[103].mxu1  ;;  %7646 = vmatmul.mubr.msk.bf16.vlgmr.msra.gmra.mrb[132].mxu1 %vm2587_vm1, %v3660_v1  ;;  %7201 = vmatprep.subr.bf16.mxu0 %v9997_v45  ;;  %v8262_v45 = vld [vmem:[%s11052_s3 + $0x308] sm:$0xff]  }
 0x2f3   :  { %7221 = vmatpush3.bf16.msra.mxu1 %v10089_v26  ;;  %3950 = vmatprep.mubr.bf16.mxu1 %v3791_v18  ;;  %v10122_v18 = vld [vmem:[%s11052_s3 + $0x290] sm:$0xff]   ;;  %v10305_v25 = vld [vmem:[%s11052_s3 + $0x388] sm:$0xff]   ;;  %v8279_v34 = vld [vmem:[%s11052_s3 + $0x3a0] sm:$0xff]  }
 0x2f4   :  { %7222 = vmatprep.subr.bf16.mxu1 %v10097_v43 }
 0x2f5   :  { %7202 = vmatpush3.bf16.msra.mxu0 %v10003_v51  ;;  %v10186_v51 = vld [vmem:[%s11052_s3 + $0x2b0] sm:$0xff]  }
 0x2f6   :  { %7203 = vmatprep.subr.bf16.mxu0 %v10009_v19  ;;  %v8265_v19 = vld [vmem:[%s11052_s3 + $0x310] sm:$0xff]  }
 0x2f7   :  { %7223 = vmatpush3.bf16.msra.mxu1 %v10108_v14 }
 0x2f8   :  { %7224 = vmatprep.subr.bf16.mxu1 %v10114_v39 }
 0x2f9   :  { %7204 = vmatpush3.bf16.msra.mxu0 %v10020_v10 }
 0x2fa   :  { %7205 = vmatprep.subr.bf16.mxu0 %v10026_v0  ;;  %v4004_v0 = vpop.permute.xlu1 %4003 }
 0x2fb   :  { %7225 = vmatpush3.bf16.msra.mxu1 %v10122_v18 }
 0x2fc   :  { %7226 = vmatprep.subr.bf16.mxu1 %v10128_v50 }
 0x2fd   :  { %7206 = vmatpush3.bf16.msra.mxu0 %v10038_v3  ;;  %v10211_v3 = vpop.permute.xlu0 %4001 }
 0x2fe   :  { %7207 = vmatprep.subr.bf16.mxu0 %v10044_v47  ;;  %v4006_v23 = vsel %vm2880_vm3, %v10211_v3, %v4004_v0 }
 0x2ff   :  { %7227 = vmatpush3.bf16.msra.mxu1 %v10136_v59 }
 0x300   :  { %7228 = vmatprep.subr.bf16.mxu1 %v10142_v6 }
 0x301   :  { %7208 = vmatpush3.bf16.msra.mxu0 %v10054_v53 }
 0x302   :  { %7649 = vmatprep.subr.bf16.mxu0 %v8401_v27 }
 0x303   :  { %7229 = vmatpush3.bf16.msra.mxu1 %v10150_v21 }
 0x304   :  { %3701 = vmatmul.mubr.bf16.vlgmr.msra.gmra.mrb[44].mxu0 %v3661_v8  ;;  %7230 = vmatprep.subr.bf16.mxu1 %v10156_v15  ;;  %v10364_v8 = vpop.permute.xlu1 %4345 }
 0x305   :  { %7650 = vmatpush3.bf16.msra.mxu0 %v8259_v46  ;;  %7657 = vmatprep.mubr.msk.bf16.mxu0 %vm8403_vm0, %v8401_v27 }
 0x306   :  { %7651 = vmatprep.subr.bf16.mxu0 %v8401_v27 }
 0x307   :  { %7231 = vmatpush3.bf16.msra.mxu1 %v10168_v42 }
 0x308   :  { %7232 = vmatprep.subr.bf16.mxu1 %v10174_v54 }
 0x309   :  { %7652 = vmatpush3.bf16.msra.mxu0 %v8262_v45 }
 0x30a   :  { %7653 = vmatprep.subr.bf16.mxu0 %v8401_v27 }
 0x30b   :  { %7233 = vmatpush3.bf16.msra.mxu1 %v10186_v51 }
 0x30c   :  { %7234 = vmatprep.subr.bf16.mxu1 %v10192_v37 }
 0x30d   :  { %7654 = vmatpush3.bf16.msra.mxu0 %v8265_v19 }
 0x30e   :  { %7655 = vmatprep.subr.bf16.mxu0 %v8401_v27 }
 0x30f   :  { %v7047_v10 = vpop.f32.mrb[104].mxu1  ;;  %7235 = vmatpush3.bf16.msra.mxu1 %v10202_v62 }
 0x310   :  { %v7048_v2 = vpop.f32.mrb[105].mxu1  ;;  %7661 = vmatprep.subr.bf16.mxu1 %v8401_v27 }
 0x311   :  { %v7049_v47 = vadd.f32 %v7048_v2, %v7047_v10  ;;  %v7050_v5 = vpop.f32.mrb[106].mxu1  ;;  %7656 = vmatpush3.bf16.msra.mxu0 %v8268_v44 }
 0x312   :  { %v7051_v53 = vpop.f32.mrb[107].mxu1  ;;  %3951 = vmatmul.mubr.bf16.vlgmr.msra.gmra.mrb[136].mxu1 %v3790_v28  ;;  %7247 = vmatprep.subr.bf16.mxu0 %v10082_v22  ;;  %v10266_v22 = vld [vmem:[%s11052_s3 + $0x370] sm:$0xff]  }
 0x313   :  { %7662 = vmatpush3.bf16.msra.mxu1 %v8259_v46  ;;  %v2829_v48 = vadd.f32 %v7049_v47, %v10091_v32  ;;  %7669 = vmatprep.mubr.msk.bf16.mxu1 %vm8403_vm0, %v8401_v27  ;;  %v10291_v32 = vld [vmem:[%s11052_s3 + $0x380] sm:$0xff]   ;;  %v10436_v53 = vld [vmem:[%s11052_s3 + $0x3d8] sm:$0xff]  }
 0x314   :  { %7658 = vmatmul.mubr.msk.bf16.vlgmr.msra.gmra.mrb[48].mxu0 %vm2587_vm1, %v3792_v57  ;;  %7663 = vmatprep.subr.bf16.mxu1 %v8401_v27  ;;  %v10234_v57 = vld [vmem:[%s11052_s3 + $0x360] sm:$0xff]  }
 0x315   :  { %7248 = vmatpush3.bf16.msra.mxu0 %v10089_v26  ;;  %4044 = vmatprep.mubr.bf16.mxu0 %v4006_v23  ;;  %v10286_v26 = vld [vmem:[%s11052_s3 + $0x338] sm:$0xff]   ;;  %v10450_v23 = vld [vmem:[%s11052_s3 + $0x3e0] sm:$0xff]  }
 0x316   :  { %7249 = vmatprep.subr.bf16.mxu0 %v10097_v43  ;;  %v4000_v43 = vpop.permute.xlu0 %3999 }
 0x317   :  { %7664 = vmatpush3.bf16.msra.mxu1 %v8262_v45  ;;  %v10406_v45 = vld [vmem:[%s11052_s3 + $0x3c8] sm:$0xff]  }
 0x318   :  { %7665 = vmatprep.subr.bf16.mxu1 %v8401_v27 }
 0x319   :  { %7250 = vmatpush3.bf16.msra.mxu0 %v10108_v14  ;;  %v4005_v14 = vsel %vm2880_vm3, %v4000_v43, %v10211_v3  ;;  %v10503_v43 = vld [vmem:[%s11052_s3 + $0x3f8] sm:$0xff]  }
 0x31a   :  { %7251 = vmatprep.subr.bf16.mxu0 %v10114_v39  ;;  %v10318_v39 = vld [vmem:[%s11052_s3 + $0x348] sm:$0xff]   ;;  %v4348_v46 = vpop.permute.xlu0 %4347 }
 0x31b   :  { %7666 = vmatpush3.bf16.msra.mxu1 %v8265_v19 }
 0x31c   :  { %7667 = vmatprep.subr.bf16.mxu1 %v8401_v27 }
 0x31d   :  { %7252 = vmatpush3.bf16.msra.mxu0 %v10122_v18  ;;  %v10324_v18 = vld [vmem:[%s11052_s3 + $0x390] sm:$0xff]  }
 0x31e   :  { %7253 = vmatprep.subr.bf16.mxu0 %v10128_v50  ;;  %v8282_v50 = vld [vmem:[%s11052_s3 + $0x3a8] sm:$0xff]  }
 0x31f   :  { %v2868_v28 = vpop.f32.mrb[108].mxu1  ;;  %7668 = vmatpush3.bf16.msra.mxu1 %v8268_v44 }
 0x320   :  { %v10243_v1 = vadd.f32 %v2868_v28, %v2829_v48  ;;  %v7575_v63 = vpop.f32.mrb[109].mxu1  ;;  %7274 = vmatprep.subr.bf16.mxu1 %v10234_v57  ;;  %v10442_v48 = vld [vmem:[%s11052_s3 + $0x420] sm:$0xff]   ;;  %v10456_v28 = vld [vmem:[%s11052_s3 + $0x428] sm:$0xff]  }
 0x321   :  { %v2871_v55 = vpop.f32.mrb[110].mxu1  ;;  %7254 = vmatpush3.bf16.msra.mxu0 %v10136_v59  ;;  %v10336_v59 = vld [vmem:[%s11052_s3 + $0x350] sm:$0xff]  }
 0x322   :  { %v7576_v17 = vpop.f32.mrb[111].mxu1  ;;  %7670 = vmatmul.mubr.msk.bf16.vlgmr.msra.gmra.mrb[140].mxu1 %vm2587_vm1, %v4004_v0  ;;  %7255 = vmatprep.subr.bf16.mxu0 %v10142_v6  ;;  %v10342_v6 = vld [vmem:[%s11052_s3 + $0x398] sm:$0xff]   ;;  %v10475_v55 = vld [vmem:[%s11052_s3 + $0x430] sm:$0xff]  }
 0x323   :  { %7275 = vmatpush3.bf16.msra.mxu1 %v10241_v7  ;;  %4294 = vmatprep.mubr.bf16.mxu1 %v4135_v13  ;;  %v10274_v13 = vld [vmem:[%s11052_s3 + $0x330] sm:$0xff]   ;;  %v10426_v0 = vld [vmem:[%s11052_s3 + $0x418] sm:$0xff]  }
 0x324   :  { %7276 = vmatprep.subr.bf16.mxu1 %v10249_v29 }
 0x325   :  { %7256 = vmatpush3.bf16.msra.mxu0 %v10150_v21  ;;  %v8285_v21 = vld [vmem:[%s11052_s3 + $0x3b0] sm:$0xff]  }
 0x326   :  { %7257 = vmatprep.subr.bf16.mxu0 %v10156_v15  ;;  %v8288_v15 = vld [vmem:[%s11052_s3 + $0x3b8] sm:$0xff]  }
 0x327   :  { %7277 = vmatpush3.bf16.msra.mxu1 %v10260_v20 }
 0x328   :  { %7278 = vmatprep.subr.bf16.mxu1 %v10266_v22 }
 0x329   :  { %7258 = vmatpush3.bf16.msra.mxu0 %v10168_v42  ;;  %v4350_v42 = vsel %vm2880_vm3, %v10364_v8, %v4348_v46 }
 0x32a   :  { %7259 = vmatprep.subr.bf16.mxu0 %v10174_v54  ;;  %v10395_v54 = vld [vmem:[%s11052_s3 + $0x408] sm:$0xff]  }
 0x32b   :  { %7279 = vmatpush3.bf16.msra.mxu1 %v10274_v13 }
 0x32c   :  { %7280 = vmatprep.subr.bf16.mxu1 %v8275_v49 }
 0x32d   :  { %7260 = vmatpush3.bf16.msra.mxu0 %v10186_v51  ;;  %v10412_v51 = vld [vmem:[%s11052_s3 + $0x410] sm:$0xff]  }
 0x32e   :  { %7261 = vmatprep.subr.bf16.mxu0 %v10192_v37 }
 0x32f   :  { %7281 = vmatpush3.bf16.msra.mxu1 %v10286_v26 }
 0x330   :  { %7282 = vmatprep.subr.bf16.mxu1 %v10291_v32 }
 0x331   :  { %7262 = vmatpush3.bf16.msra.mxu0 %v10202_v62  ;;  %v10420_v62 = vld [vmem:[%s11052_s3 + $0x3d0] sm:$0xff]  }
 0x332   :  { %7673 = vmatprep.subr.bf16.mxu0 %v8401_v27 }
 0x333   :  { %7283 = vmatpush3.bf16.msra.mxu1 %v10299_v11 }
 0x334   :  { %4045 = vmatmul.mubr.bf16.vlgmr.msra.gmra.mrb[52].mxu0 %v4005_v14  ;;  %7284 = vmatprep.subr.bf16.mxu1 %v10305_v25  ;;  %v10512_v14 = vpop.permute.xlu0 %4689 }
 0x335   :  { %7674 = vmatpush3.bf16.msra.mxu0 %v8279_v34  ;;  %7681 = vmatprep.mubr.msk.bf16.mxu0 %vm8403_vm0, %v8401_v27 }
 0x336   :  { %7675 = vmatprep.subr.bf16.mxu0 %v8401_v27 }
 0x337   :  { %7285 = vmatpush3.bf16.msra.mxu1 %v10318_v39 }
 0x338   :  { %7286 = vmatprep.subr.bf16.mxu1 %v10324_v18 }
 0x339   :  { %7676 = vmatpush3.bf16.msra.mxu0 %v8282_v50 }
 0x33a   :  { %7677 = vmatprep.subr.bf16.mxu0 %v8401_v27 }
 0x33b   :  { %7287 = vmatpush3.bf16.msra.mxu1 %v10336_v59 }
 0x33c   :  { %7288 = vmatprep.subr.bf16.mxu1 %v10342_v6 }
 0x33d   :  { %7678 = vmatpush3.bf16.msra.mxu0 %v8285_v21 }
 0x33e   :  { %7679 = vmatprep.subr.bf16.mxu0 %v8401_v27 }
 0x33f   :  { %7289 = vmatpush3.bf16.msra.mxu1 %v10352_v60 }
 0x340   :  { %7685 = vmatprep.subr.bf16.mxu1 %v8401_v27 }
 0x341   :  { %7680 = vmatpush3.bf16.msra.mxu0 %v8288_v15 }
 0x342   :  { %4295 = vmatmul.mubr.bf16.vlgmr.msra.gmra.mrb[144].mxu1 %v4134_v33  ;;  %7301 = vmatprep.subr.bf16.mxu0 %v10234_v57  ;;  %v10383_v33 = vld [vmem:[%s11052_s3 + $0x400] sm:$0xff]   ;;  %v4344_v57 = vpop.permute.xlu1 %4343 }
 0x343   :  { %7686 = vmatpush3.bf16.msra.mxu1 %v8279_v34  ;;  %7693 = vmatprep.mubr.msk.bf16.mxu1 %vm8403_vm0, %v8401_v27  ;;  %v4349_v63 = vsel %vm2880_vm3, %v4344_v57, %v10364_v8 }
 0x344   :  { %7682 = vmatmul.mubr.msk.bf16.vlgmr.msra.gmra.mrb[56].mxu0 %vm2587_vm1, %v4136_v36  ;;  %7687 = vmatprep.subr.bf16.mxu1 %v8401_v27  ;;  %v10389_v36 = vld [vmem:[%s11052_s3 + $0x3c0] sm:$0xff]  }
 0x345   :  { %7302 = vmatpush3.bf16.msra.mxu0 %v10241_v7  ;;  %4388 = vmatprep.mubr.bf16.mxu0 %v4350_v42  ;;  %v8299_v7 = vld [vmem:[%s11052_s3 + $0x440] sm:$0xff]  }
 0x346   :  { %7303 = vmatprep.subr.bf16.mxu0 %v10249_v29  ;;  %v10469_v29 = vld [vmem:[%s11052_s3 + $0x3e8] sm:$0xff]   ;;  %v4692_v34 = vpop.permute.xlu1 %4691 }
 0x347   :  { %7688 = vmatpush3.bf16.msra.mxu1 %v8282_v50 }
 0x348   :  { %7689 = vmatprep.subr.bf16.mxu1 %v8401_v27 }
 0x349   :  { %7304 = vmatpush3.bf16.msra.mxu0 %v10260_v20  ;;  %v8302_v20 = vld [vmem:[%s11052_s3 + $0x448] sm:$0xff]  }
 0x34a   :  { %7305 = vmatprep.subr.bf16.mxu0 %v10266_v22 }
 0x34b   :  { %7690 = vmatpush3.bf16.msra.mxu1 %v8285_v21  ;;  %v10544_v21 = vld [vmem:[%s11052_s3 + $0x460] sm:$0xff]  }
 0x34c   :  { %7691 = vmatprep.subr.bf16.mxu1 %v8401_v27 }
 0x34d   :  { %7306 = vmatpush3.bf16.msra.mxu0 %v10274_v13 }
 0x34e   :  { %7307 = vmatprep.subr.bf16.mxu0 %v8275_v49  ;;  %v10487_v49 = vld [vmem:[%s11052_s3 + $0x3f0] sm:$0xff]  }
 0x34f   :  { %7692 = vmatpush3.bf16.msra.mxu1 %v8288_v15  ;;  %v10560_v15 = vld [vmem:[%s11052_s3 + $0x468] sm:$0xff]  }
 0x350   :  { %7328 = vmatprep.subr.bf16.mxu1 %v10383_v33 }
 0x351   :  { %7308 = vmatpush3.bf16.msra.mxu0 %v10286_v26 }
 0x352   :  { %7694 = vmatmul.mubr.msk.bf16.vlgmr.msra.gmra.mrb[148].mxu1 %vm2587_vm1, %v4348_v46  ;;  %7309 = vmatprep.subr.bf16.mxu0 %v10291_v32  ;;  %v10493_v32 = vld [vmem:[%s11052_s3 + $0x438] sm:$0xff]   ;;  %v10566_v46 = vld [vmem:[%s11052_s3 + $0x4b0] sm:$0xff]  }
 0x353   :  { %7329 = vmatpush3.bf16.msra.mxu1 %v10389_v36  ;;  %4638 = vmatprep.mubr.bf16.mxu1 %v4479_v12 }
 0x354   :  { %7330 = vmatprep.subr.bf16.mxu1 %v10395_v54 }
 0x355   :  { %7310 = vmatpush3.bf16.msra.mxu0 %v10299_v11  ;;  %v2962_v37 = vpop.f32.mrb[112].mxu1  ;;  %v8305_v11 = vld [vmem:[%s11052_s3 + $0x450] sm:$0xff]  }
 0x356   :  { %v7587_v19 = vpop.f32.mrb[113].mxu1  ;;  %7311 = vmatprep.subr.bf16.mxu0 %v10305_v25  ;;  %v8308_v25 = vld [vmem:[%s11052_s3 + $0x458] sm:$0xff]  }
 0x357   :  { %7331 = vmatpush3.bf16.msra.mxu1 %v10406_v45  ;;  %v7074_v24 = vpop.f32.mrb[24].mxu0  ;;  %v2965_v12 = vpop.f32.mrb[114].mxu1 }
 0x358   :  { %v7075_v44 = vpop.f32.mrb[25].mxu0  ;;  %v7588_v10 = vpop.f32.mrb[115].mxu1  ;;  %7332 = vmatprep.subr.bf16.mxu1 %v10412_v51 }
 0x359   :  { %v7076_v2 = vadd.f32 %v7075_v44, %v7074_v24  ;;  %7312 = vmatpush3.bf16.msra.mxu0 %v10318_v39  ;;  %v7077_v3 = vpop.f32.mrb[26].mxu0  ;;  %v4694_v39 = vsel %vm2880_vm3, %v10512_v14, %v4692_v34  ;;  %v10591_v44 = vld [vmem:[%s11052_s3 + $0x478] sm:$0xff]   ;;  %v10597_v10 = vld [vmem:[%s11052_s3 + $0x4c0] sm:$0xff]  }
 0x35a   :  { %v7078_v47 = vpop.f32.mrb[27].mxu0  ;;  %7313 = vmatprep.subr.bf16.mxu0 %v10324_v18  ;;  %v8319_v3 = vld [vmem:[%s11052_s3 + $0x4e0] sm:$0xff]  }
 0x35b   :  { %v10430_v5 = vadd.f32 %v7076_v2, %v2962_v37  ;;  %7333 = vmatpush3.bf16.msra.mxu1 %v10420_v62  ;;  %v10580_v37 = vld [vmem:[%s11052_s3 + $0x4b8] sm:$0xff]   ;;  %v10611_v2 = vld [vmem:[%s11052_s3 + $0x4c8] sm:$0xff]  }
 0x35c   :  { %7334 = vmatprep.subr.bf16.mxu1 %v10426_v0 }
 0x35d   :  { %7314 = vmatpush3.bf16.msra.mxu0 %v10336_v59  ;;  %v10535_v59 = vld [vmem:[%s11052_s3 + $0x4a0] sm:$0xff]  }
 0x35e   :  { %7315 = vmatprep.subr.bf16.mxu0 %v10342_v6 }
 0x35f   :  { %7335 = vmatpush3.bf16.msra.mxu1 %v10436_v53 }
 0x360   :  { %7336 = vmatprep.subr.bf16.mxu1 %v10442_v48 }
 0x361   :  { %7316 = vmatpush3.bf16.msra.mxu0 %v10352_v60  ;;  %v10550_v60 = vld [vmem:[%s11052_s3 + $0x4a8] sm:$0xff]  }
 0x362   :  { %7697 = vmatprep.subr.bf16.mxu0 %v8401_v27 }
 0x363   :  { %7337 = vmatpush3.bf16.msra.mxu1 %v10450_v23 }
 0x364   :  { %4389 = vmatmul.mubr.bf16.vlgmr.msra.gmra.mrb[60].mxu0 %v4349_v63  ;;  %7338 = vmatprep.subr.bf16.mxu1 %v10456_v28 }
 0x365   :  { %v3055_v17 = vpop.f32.mrb[116].mxu1  ;;  %7698 = vmatpush3.bf16.msra.mxu0 %v8299_v7  ;;  %7705 = vmatprep.mubr.msk.bf16.mxu0 %vm8403_vm0, %v8401_v27 }
 0x366   :  { %v7599_v22 = vpop.f32.mrb[117].mxu1  ;;  %7699 = vmatprep.subr.bf16.mxu0 %v8401_v27 }
 0x367   :  { %v3058_v13 = vpop.f32.mrb[118].mxu1  ;;  %7339 = vmatpush3.bf16.msra.mxu1 %v10469_v29 }
 0x368   :  { %v7600_v26 = vpop.f32.mrb[119].mxu1  ;;  %7340 = vmatprep.subr.bf16.mxu1 %v10475_v55  ;;  %v10669_v13 = vpop.permute.xlu1 %5043 }
 0x369   :  { %7700 = vmatpush3.bf16.msra.mxu0 %v8302_v20 }
 0x36a   :  { %7701 = vmatprep.subr.bf16.mxu0 %v8401_v27 }
 0x36b   :  { %7341 = vmatpush3.bf16.msra.mxu1 %v10487_v49 }
 0x36c   :  { %7342 = vmatprep.subr.bf16.mxu1 %v10493_v32 }
 0x36d   :  { %7702 = vmatpush3.bf16.msra.mxu0 %v8305_v11 }
 0x36e   :  { %7703 = vmatprep.subr.bf16.mxu0 %v8401_v27 }
 0x36f   :  { %7343 = vmatpush3.bf16.msra.mxu1 %v10503_v43 }
 0x370   :  { %7709 = vmatprep.subr.bf16.mxu1 %v8401_v27 }
 0x371   :  { %7704 = vmatpush3.bf16.msra.mxu0 %v8308_v25 }
 0x372   :  { %4639 = vmatmul.mubr.bf16.vlgmr.msra.gmra.mrb[152].mxu1 %v4478_v9  ;;  %7355 = vmatprep.subr.bf16.mxu0 %v10383_v33 }
 0x373   :  { %7710 = vmatpush3.bf16.msra.mxu1 %v8299_v7  ;;  %7717 = vmatprep.mubr.msk.bf16.mxu1 %vm8403_vm0, %v8401_v27  ;;  %v10642_v7 = vld [vmem:[%s11052_s3 + $0x490] sm:$0xff]  }
 0x374   :  { %7706 = vmatmul.mubr.msk.bf16.vlgmr.msra.gmra.mrb[64].mxu0 %vm2587_vm1, %v4480_v16  ;;  %7711 = vmatprep.subr.bf16.mxu1 %v8401_v27 }
 0x375   :  { %7356 = vmatpush3.bf16.msra.mxu0 %v10389_v36  ;;  %4732 = vmatprep.mubr.bf16.mxu0 %v4694_v39  ;;  %v10703_v39 = vld [vmem:[%s11052_s3 + $0x548] sm:$0xff]  }
 0x376   :  { %7357 = vmatprep.subr.bf16.mxu0 %v10395_v54  ;;  %v10574_v54 = vld [vmem:[%s11052_s3 + $0x470] sm:$0xff]  }
 0x377   :  { %v7101_v40 = vpop.f32.mrb[28].mxu0  ;;  %7712 = vmatpush3.bf16.msra.mxu1 %v8302_v20  ;;  %v8328_v20 = vld [vmem:[%s11052_s3 + $0x4f8] sm:$0xff]  }
 0x378   :  { %v7102_v9 = vpop.f32.mrb[29].mxu0  ;;  %7713 = vmatprep.subr.bf16.mxu1 %v8401_v27 }
 0x379   :  { %v7103_v18 = vadd.f32 %v7102_v9, %v7101_v40  ;;  %v7104_v50 = vpop.f32.mrb[30].mxu0  ;;  %7358 = vmatpush3.bf16.msra.mxu0 %v10406_v45  ;;  %v10713_v40 = vld [vmem:[%s11052_s3 + $0x508] sm:$0xff]   ;;  %v10719_v9 = vld [vmem:[%s11052_s3 + $0x550] sm:$0xff]  }
 0x37a   :  { %v7105_v30 = vpop.f32.mrb[31].mxu0  ;;  %7359 = vmatprep.subr.bf16.mxu0 %v10412_v51 }
 0x37b   :  { %v3016_v16 = vadd.f32 %v7103_v18, %v10430_v5  ;;  %7714 = vmatpush3.bf16.msra.mxu1 %v8305_v11  ;;  %v10624_v5 = vld [vmem:[%s11052_s3 + $0x488] sm:$0xff]  }
 0x37c   :  { %7715 = vmatprep.subr.bf16.mxu1 %v8401_v27 }
 0x37d   :  { %v10537_v6 = vadd.f32 %v3055_v17, %v3016_v16  ;;  %7360 = vmatpush3.bf16.msra.mxu0 %v10420_v62  ;;  %v10658_v17 = vld [vmem:[%s11052_s3 + $0x498] sm:$0xff]  }
 0x37e   :  { %7361 = vmatprep.subr.bf16.mxu0 %v10426_v0  ;;  %v4688_v0 = vpop.permute.xlu0 %4687 }
 0x37f   :  { %7716 = vmatpush3.bf16.msra.mxu1 %v8308_v25  ;;  %v4693_v47 = vsel %vm2880_vm3, %v4688_v0, %v10512_v14  ;;  %v10687_v25 = vld [vmem:[%s11052_s3 + $0x540] sm:$0xff]   ;;  %v10795_v0 = vld [vmem:[%s11052_s3 + $0x530] sm:$0xff]  }
 0x380   :  { %7382 = vmatprep.subr.bf16.mxu1 %v10535_v59  ;;  %v10697_v14 = vld [vmem:[%s11052_s3 + $0x500] sm:$0xff]  }
 0x381   :  { %7362 = vmatpush3.bf16.msra.mxu0 %v10436_v53  ;;  %v10630_v53 = vld [vmem:[%s11052_s3 + $0x4d0] sm:$0xff]  }
 0x382   :  { %7718 = vmatmul.mubr.msk.bf16.vlgmr.msra.gmra.mrb[156].mxu1 %vm2587_vm1, %v4692_v34  ;;  %7363 = vmatprep.subr.bf16.mxu0 %v10442_v48  ;;  %v5046_v22 = vpop.permute.xlu0 %5045 }
 0x383   :  { %7383 = vmatpush3.bf16.msra.mxu1 %v10544_v21  ;;  %4992 = vmatprep.mubr.bf16.mxu1 %v9707_v31 }
 0x384   :  { %7384 = vmatprep.subr.bf16.mxu1 %v10550_v60 }
 0x385   :  { %v7128_v8 = vpop.f32.mrb[120].mxu1  ;;  %7364 = vmatpush3.bf16.msra.mxu0 %v10450_v23  ;;  %v8322_v23 = vld [vmem:[%s11052_s3 + $0x4e8] sm:$0xff]  }
 0x386   :  { %v7129_v42 = vpop.f32.mrb[121].mxu1  ;;  %7365 = vmatprep.subr.bf16.mxu0 %v10456_v28 }
 0x387   :  { %v7130_v33 = vadd.f32 %v7129_v42, %v7128_v8  ;;  %v7131_v31 = vpop.f32.mrb[122].mxu1  ;;  %v3304_v36 = vpop.f32.mrb[32].mxu0  ;;  %7385 = vmatpush3.bf16.msra.mxu1 %v10560_v15 }
 0x388   :  { %v7132_v45 = vpop.f32.mrb[123].mxu1  ;;  %v7611_v51 = vpop.f32.mrb[33].mxu0  ;;  %7386 = vmatprep.subr.bf16.mxu1 %v10566_v46  ;;  %v10744_v31 = vld [vmem:[%s11052_s3 + $0x518] sm:$0xff]  }
 0x389   :  { %v3305_v19 = vadd.f32 %v7130_v33, %v3304_v36  ;;  %v3307_v24 = vpop.f32.mrb[34].mxu0  ;;  %7366 = vmatpush3.bf16.msra.mxu0 %v10469_v29  ;;  %v10648_v29 = vld [vmem:[%s11052_s3 + $0x4d8] sm:$0xff]   ;;  %v10750_v36 = vld [vmem:[%s11052_s3 + $0x560] sm:$0xff]   ;;  %v5042_v45 = vpop.permute.xlu1 %5041  ;;  %v10764_v51 = vld [vmem:[%s11052_s3 + $0x568] sm:$0xff]  }
 0x38a   :  { %v7612_v12 = vpop.f32.mrb[35].mxu0  ;;  %7367 = vmatprep.subr.bf16.mxu0 %v10475_v55  ;;  %v8325_v55 = vld [vmem:[%s11052_s3 + $0x4f0] sm:$0xff]   ;;  %v10777_v24 = vld [vmem:[%s11052_s3 + $0x528] sm:$0xff]  }
 0x38b   :  { %v10585_v62 = vadd.f32 %v3305_v19, %v10243_v1  ;;  %7387 = vmatpush3.bf16.msra.mxu1 %v10574_v54  ;;  %v10605_v1 = vld [vmem:[%s11052_s3 + $0x480] sm:$0xff]   ;;  %v5047_v19 = vsel %vm2880_vm3, %v5042_v45, %v10669_v13  ;;  %v10783_v12 = vld [vmem:[%s11052_s3 + $0x570] sm:$0xff]   ;;  %v8366_v45 = vld [vmem:[%s11052_s3 + $0x618] sm:$0xff]  }
 0x38c   :  { %7388 = vmatprep.subr.bf16.mxu1 %v10580_v37 }
 0x38d   :  { %7368 = vmatpush3.bf16.msra.mxu0 %v10487_v49  ;;  %v5048_v49 = vsel %vm2880_vm3, %v10669_v13, %v5046_v22  ;;  %v10850_v13 = vld [vmem:[%s11052_s3 + $0x5a0] sm:$0xff]  }
 0x38e   :  { %7369 = vmatprep.subr.bf16.mxu0 %v10493_v32 }
 0x38f   :  { %7389 = vmatpush3.bf16.msra.mxu1 %v10591_v44 }
 0x390   :  { %7390 = vmatprep.subr.bf16.mxu1 %v10597_v10 }
 0x391   :  { %7370 = vmatpush3.bf16.msra.mxu0 %v10503_v43 }
 0x392   :  { %7721 = vmatprep.subr.bf16.mxu0 %v8401_v27 }
 0x393   :  { %7391 = vmatpush3.bf16.msra.mxu1 %v10605_v1 }
 0x394   :  { %4733 = vmatmul.mubr.bf16.vlgmr.msra.gmra.mrb[68].mxu0 %v4693_v47  ;;  %7392 = vmatprep.subr.bf16.mxu1 %v10611_v2  ;;  %v8345_v47 = vld [vmem:[%s11052_s3 + $0x590] sm:$0xff]  }
 0x395   :  { %v3398_v48 = vpop.f32.mrb[124].mxu1  ;;  %7722 = vmatpush3.bf16.msra.mxu0 %v8319_v3  ;;  %7729 = vmatprep.mubr.msk.bf16.mxu0 %vm8403_vm0, %v8401_v27 }
 0x396   :  { %v7623_v57 = vpop.f32.mrb[125].mxu1  ;;  %7723 = vmatprep.subr.bf16.mxu0 %v8401_v27 }
 0x397   :  { %v3401_v28 = vpop.f32.mrb[126].mxu1  ;;  %7393 = vmatpush3.bf16.msra.mxu1 %v10624_v5 }
 0x398   :  { %v7624_v63 = vpop.f32.mrb[127].mxu1  ;;  %7394 = vmatprep.subr.bf16.mxu1 %v10630_v53 }
 0x399   :  { %7724 = vmatpush3.bf16.msra.mxu0 %v8322_v23 }
 0x39a   :  { %7725 = vmatprep.subr.bf16.mxu0 %v8401_v27 }
 0x39b   :  { %7395 = vmatpush3.bf16.msra.mxu1 %v10642_v7 }
 0x39c   :  { %7396 = vmatprep.subr.bf16.mxu1 %v10648_v29 }
 0x39d   :  { %7726 = vmatpush3.bf16.msra.mxu0 %v8325_v55 }
 0x39e   :  { %7727 = vmatprep.subr.bf16.mxu0 %v8401_v27 }
 0x39f   :  { %7397 = vmatpush3.bf16.msra.mxu1 %v10658_v17 }
 0x3a0   :  { %7733 = vmatprep.subr.bf16.mxu1 %v8401_v27 }
 0x3a1   :  { %7728 = vmatpush3.bf16.msra.mxu0 %v8328_v20 }
 0x3a2   :  { %4993 = vmatmul.mubr.bf16.vlgmr.msra.gmra.mrb[160].mxu1 %v9732_v56  ;;  %7409 = vmatprep.subr.bf16.mxu0 %v10535_v59 }
 0x3a3   :  { %7734 = vmatpush3.bf16.msra.mxu1 %v8319_v3  ;;  %7741 = vmatprep.mubr.msk.bf16.mxu1 %vm8403_vm0, %v8401_v27  ;;  %v10801_v3 = vld [vmem:[%s11052_s3 + $0x578] sm:$0xff]  }
 0x3a4   :  { %7730 = vmatmul.mubr.msk.bf16.vlgmr.msra.gmra.mrb[72].mxu0 %vm2587_vm1, %v9742_v61  ;;  %7735 = vmatprep.subr.bf16.mxu1 %v8401_v27 }
 0x3a5   :  { %7410 = vmatpush3.bf16.msra.mxu0 %v10544_v21  ;;  %5086 = vmatprep.mubr.bf16.mxu0 %v5048_v49  ;;  %v10856_v49 = vld [vmem:[%s11052_s3 + $0x5e8] sm:$0xff]  }
 0x3a6   :  { %7411 = vmatprep.subr.bf16.mxu0 %v10550_v60 }
 0x3a7   :  { %v7155_v56 = vpop.f32.mrb[36].mxu0  ;;  %7736 = vmatpush3.bf16.msra.mxu1 %v8322_v23  ;;  %v10820_v23 = vpop.permute.xlu0 %5382 }
 0x3a8   :  { %v7156_v26 = vpop.f32.mrb[37].mxu0  ;;  %7737 = vmatprep.subr.bf16.mxu1 %v8401_v27 }
 0x3a9   :  { %v7157_v32 = vadd.f32 %v7156_v26, %v7155_v56  ;;  %v7158_v11 = vpop.f32.mrb[38].mxu0  ;;  %7412 = vmatpush3.bf16.msra.mxu0 %v10560_v15  ;;  %v10733_v15 = vld [vmem:[%s11052_s3 + $0x558] sm:$0xff]   ;;  %v10867_v56 = vld [vmem:[%s11052_s3 + $0x5a8] sm:$0xff]   ;;  %v10873_v26 = vld [vmem:[%s11052_s3 + $0x5f0] sm:$0xff]  }
 0x3aa   :  { %v7159_v61 = vpop.f32.mrb[39].mxu0  ;;  %7413 = vmatprep.subr.bf16.mxu0 %v10566_v46 }
 0x3ab   :  { %v3399_v43 = vadd.f32 %v7157_v32, %v3398_v48  ;;  %7738 = vmatpush3.bf16.msra.mxu1 %v8325_v55  ;;  %v5385_v48 = vpop.permute.xlu1 %5384 }
 0x3ac   :  { %7739 = vmatprep.subr.bf16.mxu1 %v8401_v27  ;;  %v5387_v57 = vsel %vm2880_vm3, %v10820_v23, %v5385_v48 }
 0x3ad   :  { %v10690_v34 = vadd.f32 %v3399_v43, %v10537_v6  ;;  %7414 = vmatpush3.bf16.msra.mxu0 %v10574_v54  ;;  %v10727_v6 = vld [vmem:[%s11052_s3 + $0x510] sm:$0xff]   ;;  %v10758_v54 = vld [vmem:[%s11052_s3 + $0x520] sm:$0xff]  }
 0x3ae   :  { %7415 = vmatprep.subr.bf16.mxu0 %v10580_v37  ;;  %v8339_v37 = vld [vmem:[%s11052_s3 + $0x580] sm:$0xff]   ;;  %v10881_v43 = vld [vmem:[%s11052_s3 + $0x5b0] sm:$0xff]  }
 0x3af   :  { %7740 = vmatpush3.bf16.msra.mxu1 %v8328_v20  ;;  %v10840_v20 = vld [vmem:[%s11052_s3 + $0x5e0] sm:$0xff]  }
 0x3b0   :  { %7436 = vmatprep.subr.bf16.mxu1 %v10687_v25 }
 0x3b1   :  { %7416 = vmatpush3.bf16.msra.mxu0 %v10591_v44  ;;  %v8342_v44 = vld [vmem:[%s11052_s3 + $0x588] sm:$0xff]  }
 0x3b2   :  { %7742 = vmatmul.mubr.msk.bf16.vlgmr.msra.gmra.mrb[164].mxu1 %vm2587_vm1, %v5046_v22  ;;  %7417 = vmatprep.subr.bf16.mxu0 %v10597_v10 }
 0x3b3   :  { %7437 = vmatpush3.bf16.msra.mxu1 %v10697_v14  ;;  %5331 = vmatprep.mubr.bf16.mxu1 %v9654_v35 }
 0x3b4   :  { %7438 = vmatprep.subr.bf16.mxu1 %v10703_v39 }
 0x3b5   :  { %v7182_v18 = vpop.f32.mrb[128].mxu1  ;;  %7418 = vmatpush3.bf16.msra.mxu0 %v10605_v1 }
 0x3b6   :  { %v7183_v50 = vpop.f32.mrb[129].mxu1  ;;  %7419 = vmatprep.subr.bf16.mxu0 %v10611_v2 }
 0x3b7   :  { %v7184_v30 = vadd.f32 %v7183_v50, %v7182_v18  ;;  %v7185_v16 = vpop.f32.mrb[130].mxu1  ;;  %v3648_v59 = vpop.f32.mrb[40].mxu0  ;;  %7439 = vmatpush3.bf16.msra.mxu1 %v10713_v40  ;;  %v10898_v50 = vld [vmem:[%s11052_s3 + $0x5b8] sm:$0xff]  }
 0x3b8   :  { %v7186_v21 = vpop.f32.mrb[131].mxu1  ;;  %v7635_v60 = vpop.f32.mrb[41].mxu0  ;;  %7440 = vmatprep.subr.bf16.mxu1 %v10719_v9  ;;  %v10912_v16 = vld [vmem:[%s11052_s3 + $0x5c0] sm:$0xff]  }
 0x3b9   :  { %v3649_v46 = vadd.f32 %v7184_v30, %v3648_v59  ;;  %v3651_v8 = vpop.f32.mrb[42].mxu0  ;;  %7420 = vmatpush3.bf16.msra.mxu0 %v10624_v5  ;;  %v10811_v5 = vld [vmem:[%s11052_s3 + $0x538] sm:$0xff]   ;;  %v10904_v30 = vld [vmem:[%s11052_s3 + $0x600] sm:$0xff]   ;;  %v5381_v59 = vpop.permute.xlu0 %5380 }
 0x3ba   :  { %v7636_v42 = vpop.f32.mrb[43].mxu0  ;;  %7421 = vmatprep.subr.bf16.mxu0 %v10630_v53  ;;  %v8348_v53 = vld [vmem:[%s11052_s3 + $0x598] sm:$0xff]   ;;  %v8359_v21 = vld [vmem:[%s11052_s3 + $0x620] sm:$0xff]   ;;  %v5386_v60 = vsel %vm2880_vm3, %v5381_v59, %v10820_v23 }
 0x3bb   :  { %v10738_v33 = vadd.f32 %v3649_v46, %v10585_v62  ;;  %7441 = vmatpush3.bf16.msra.mxu1 %v10727_v6  ;;  %v10937_v46 = vld [vmem:[%s11052_s3 + $0x610] sm:$0xff]   ;;  %v8362_v42 = vld [vmem:[%s11052_s3 + $0x628] sm:$0xff]  }
 0x3bc   :  { %7442 = vmatprep.subr.bf16.mxu1 %v10733_v15 }
 0x3bd   :  { %7422 = vmatpush3.bf16.msra.mxu0 %v10642_v7 }
 0x3be   :  { %7423 = vmatprep.subr.bf16.mxu0 %v10648_v29 }
 0x3bf   :  { %7443 = vmatpush3.bf16.msra.mxu1 %v10744_v31 }
 0x3c0   :  { %7444 = vmatprep.subr.bf16.mxu1 %v10750_v36 }
 0x3c1   :  { %7424 = vmatpush3.bf16.msra.mxu0 %v10658_v17 }
 0x3c2   :  { %7745 = vmatprep.subr.bf16.mxu0 %v8401_v27 }
 0x3c3   :  { %7445 = vmatpush3.bf16.msra.mxu1 %v10758_v54 }
 0x3c4   :  { %5087 = vmatmul.mubr.bf16.vlgmr.msra.gmra.mrb[76].mxu0 %v5047_v19  ;;  %7446 = vmatprep.subr.bf16.mxu1 %v10764_v51  ;;  %v8368_v19 = vld [vmem:[%s11052_s3 + $0x638] sm:$0xff]  }
 0x3c5   :  { %v3742_v62 = vpop.f32.mrb[132].mxu1  ;;  %7746 = vmatpush3.bf16.msra.mxu0 %v8339_v37  ;;  %7753 = vmatprep.mubr.msk.bf16.mxu0 %vm8403_vm0, %v8401_v27 }
 0x3c6   :  { %v7647_v10 = vpop.f32.mrb[133].mxu1  ;;  %7747 = vmatprep.subr.bf16.mxu0 %v8401_v27 }
 0x3c7   :  { %v3745_v1 = vpop.f32.mrb[134].mxu1  ;;  %7447 = vmatpush3.bf16.msra.mxu1 %v10777_v24 }
 0x3c8   :  { %v7648_v2 = vpop.f32.mrb[135].mxu1  ;;  %7448 = vmatprep.subr.bf16.mxu1 %v10783_v12 }
 0x3c9   :  { %7748 = vmatpush3.bf16.msra.mxu0 %v8342_v44 }
 0x3ca   :  { %7749 = vmatprep.subr.bf16.mxu0 %v8401_v27 }
 0x3cb   :  { %7449 = vmatpush3.bf16.msra.mxu1 %v10795_v0 }
 0x3cc   :  { %7450 = vmatprep.subr.bf16.mxu1 %v10801_v3 }
 0x3cd   :  { %7750 = vmatpush3.bf16.msra.mxu0 %v8345_v47 }
 0x3ce   :  { %7751 = vmatprep.subr.bf16.mxu0 %v8401_v27 }
 0x3cf   :  { %7451 = vmatpush3.bf16.msra.mxu1 %v10811_v5 }
 0x3d0   :  { %7757 = vmatprep.subr.bf16.mxu1 %v8401_v27 }
 0x3d1   :  { %7752 = vmatpush3.bf16.msra.mxu0 %v8348_v53 }
 0x3d2   :  { %5332 = vmatmul.mubr.bf16.vlgmr.msra.gmra.mrb[168].mxu1 %v9678_v38  ;;  %7463 = vmatprep.subr.bf16.mxu0 %v10687_v25 }
 0x3d3   :  { %7758 = vmatpush3.bf16.msra.mxu1 %v8339_v37  ;;  %7765 = vmatprep.mubr.msk.bf16.mxu1 %vm8403_vm0, %v8401_v27  ;;  %v8367_v37 = vld [vmem:[%s11052_s3 + $0x5d8] sm:$0xff]  }
 0x3d4   :  { %7754 = vmatmul.mubr.msk.bf16.vlgmr.msra.gmra.mrb[80].mxu0 %vm2587_vm1, %v9690_v41  ;;  %7759 = vmatprep.subr.bf16.mxu1 %v8401_v27 }
 0x3d5   :  { %7464 = vmatpush3.bf16.msra.mxu0 %v10697_v14  ;;  %5425 = vmatprep.mubr.bf16.mxu0 %v5387_v57  ;;  %v10887_v14 = vld [vmem:[%s11052_s3 + $0x5f8] sm:$0xff]  }
 0x3d6   :  { %7465 = vmatprep.subr.bf16.mxu0 %v10703_v39 }
 0x3d7   :  { %v7209_v28 = vpop.f32.mrb[44].mxu0  ;;  %7760 = vmatpush3.bf16.msra.mxu1 %v8342_v44 }
 0x3d8   :  { %v7210_v7 = vpop.f32.mrb[45].mxu0  ;;  %7761 = vmatprep.subr.bf16.mxu1 %v8401_v27 }
 0x3d9   :  { %v7211_v63 = vadd.f32 %v7210_v7, %v7209_v28  ;;  %v7212_v29 = vpop.f32.mrb[46].mxu0  ;;  %7466 = vmatpush3.bf16.msra.mxu0 %v10713_v40 }
 0x3da   :  { %v7213_v55 = vpop.f32.mrb[47].mxu0  ;;  %7467 = vmatprep.subr.bf16.mxu0 %v10719_v9 }
 0x3db   :  { %v3743_v17 = vadd.f32 %v7211_v63, %v3742_v62  ;;  %7762 = vmatpush3.bf16.msra.mxu1 %v8345_v47 }
 0x3dc   :  { %7763 = vmatprep.subr.bf16.mxu1 %v8401_v27 }
 0x3dd   :  { %v10843_v22 = vadd.f32 %v3743_v17, %v10690_v34  ;;  %7468 = vmatpush3.bf16.msra.mxu0 %v10727_v6  ;;  %v10918_v6 = vld [vmem:[%s11052_s3 + $0x608] sm:$0xff]  }
 0x3de   :  { %7469 = vmatprep.subr.bf16.mxu0 %v10733_v15  ;;  %v10931_v15 = vld [vmem:[%s11052_s3 + $0x5c8] sm:$0xff]  }
 0x3df   :  { %7764 = vmatpush3.bf16.msra.mxu1 %v8348_v53 }
 0x3e0   :  { %7490 = vmatprep.subr.bf16.mxu1 %v10840_v20 }
 0x3e1   :  { %7470 = vmatpush3.bf16.msra.mxu0 %v10744_v31 }
 0x3e2   :  { %7766 = vmatmul.mubr.msk.bf16.vlgmr.msra.gmra.mrb[172].mxu1 %vm2587_vm1, %v5385_v48  ;;  %7471 = vmatprep.subr.bf16.mxu0 %v10750_v36  ;;  %v10949_v36 = vld [vmem:[%s11052_s3 + $0x5d0] sm:$0xff]  }
 0x3e3   :  { %7491 = vmatpush3.bf16.msra.mxu1 %v10850_v13  ;;  %5675 = vmatprep.mubr.bf16.mxu1 %v5516_v52 }
 0x3e4   :  { %7492 = vmatprep.subr.bf16.mxu1 %v10856_v49 }
 0x3e5   :  { %v7236_v32 = vpop.f32.mrb[136].mxu1  ;;  %7472 = vmatpush3.bf16.msra.mxu0 %v10758_v54 }
 0x3e6   :  { %v7237_v11 = vpop.f32.mrb[137].mxu1  ;;  %7473 = vmatprep.subr.bf16.mxu0 %v10764_v51  ;;  %v8365_v51 = vld [vmem:[%s11052_s3 + $0x630] sm:$0xff]  }
 0x3e7   :  { %v7238_v35 = vadd.f32 %v7237_v11, %v7236_v32  ;;  %v7239_v52 = vpop.f32.mrb[138].mxu1  ;;  %v3992_v61 = vpop.f32.mrb[48].mxu0  ;;  %7493 = vmatpush3.bf16.msra.mxu1 %v10867_v56 }
 0x3e8   :  { %v7240_v25 = vpop.f32.mrb[139].mxu1  ;;  %v7659_v34 = vpop.f32.mrb[49].mxu0  ;;  %7494 = vmatprep.subr.bf16.mxu1 %v10873_v26 }
 0x3e9   :  { %v3993_v39 = vadd.f32 %v7238_v35, %v3992_v61  ;;  %v3995_v40 = vpop.f32.mrb[50].mxu0  ;;  %7474 = vmatpush3.bf16.msra.mxu0 %v10777_v24  ;;  %v5729_v24 = vpop.permute.xlu0 %5728 }
 0x3ea   :  { %v7660_v9 = vpop.f32.mrb[51].mxu0  ;;  %7475 = vmatprep.subr.bf16.mxu0 %v10783_v12  ;;  %v5727_v12 = vpop.permute.xlu1 %5726 }
 0x3eb   :  { %v10892_v18 = vadd.f32 %v3993_v39, %v10738_v33  ;;  %7495 = vmatpush3.bf16.msra.mxu1 %v10881_v43  ;;  %v5731_v62 = vsel %vm2880_vm3, %v5727_v12, %v5729_v24 }
 0x3ec   :  { %7496 = vmatprep.subr.bf16.mxu1 %v10887_v14 }
 0x3ed   :  { %7476 = vmatpush3.bf16.msra.mxu0 %v10795_v0 }
 0x3ee   :  { %7477 = vmatprep.subr.bf16.mxu0 %v10801_v3  ;;  %v5725_v63 = vpop.permute.xlu1 %5724 }
 0x3ef   :  { %7497 = vmatpush3.bf16.msra.mxu1 %v10898_v50  ;;  %v5730_v29 = vsel %vm2880_vm3, %v5725_v63, %v5727_v12 }
 0x3f0   :  { %7498 = vmatprep.subr.bf16.mxu1 %v10904_v30 }
 0x3f1   :  { %7478 = vmatpush3.bf16.msra.mxu0 %v10811_v5 }
 0x3f2   :  { %7769 = vmatprep.subr.bf16.mxu0 %v8401_v27 }
 0x3f3   :  { %7499 = vmatpush3.bf16.msra.mxu1 %v10912_v16 }
 0x3f4   :  { %5426 = vmatmul.mubr.bf16.vlgmr.msra.gmra.mrb[84].mxu0 %v5386_v60  ;;  %7500 = vmatprep.subr.bf16.mxu1 %v10918_v6 }
 0x3f5   :  { %v4086_v8 = vpop.f32.mrb[140].mxu1  ;;  %7770 = vmatpush3.bf16.msra.mxu0 %v8359_v21  ;;  %7777 = vmatprep.mubr.msk.bf16.mxu0 %vm8403_vm0, %v8401_v27 }
 0x3f6   :  { %v7671_v33 = vpop.f32.mrb[141].mxu1  ;;  %7771 = vmatprep.subr.bf16.mxu0 %v8401_v27 }
 0x3f7   :  { %v4089_v31 = vpop.f32.mrb[142].mxu1  ;;  %7501 = vmatpush3.bf16.msra.mxu1 %v10931_v15  ;;  %v8370_v33 = vld [vmem:[%s11054_s5 + $0x8] sm:$0xff]  }
 0x3f8   :  { %v7672_v54 = vpop.f32.mrb[143].mxu1  ;;  %7502 = vmatprep.subr.bf16.mxu1 %v10937_v46 }
 0x3f9   :  { %7772 = vmatpush3.bf16.msra.mxu0 %v8362_v42  ;;  %v8371_v54 = vld [vmem:[%s11054_s5 + $0x10] sm:$0xff]  }
 0x3fa   :  { %7773 = vmatprep.subr.bf16.mxu0 %v8401_v27 }
 0x3fb   :  { %7503 = vmatpush3.bf16.msra.mxu1 %v10949_v36 }
 0x3fc   :  { %7504 = vmatprep.subr.bf16.mxu1 %v8366_v45 }
 0x3fd   :  { %7774 = vmatpush3.bf16.msra.mxu0 %v8365_v51 }
 0x3fe   :  { %7775 = vmatprep.subr.bf16.mxu0 %v8401_v27 }
 0x3ff   :  { %7505 = vmatpush3.bf16.msra.mxu1 %v8367_v37 }
 0x400   :  { %7781 = vmatprep.subr.bf16.mxu1 %v8401_v27 }
 0x401   :  { %7776 = vmatpush3.bf16.msra.mxu0 %v8368_v19 }
 0x402   :  { %5676 = vmatmul.mubr.bf16.vlgmr.msra.gmra.mrb[176].mxu1 %v5515_v58  ;;  %7517 = vmatprep.subr.bf16.mxu0 %v10840_v20 }
 0x403   :  { %7782 = vmatpush3.bf16.msra.mxu1 %v8359_v21  ;;  %7789 = vmatprep.mubr.msk.bf16.mxu1 %vm8403_vm0, %v8401_v27 }
 0x404   :  { %7778 = vmatmul.mubr.msk.bf16.vlgmr.msra.gmra.mrb[88].mxu0 %vm2587_vm1, %v5517_v4  ;;  %7783 = vmatprep.subr.bf16.mxu1 %v8401_v27 }
 0x405   :  { %7518 = vmatpush3.bf16.msra.mxu0 %v10850_v13  ;;  %5769 = vmatprep.mubr.bf16.mxu0 %v5731_v62 }
 0x406   :  { %7519 = vmatprep.subr.bf16.mxu0 %v10856_v49 }
 0x407   :  { %v7263_v38 = vpop.f32.mrb[52].mxu0  ;;  %7784 = vmatpush3.bf16.msra.mxu1 %v8362_v42 }
 0x408   :  { %v7264_v58 = vpop.f32.mrb[53].mxu0  ;;  %7785 = vmatprep.subr.bf16.mxu1 %v8401_v27 }
 0x409   :  { %v7265_v44 = vadd.f32 %v7264_v58, %v7263_v38  ;;  %v7266_v10 = vpop.f32.mrb[54].mxu0  ;;  %7520 = vmatpush3.bf16.msra.mxu0 %v10867_v56 }
 0x40a   :  { %v7267_v41 = vpop.f32.mrb[55].mxu0  ;;  %7521 = vmatprep.subr.bf16.mxu0 %v10873_v26 }
 0x40b   :  { %v4087_v4 = vadd.f32 %v7265_v44, %v4086_v8  ;;  %7786 = vmatpush3.bf16.msra.mxu1 %v8365_v51  ;;  %v8372_v44 = vld [vmem:[%s11054_s5 + $0x18] sm:$0xff]  }
 0x40c   :  { %7787 = vmatprep.subr.bf16.mxu1 %v8401_v27 }
 0x40d   :  { %v4092_v1 = vadd.f32 %v4087_v4, %v10843_v22  ;;  %7522 = vmatpush3.bf16.msra.mxu0 %v10881_v43  ;;  %v8373_v4 = vld [vmem:[%s11054_s5 + $0x20] sm:$0xff]  }
 0x40e   :  { %7523 = vmatprep.subr.bf16.mxu0 %v10887_v14 }
 0x40f   :  { %7788 = vmatpush3.bf16.msra.mxu1 %v8368_v19 }
 0x410   :  { %7793 = vmatprep.subr.bf16.mxu1 %v8401_v27 }
 0x411   :  { %7524 = vmatpush3.bf16.msra.mxu0 %v10898_v50 }
 0x412   :  { %7790 = vmatmul.mubr.msk.bf16.vlgmr.msra.gmra.mrb[180].mxu1 %vm2587_vm1, %v5729_v24  ;;  %7525 = vmatprep.subr.bf16.mxu0 %v10904_v30 }
 0x413   :  { %7809 = vmatprep.mubr.msk.bf16.mxu1 %vm8403_vm0, %v8401_v27 }
 0x415   :  { %v7290_v0 = vpop.f32.mrb[144].mxu1  ;;  %7526 = vmatpush3.bf16.msra.mxu0 %v10912_v16 }
 0x416   :  { %v7291_v2 = vpop.f32.mrb[145].mxu1  ;;  %7527 = vmatprep.subr.bf16.mxu0 %v10918_v6 }
 0x417   :  { %v7292_v3 = vadd.f32 %v7291_v2, %v7290_v0  ;;  %v7293_v47 = vpop.f32.mrb[146].mxu1  ;;  %v4336_v5 = vpop.f32.mrb[56].mxu0  ;;  %v8375_v2 = vld [vmem:[%s11054_s5 + $0x30] sm:$0xff]  }
 0x418   :  { %v7294_v53 = vpop.f32.mrb[147].mxu1  ;;  %v7683_v48 = vpop.f32.mrb[57].mxu0 }
 0x419   :  { %v4337_v23 = vadd.f32 %v7292_v3, %v4336_v5  ;;  %v4339_v57 = vpop.f32.mrb[58].mxu0  ;;  %7528 = vmatpush3.bf16.msra.mxu0 %v10931_v15  ;;  %v8369_v15 = vld [vmem:[%s11054_s5] sm:$0xff]   ;;  %v8376_v5 = vld [vmem:[%s11054_s5 + $0x38] sm:$0xff]  }
 0x41a   :  { %v7684_v28 = vpop.f32.mrb[59].mxu0  ;;  %7529 = vmatprep.subr.bf16.mxu0 %v10937_v46  ;;  %7794 = vmatpush3.bf16.msra.mxu1 %v8369_v15 }
 0x41b   :  { %v4342_v7 = vadd.f32 %v4337_v23, %v10892_v18  ;;  %7795 = vmatprep.subr.bf16.mxu1 %v8401_v27 }
 0x41d   :  { %7530 = vmatpush3.bf16.msra.mxu0 %v10949_v36 }
 0x41e   :  { %7531 = vmatprep.subr.bf16.mxu0 %v8366_v45  ;;  %7796 = vmatpush3.bf16.msra.mxu1 %v8370_v33 }
 0x41f   :  { %7797 = vmatprep.subr.bf16.mxu1 %v8401_v27 }
 0x421   :  { %7532 = vmatpush3.bf16.msra.mxu0 %v8367_v37 }
 0x422   :  { %7798 = vmatpush3.bf16.msra.mxu1 %v8371_v54 }
 0x423   :  { %7799 = vmatprep.subr.bf16.mxu1 %v8401_v27 }
 0x424   :  { %5770 = vmatmul.mubr.bf16.vlgmr.msra.gmra.mrb[92].mxu0 %v5730_v29 }
 0x425   :  { %v4430_v55 = vpop.f32.mrb[148].mxu1 }
 0x426   :  { %v7695_v17 = vpop.f32.mrb[149].mxu1  ;;  %7800 = vmatpush3.bf16.msra.mxu1 %v8372_v44 }
 0x427   :  { %v4433_v20 = vpop.f32.mrb[150].mxu1  ;;  %7801 = vmatprep.subr.bf16.mxu1 %v8401_v27 }
 0x428   :  { %v7696_v22 = vpop.f32.mrb[151].mxu1 }
 0x42a   :  { %7802 = vmatpush3.bf16.msra.mxu1 %v8373_v4 }
 0x42b   :  { %7803 = vmatprep.subr.bf16.mxu1 %v8401_v27 }
 0x437   :  { %v7317_v13 = vpop.f32.mrb[60].mxu0 }
 0x438   :  { %v7318_v49 = vpop.f32.mrb[61].mxu0 }
 0x439   :  { %v7319_v56 = vadd.f32 %v7318_v49, %v7317_v13  ;;  %v7320_v26 = vpop.f32.mrb[62].mxu0 }
 0x43a   :  { %v7321_v32 = vpop.f32.mrb[63].mxu0 }
 0x43b   :  { %v4431_v11 = vadd.f32 %v7319_v56, %v4430_v55 }
 0x43d   :  { %v4436_v35 = vadd.f32 %v4431_v11, %v4092_v1  ;;  %v8374_v1 = vld [vmem:[%s11054_s5 + $0x28] sm:$0xff]  }
 0x43e   :  { %7804 = vmatpush3.bf16.msra.mxu1 %v8374_v1 }
 0x43f   :  { %7805 = vmatprep.subr.bf16.mxu1 %v8401_v27 }
 0x442   :  { %7806 = vmatpush3.bf16.msra.mxu1 %v8375_v2 }
 0x443   :  { %7807 = vmatprep.subr.bf16.mxu1 %v8401_v27 }
 0x445   :  { %v7344_v52 = vpop.f32.mrb[152].mxu1 }
 0x446   :  { %v7345_v61 = vpop.f32.mrb[153].mxu1  ;;  %7808 = vmatpush3.bf16.msra.mxu1 %v8376_v5  ;;  %v6787_v5 = vld [vmem:[%s11055_s6] ss:$0 sm:$0xff] }
 0x447   :  { %v7346_v43 = vadd.f32 %v7345_v61, %v7344_v52  ;;  %v7347_v25 = vpop.f32.mrb[154].mxu1  ;;  %v4680_v34 = vpop.f32.mrb[64].mxu0 }
 0x448   :  { %v7348_v14 = vpop.f32.mrb[155].mxu1  ;;  %v7707_v39 = vpop.f32.mrb[65].mxu0 }
 0x449   :  { %v4681_v40 = vadd.f32 %v7346_v43, %v4680_v34  ;;  %v4683_v9 = vpop.f32.mrb[66].mxu0 }
 0x44a   :  { %v7708_v18 = vpop.f32.mrb[67].mxu0 }
 0x44b   :  { %v4686_v50 = vadd.f32 %v4681_v40, %v4342_v7 }
 0x455   :  { %v4774_v30 = vpop.f32.mrb[156].mxu1 }
 0x456   :  { %v7719_v16 = vpop.f32.mrb[157].mxu1 }
 0x457   :  { %v4777_v59 = vpop.f32.mrb[158].mxu1 }
 0x458   :  { %v7720_v6 = vpop.f32.mrb[159].mxu1 }
 0x467   :  { %v7371_v21 = vpop.f32.mrb[68].mxu0 }
 0x468   :  { %v7372_v60 = vpop.f32.mrb[69].mxu0 }
 0x469   :  { %v7373_v46 = vadd.f32 %v7372_v60, %v7371_v21  ;;  %v7374_v8 = vpop.f32.mrb[70].mxu0 }
 0x46a   :  { %v7375_v42 = vpop.f32.mrb[71].mxu0 }
 0x46b   :  { %v4775_v31 = vadd.f32 %v7373_v46, %v4774_v30 }
 0x46d   :  { %v4780_v36 = vadd.f32 %v4775_v31, %v4436_v35 }
 0x475   :  { %v7398_v45 = vpop.f32.mrb[160].mxu1 }
 0x476   :  { %v7399_v51 = vpop.f32.mrb[161].mxu1 }
 0x477   :  { %v7400_v37 = vadd.f32 %v7399_v51, %v7398_v45  ;;  %v7401_v19 = vpop.f32.mrb[162].mxu1  ;;  %v5034_v24 = vpop.f32.mrb[72].mxu0  ;;  %v6786_v45 = vld [vmem:[%s11053_s4] ss:$0 sm:$0xff] }
 0x478   :  { %v7402_v12 = vpop.f32.mrb[163].mxu1  ;;  %v7731_v62 = vpop.f32.mrb[73].mxu0 }
 0x479   :  { %v5035_v38 = vadd.f32 %v7400_v37, %v5034_v24  ;;  %v5037_v58 = vpop.f32.mrb[74].mxu0 }
 0x47a   :  { %v7732_v10 = vpop.f32.mrb[75].mxu0 }
 0x47b   :  { %v5040_v41 = vadd.f32 %v5035_v38, %v4686_v50 }
 0x485   :  { %v5128_v0 = vpop.f32.mrb[164].mxu1 }
 0x486   :  { %v7743_v3 = vpop.f32.mrb[165].mxu1 }
 0x487   :  { %v5131_v47 = vpop.f32.mrb[166].mxu1 }
 0x488   :  { %v7744_v53 = vpop.f32.mrb[167].mxu1 }
 0x497   :  { %v7425_v48 = vpop.f32.mrb[76].mxu0 }
 0x498   :  { %v7426_v23 = vpop.f32.mrb[77].mxu0 }
 0x499   :  { %v7427_v57 = vadd.f32 %v7426_v23, %v7425_v48  ;;  %v7428_v28 = vpop.f32.mrb[78].mxu0 }
 0x49a   :  { %v7429_v7 = vpop.f32.mrb[79].mxu0 }
 0x49b   :  { %v5129_v63 = vadd.f32 %v7427_v57, %v5128_v0 }
 0x49d   :  { %v5134_v29 = vadd.f32 %v5129_v63, %v4780_v36 }
 0x4a5   :  { %v7452_v55 = vpop.f32.mrb[168].mxu1 }
 0x4a6   :  { %v7453_v17 = vpop.f32.mrb[169].mxu1 }
 0x4a7   :  { %v7454_v20 = vadd.f32 %v7453_v17, %v7452_v55  ;;  %v7455_v22 = vpop.f32.mrb[170].mxu1  ;;  %v5373_v13 = vpop.f32.mrb[80].mxu0 }
 0x4a8   :  { %v7456_v49 = vpop.f32.mrb[171].mxu1  ;;  %v7755_v56 = vpop.f32.mrb[81].mxu0 }
 0x4a9   :  { %v5374_v26 = vadd.f32 %v7454_v20, %v5373_v13  ;;  %v5376_v32 = vpop.f32.mrb[82].mxu0 }
 0x4aa   :  { %v7756_v11 = vpop.f32.mrb[83].mxu0 }
 0x4ab   :  { %v5379_v35 = vadd.f32 %v5374_v26, %v5040_v41 }
 0x4b5   :  { %v5467_v27 = vpop.f32.mrb[172].mxu1 }
 0x4b6   :  { %v7767_v52 = vpop.f32.mrb[173].mxu1 }
 0x4b7   :  { %v5470_v61 = vpop.f32.mrb[174].mxu1 }
 0x4b8   :  { %v7768_v43 = vpop.f32.mrb[175].mxu1 }
 0x4c7   :  { %v7479_v25 = vpop.f32.mrb[84].mxu0 }
 0x4c8   :  { %v7480_v34 = vpop.f32.mrb[85].mxu0 }
 0x4c9   :  { %v7481_v14 = vadd.f32 %v7480_v34, %v7479_v25  ;;  %v7482_v39 = vpop.f32.mrb[86].mxu0 }
 0x4ca   :  { %v7483_v40 = vpop.f32.mrb[87].mxu0 }
 0x4cb   :  { %v5468_v9 = vadd.f32 %v7481_v14, %v5467_v27 }
 0x4cd   :  { %v5473_v18 = vadd.f32 %v5468_v9, %v5134_v29 }
 0x4d5   :  { %v7506_v50 = vpop.f32.mrb[176].mxu1 }
 0x4d6   :  { %v7507_v30 = vpop.f32.mrb[177].mxu1 }
 0x4d7   :  { %v7508_v16 = vadd.f32 %v7507_v30, %v7506_v50  ;;  %v7509_v59 = vpop.f32.mrb[178].mxu1  ;;  %v5717_v6 = vpop.f32.mrb[88].mxu0 }
 0x4d8   :  { %v7510_v21 = vpop.f32.mrb[179].mxu1  ;;  %v7779_v60 = vpop.f32.mrb[89].mxu0 }
 0x4d9   :  { %v5718_v15 = vadd.f32 %v7508_v16, %v5717_v6  ;;  %v5720_v46 = vpop.f32.mrb[90].mxu0 }
 0x4da   :  { %v7780_v8 = vpop.f32.mrb[91].mxu0 }
 0x4db   :  { %v5723_v42 = vadd.f32 %v5718_v15, %v5379_v35 }
 0x4dd   :  { %v5825_v19 = vadd.f32 %v6786_v45, %v5723_v42 }
 0x4df   :  { %v5826_v58 = vmax.f32 %v5825_v19, 0.0 }
 0x4e1   :  { %v5830_v41 = vrot.slane %v5826_v58, 2 }
 0x4e3   :  { %v5832_v0 = vmax.f32 %v5826_v58, %v5830_v41 }
 0x4e5   :  { %v5811_v33 = vpop.f32.mrb[180].mxu1 }
 0x4e6   :  { %v7791_v31 = vpop.f32.mrb[181].mxu1 }
 0x4e7   :  { %v5814_v36 = vpop.f32.mrb[182].mxu1 }
 0x4e8   :  { %v7792_v54 = vpop.f32.mrb[183].mxu1 }
 0x4f7   :  { %v7533_v51 = vpop.f32.mrb[92].mxu0 }
 0x4f8   :  { %v7534_v37 = vpop.f32.mrb[93].mxu0 }
 0x4f9   :  { %v7535_v24 = vadd.f32 %v7534_v37, %v7533_v51  ;;  %v7536_v12 = vpop.f32.mrb[94].mxu0 }
 0x4fa   :  { %v7537_v62 = vpop.f32.mrb[95].mxu0 }
 0x4fb   :  { %v5812_v38 = vadd.f32 %v7535_v24, %v5811_v33 }
 0x4fd   :  { %v5817_v44 = vadd.f32 %v5812_v38, %v5473_v18 }
 0x4ff   :  { %v5827_v10 = vadd.f32 %v6786_v45, %v5817_v44 }
 0x501   :  { %v5828_v4 = vmax.f32 %v5827_v10, 0.0 }
 0x503   :  { %v5834_v1 = vrot.slane %v5828_v4, 2 }
 0x505   :  { %v5836_v2 = vmax.f32 %v5828_v4, %v5834_v1 }
 0x507   :  { %v5837_v3 = vmax.f32 %v5832_v0, %v5836_v2 }
 0x509   :  { %v5838_v47 = vpack.c.bf16 %v5837_v3, %v5837_v3 }
 0x50b   :  { %7810 = vmatmul.mubr.bf16.vlgmr.msra.gmra.mrb[184].mxu1 %v5838_v47 }
 0x5de   :  { %v5944_v53 = vpop.f32.mrb[184].mxu1 }
 0x5df   :  { %v5945_v48 = vadd.f32 %v6787_v5, %v5944_v53  ;;  %v7811_v23 = vpop.f32.mrb[185].mxu1 }
 0x5e0   :  { %v5947_v57 = vpop.f32.mrb[186].mxu1 }
 0x5e1   :  { %v7812_v28 = vpop.f32.mrb[187].mxu1  ;;  %5951 = vst.msk [vmem:[#allocation2] sm:$0x3] %vm5950_vm4, %v5945_v48 }
 0x5e2   :  { %8388 = shalt.err (!%p8385_p4)
}
 0x5e3   :  { %s8389_s6 = scalar_lea.hbm %s11056_s7, 32 }
 0x5e4   :  { %p8390_p5 = scmp.ne.s32.totalorder %s11056_s7, %s8389_s6  ;;  %p8393_p6 = scmp.lt.u32.totalorder %s8389_s6, %s11056_s7 }
 0x5e6   :  { %p8395_p7 = pnand %p8393_p6, %p8390_p5 }
 0x5e8   :  { %8398 = shalt.err (!%p8395_p7)
}
 0x5e9   :  { %5961 = dma.vmem_to_hbm [thread:$0]  %s5959_s28, 32, %s11056_s7, [#allocation3]  }
 0x5ea   :  { %8399 = dma.done.wait [#allocation3], 32  }
 0x5eb   :  { %8400 = vsyncadd [#allocation3], 4294967264 }
 0x5ec   :  { %5965 = vsyncpa [#allocation3], 1 }

</bundles_post_ra>
